<compile_context>
chip_gen: v7x
topology: tpu7x:2x2x1
jax: 0.10.0
libtpu: 0.0.40
codegen_flags: <defaults>
</compile_context>

<pallas_src>
import numpy as np
import jax
import jax.numpy as jnp
from jax.experimental import pallas as pl
from jax.experimental.pallas import tpu as pltpu

BN_EPS = 1e-5


# ----------------------------------------------------------------------------
# Fused Pallas matmul kernel:  out = [relu](A @ B + bias) [* scale + shift]
# A, B are bf16 tiles (native MXU dtype); accumulation is f32 in VMEM scratch.
# ----------------------------------------------------------------------------
def _make_matmul_kernel(apply_relu, apply_affine):
    def kernel(a_ref, b_ref, aux_ref, o_ref, acc_ref):
        @pl.when(pl.program_id(2) == 0)
        def _():
            acc_ref[...] = jnp.zeros_like(acc_ref)

        acc_ref[...] += jnp.dot(a_ref[...], b_ref[...],
                                preferred_element_type=jnp.float32)

        @pl.when(pl.program_id(2) == pl.num_programs(2) - 1)
        def _():
            y = acc_ref[...] + aux_ref[0:1, :]            # + bias
            if apply_relu:                                # module: Conv -> ReLU -> BN
                y = jnp.maximum(y, 0.0)
            if apply_affine:                              # eval-mode BatchNorm
                y = y * aux_ref[1:2, :] + aux_ref[2:3, :]
            o_ref[...] = y.astype(o_ref.dtype)

    return kernel


def _ceil_to(x, m):
    return ((x + m - 1) // m) * m


def _largest_div(n, candidates):
    for c in candidates:
        if n % c == 0:
            return c
    return candidates[-1]


def _choose_tiles(M, N, K):
    """Big MXU-friendly tiles; keep >=2 parallel (i,j) output tiles (v7x)."""
    Mp, Np, Kp = _ceil_to(M, 128), _ceil_to(N, 128), _ceil_to(K, 128)
    TM = _largest_div(Mp, (512, 256, 128))
    TN = _largest_div(Np, (512, 256, 128))
    if Mp == TM and Np == TN:            # only one output tile -> try to split
        if Np % 256 == 0:
            TN = _largest_div(Np // 2, (256, 128))
        elif Mp % 256 == 0:
            TM = _largest_div(Mp // 2, (256, 128))
    TK = _largest_div(Kp, (1024, 512, 256, 128))
    return Mp, Np, Kp, TM, TN, TK


def _pallas_fused_matmul(a, b, aux, relu, affine):
    """out[M,N] = epilogue(a[M,K] @ b[K,N]); operands fed to the MXU as bf16."""
    M, K = a.shape
    N = b.shape[1]
    Mp, Np, Kp, TM, TN, TK = _choose_tiles(M, N, K)

    a = a.astype(jnp.bfloat16)
    b = b.astype(jnp.bfloat16)
    if (Mp, Kp) != (M, K):
        a = jnp.pad(a, ((0, Mp - M), (0, Kp - K)))
    if (Kp, Np) != (K, N):
        b = jnp.pad(b, ((0, Kp - K), (0, Np - N)))
    if Np != N:
        aux = jnp.pad(aux, ((0, 0), (0, Np - N)))

    grid = (Mp // TM, Np // TN, Kp // TK)
    out = pl.pallas_call(
        _make_matmul_kernel(relu, affine),
        out_shape=jax.ShapeDtypeStruct((Mp, Np), jnp.float32),
        grid_spec=pltpu.PrefetchScalarGridSpec(
            num_scalar_prefetch=0,
            grid=grid,
            in_specs=[
                pl.BlockSpec((TM, TK), lambda i, j, k: (i, k)),
                pl.BlockSpec((TK, TN), lambda i, j, k: (k, j)),
                pl.BlockSpec((8, TN), lambda i, j, k: (0, j)),   # bias/scale/shift
            ],
            out_specs=pl.BlockSpec((TM, TN), lambda i, j, k: (i, j)),
            scratch_shapes=[pltpu.VMEM((TM, TN), jnp.float32)],
        ),
        compiler_params=pltpu.CompilerParams(
            dimension_semantics=("parallel", "parallel", "arbitrary")),
    )(a, b, aux)
    if (Mp, Np) != (M, N):
        out = out[:M, :N]
    return out


def fused_linear(a, wmat, aux, relu, affine):
    """Dispatch: big matmuls -> Pallas MXU kernel; tiny ones -> plain XLA
    (padding a 2-row or 1-column problem to 128-tiles is pure overhead)."""
    M, K = a.shape
    N = wmat.shape[1]
    if M < 8 or N < 16 or M * K * N < (1 << 21):
        y = jnp.dot(a, wmat.astype(jnp.float32)) + aux[0, :N]
        if relu:
            y = jnp.maximum(y, 0.0)
        if affine:
            y = y * aux[1, :N] + aux[2, :N]
        return y
    return _pallas_fused_matmul(a, wmat, aux, relu, affine)


# ----------------------------------------------------------------------------
# Conv / ConvTranspose via channels-last im2col + fused matmul
# TODO(synk): for the K=2048*9 convs the patch extraction could be fused into
# the kernel via a (ky,kx,C-chunk) index_map to avoid the 9x im2col HBM blowup.
# ----------------------------------------------------------------------------
def _im2col(x, kh, kw, stride):
    """x: padded NHWC [B,H,W,C] -> ([B*oh*ow, kh*kw*C], oh, ow). C-minor cols."""
    B, H, W, C = x.shape
    oh = (H - kh) // stride + 1
    ow = (W - kw) // stride + 1
    if kh == 1 and kw == 1 and stride == 1:
        return x.reshape(B * oh * ow, C), oh, ow
    patches = []
    for i in range(kh):
        for j in range(kw):
            patches.append(x[:, i:i + stride * oh:stride,
                             j:j + stride * ow:stride, :])      # [B,oh,ow,C]
    col = jnp.stack(patches, axis=3)                             # [B,oh,ow,kh*kw,C]
    return col.reshape(B * oh * ow, kh * kw * C), oh, ow


def conv2d(x, layer, kh, kw, stride, padding, relu, affine):
    """PyTorch-semantics Conv2d on NHWC activations."""
    B = x.shape[0]
    if padding:
        x = jnp.pad(x, ((0, 0), (padding, padding), (padding, padding), (0, 0)))
    col, oh, ow = _im2col(x, kh, kw, stride)
    out = fused_linear(col, layer["wmat"], layer["aux"], relu, affine)
    return out.reshape(B, oh, ow, layer["wmat"].shape[1])


def conv_transpose2d(x, layer, kh, kw, stride, padding, output_padding,
                     relu, affine):
    """PyTorch-semantics ConvTranspose2d on NHWC: input dilation + direct conv
    with the (pre-flipped, pre-swapped) weight prepared at init."""
    B, H, W, C = x.shape
    if stride > 1:
        xd = jnp.zeros((B, (H - 1) * stride + 1, (W - 1) * stride + 1, C),
                       x.dtype)
        xd = xd.at[:, ::stride, ::stride, :].set(x)
    else:
        xd = x
    ph, pw = kh - 1 - padding, kw - 1 - padding
    xd = jnp.pad(xd, ((0, 0),
                      (ph, ph + output_padding),
                      (pw, pw + output_padding),
                      (0, 0)))
    col, oh, ow = _im2col(xd, kh, kw, 1)
    out = fused_linear(col, layer["wmat"], layer["aux"], relu, affine)
    return out.reshape(B, oh, ow, layer["wmat"].shape[1])


# ----------------------------------------------------------------------------
# Separable bilinear upsample / adaptive average pool (tiny -> plain XLA)
# ----------------------------------------------------------------------------
def bilinear_matrix(n_in, n_out):
    """nn.Upsample(mode='bilinear', align_corners=True) 1-D weights."""
    m = np.zeros((n_out, n_in), np.float32)
    if n_in == 1 or n_out == 1:
        m[:, 0] = 1.0
    else:
        for i in range(n_out):
            src = i * (n_in - 1) / (n_out - 1)
            lo = int(np.floor(src))
            hi = min(lo + 1, n_in - 1)
            frac = src - lo
            m[i, lo] += 1.0 - frac
            m[i, hi] += frac
    return jnp.asarray(m)


def adaptive_avg_matrix(n_in, n_out):
    """nn.AdaptiveAvgPool2d 1-D averaging weights."""
    m = np.zeros((n_out, n_in), np.float32)
    for i in range(n_out):
        s = (i * n_in) // n_out
        e = -((-(i + 1) * n_in) // n_out)  # ceil
        m[i, s:e] = 1.0 / (e - s)
    return jnp.asarray(m)


def apply_sep(x, mh, mw):
    """Apply 1-D resize/pool matrices along H and W of an NHWC tensor."""
    x = jnp.einsum("oh,bhwc->bowc", mh, x)
    x = jnp.einsum("ow,bhwc->bhoc", mw, x)
    return x


# ----------------------------------------------------------------------------
# Deterministic parameter init (synthetic — shapes from the module __init__)
# ----------------------------------------------------------------------------
def _conv_w(key, shape):
    fan_in = int(np.prod(shape[1:])) if len(shape) == 4 else shape[1]
    std = float(np.sqrt(2.0 / fan_in))
    return jax.random.normal(key, shape, jnp.float32) * std


def _bias(key, c):
    return 0.01 * jax.random.normal(key, (c,), jnp.float32)


def _bn(key, c):
    k1, k2, k3, k4 = jax.random.split(key, 4)
    gamma = 1.0 + 0.1 * jax.random.normal(k1, (c,), jnp.float32)
    beta = 0.1 * jax.random.normal(k2, (c,), jnp.float32)
    mean = 0.1 * jax.random.normal(k3, (c,), jnp.float32)
    var = 1.0 + 0.1 * jax.random.uniform(k4, (c,), jnp.float32)
    return gamma, beta, mean, var


def bn_fold(bn):
    gamma, beta, mean, var = bn
    scale = gamma / jnp.sqrt(var + BN_EPS)
    shift = beta - mean * scale
    return scale, shift


def init_params(key):
    ks = iter(jax.random.split(key, 64))
    nxt = lambda: next(ks)
    return {
        "up": {
            # ConvTranspose2d weight layout: [Cin, Cout, kh, kw]
            "ct1_w": _conv_w(nxt(), (2048, 512, 3, 3)), "ct1_b": _bias(nxt(), 512),
            "bn1": _bn(nxt(), 512),
            "ct2_w": _conv_w(nxt(), (512, 128, 4, 4)), "ct2_b": _bias(nxt(), 128),
            "bn2": _bn(nxt(), 128),
            "c3_w": _conv_w(nxt(), (32, 128, 3, 3)), "c3_b": _bias(nxt(), 32),
            "bn3": _bn(nxt(), 32),
            "c4_w": _conv_w(nxt(), (1, 32, 1, 1)), "c4_b": _bias(nxt(), 1),
        },
        "fc": {
            "c1_w": _conv_w(nxt(), (512, 2048, 3, 3)), "c1_b": _bias(nxt(), 512),
            "bn1": _bn(nxt(), 512),
            "c2_w": _conv_w(nxt(), (128, 512, 3, 3)), "c2_b": _bias(nxt(), 128),
            "bn2": _bn(nxt(), 128),
            "c3_w": _conv_w(nxt(), (32, 128, 1, 1)), "c3_b": _bias(nxt(), 32),
        },
        "fl": {
            "l1_w": _conv_w(nxt(), (256, 512)), "l1_b": _bias(nxt(), 256),
            "l2_w": _conv_w(nxt(), (1, 256)), "l2_b": _bias(nxt(), 1),
        },
    }


# ----------------------------------------------------------------------------
# One-time weight preparation (hoisted out of the forward path)
# ----------------------------------------------------------------------------
def _prep_conv(w, b, bn, transpose=False):
    if transpose:
        # ConvTranspose2d weight [Cin,Cout,kh,kw] -> equivalent direct-conv weight
        w = jnp.flip(w, axis=(2, 3)).transpose(1, 0, 2, 3)     # [Cout,Cin,kh,kw]
    cout, cin, kh, kw = w.shape
    # im2col K-ordering is (ky, kx, cin): match it; cast once to bf16 (MXU dtype).
    wmat = w.transpose(2, 3, 1, 0).reshape(kh * kw * cin, cout).astype(jnp.bfloat16)
    if bn is not None:
        scale, shift = bn_fold(bn)
    else:
        scale = jnp.ones((cout,), jnp.float32)
        shift = jnp.zeros((cout,), jnp.float32)
    aux = jnp.zeros((8, cout), jnp.float32)      # sublane-aligned epilogue slab
    aux = aux.at[0].set(b.astype(jnp.float32))   # row 0: bias
    aux = aux.at[1].set(scale)                   # row 1: BN scale
    aux = aux.at[2].set(shift)                   # row 2: BN shift
    return {"wmat": wmat, "aux": aux}


def prepare_params(p):
    return {
        "up": {
            "ct1": _prep_conv(p["up"]["ct1_w"], p["up"]["ct1_b"], p["up"]["bn1"],
                              transpose=True),
            "ct2": _prep_conv(p["up"]["ct2_w"], p["up"]["ct2_b"], p["up"]["bn2"],
                              transpose=True),
            "c3": _prep_conv(p["up"]["c3_w"], p["up"]["c3_b"], p["up"]["bn3"]),
            "c4": _prep_conv(p["up"]["c4_w"], p["up"]["c4_b"], None),
        },
        "fc": {
            "c1": _prep_conv(p["fc"]["c1_w"], p["fc"]["c1_b"], p["fc"]["bn1"]),
            "c2": _prep_conv(p["fc"]["c2_w"], p["fc"]["c2_b"], p["fc"]["bn2"]),
            "c3": _prep_conv(p["fc"]["c3_w"], p["fc"]["c3_b"], None),
        },
        "fl": {
            "l1_w": p["fl"]["l1_w"].T.astype(jnp.float32),   # [512, 256]
            "l1_b": p["fl"]["l1_b"],
            "l2_w": p["fl"]["l2_w"].T.astype(jnp.float32),   # [256, 1]
            "l2_b": p["fl"]["l2_b"],
        },
    }


# ----------------------------------------------------------------------------
# Forward pass (everything after self.backbone(x)['out'])
# ----------------------------------------------------------------------------
def multitasking_forward(features_nchw, prep):
    x = jnp.transpose(features_nchw, (0, 2, 3, 1)).astype(jnp.float32)  # NHWC

    # ----- self.up : distance-map head -----
    u = prep["up"]
    h = conv_transpose2d(x, u["ct1"], 3, 3, stride=2, padding=1,
                         output_padding=1, relu=True, affine=True)
    h = conv_transpose2d(h, u["ct2"], 4, 4, stride=1, padding=1,
                         output_padding=0, relu=True, affine=True)
    H, W = h.shape[1], h.shape[2]
    h = apply_sep(h, bilinear_matrix(H, 2 * H), bilinear_matrix(W, 2 * W))
    h = conv2d(h, u["c3"], 3, 3, stride=1, padding=1, relu=True, affine=True)
    h = conv2d(h, u["c4"], 1, 1, stride=1, padding=0, relu=False, affine=False)
    h = apply_sep(h, adaptive_avg_matrix(h.shape[1], 99),
                  adaptive_avg_matrix(h.shape[2], 99))
    x_dist = h[..., 0]                                   # squeeze channel -> [B,99,99]

    # ----- self.fc : regression feature head -----
    f = prep["fc"]
    y = conv2d(x, f["c1"], 3, 3, stride=2, padding=1, relu=True, affine=True)
    y = conv2d(y, f["c2"], 3, 3, stride=2, padding=1, relu=True, affine=True)
    y = conv2d(y, f["c3"], 1, 1, stride=1, padding=0, relu=False, affine=False)
    y = apply_sep(y, adaptive_avg_matrix(y.shape[1], 4),
                  adaptive_avg_matrix(y.shape[2], 4))
    # torch.flatten(x, 1) on NCHW == channel-major flatten
    y = jnp.transpose(y, (0, 3, 1, 2)).reshape(y.shape[0], -1)   # [B, 512]

    # ----- self.fl : MLP head (eval-mode Dropout = identity) -----
    fl = prep["fl"]
    y = jnp.maximum(y @ fl["l1_w"] + fl["l1_b"], 0.0)
    x_num = y @ fl["l2_w"] + fl["l2_b"]                  # [B, 1]
    return x_dist, x_num


if __name__ == "__main__":
    key = jax.random.PRNGKey(0)
    kf, kp = jax.random.split(key)
    # Backbone output stand-in: [B, 2048, Hf, Wf] feature map (small shapes).
    features = jax.random.normal(kf, (2, 2048, 4, 4), jnp.float32)
    params = init_params(kp)
    prep = prepare_params(params)          # one-time weight-side work

    fwd = jax.jit(multitasking_forward)
    x_dist, x_num = fwd(features, prep)
    jax.block_until_ready((x_dist, x_num))

    assert x_dist.shape == (2, 99, 99), x_dist.shape
    assert x_num.shape == (2, 1), x_num.shape
    assert bool(jnp.all(jnp.isfinite(x_dist))) and bool(jnp.all(jnp.isfinite(x_num)))
    print("KERNEL_OK")
</pallas_src>

<mosaic_0001>
module attributes {stable_mosaic.version = 11 : i64} {
  func.func @kernel(%arg0: i32, %arg1: i32, %arg2: i32, %arg3: memref<128x1024xbf16, #tpu.memory_space<vmem>>, %arg4: memref<1024x256xbf16, #tpu.memory_space<vmem>>, %arg5: memref<8x256xf32, #tpu.memory_space<vmem>>, %arg6: memref<128x256xf32, #tpu.memory_space<vmem>>, %arg7: memref<128x256xf32, #tpu.memory_space<vmem>>) attributes {dimension_semantics = [#tpu.dimension_semantics<parallel>, #tpu.dimension_semantics<parallel>, #tpu.dimension_semantics<arbitrary>], iteration_bounds = array<i64: 1, 2, 18>, scalar_prefetch = 0 : i64, scratch_operands = 1 : i64, tpu.core_type = #tpu.core_type<tc>, window_params = [{transform_indices = @transform_0, window_bounds = array<i64: 128, 1024>}, {transform_indices = @transform_1, window_bounds = array<i64: 1024, 256>}, {transform_indices = @transform_2, window_bounds = array<i64: 8, 256>}, {transform_indices = @transform_3, window_bounds = array<i64: 128, 256>}]} {
    %c0_i32 = arith.constant 0 : i32
    %0 = arith.cmpi eq, %arg2, %c0_i32 : i32
    %1 = arith.extui %0 : i1 to i32
    %c0_i32_0 = arith.constant 0 : i32
    %2 = arith.cmpi ne, %1, %c0_i32_0 : i32
    scf.if %2 {
      %cst_9 = arith.constant 0.000000e+00 : f32
      %12 = vector.broadcast %cst_9 : f32 to vector<128x256xf32>
      %c0_10 = arith.constant 0 : index
      %c0_11 = arith.constant 0 : index
      %13 = vector.load %arg7[%c0_10, %c0_11] : memref<128x256xf32, #tpu.memory_space<vmem>>, vector<128x256xf32>
      tpu.vector_store %arg7[%c0_10, %c0_11], %12 {strides = array<i32>} : memref<128x256xf32, #tpu.memory_space<vmem>>, vector<128x256xf32>,
    } else {
    }
    %c0 = arith.constant 0 : index
    %c0_1 = arith.constant 0 : index
    %3 = vector.load %arg7[%c0, %c0_1] : memref<128x256xf32, #tpu.memory_space<vmem>>, vector<128x256xf32>
    %c0_2 = arith.constant 0 : index
    %c0_3 = arith.constant 0 : index
    %4 = vector.load %arg3[%c0_2, %c0_3] : memref<128x1024xbf16, #tpu.memory_space<vmem>>, vector<128x1024xbf16>
    %c0_4 = arith.constant 0 : index
    %c0_5 = arith.constant 0 : index
    %5 = vector.load %arg4[%c0_4, %c0_5] : memref<1024x256xbf16, #tpu.memory_space<vmem>>, vector<1024x256xbf16>
    %cst = arith.constant dense<0.000000e+00> : vector<128x256xf32>
    %6 = tpu.matmul %4, %5, %cst {dimension_numbers = #tpu.dot_dimension_numbers<[1], [0], [0], [1], [0, 0, 1, 1], [], []>} : vector<128x1024xbf16>, vector<1024x256xbf16>, vector<128x256xf32> -> vector<128x256xf32>
    %7 = arith.addf %3, %6 : vector<128x256xf32>
    %c0_6 = arith.constant 0 : index
    %c0_7 = arith.constant 0 : index
    %8 = vector.load %arg7[%c0_6, %c0_7] : memref<128x256xf32, #tpu.memory_space<vmem>>, vector<128x256xf32>
    tpu.vector_store %arg7[%c0_6, %c0_7], %7 {strides = array<i32>} : memref<128x256xf32, #tpu.memory_space<vmem>>, vector<128x256xf32>,
    %c17_i32 = arith.constant 17 : i32
    %9 = arith.cmpi eq, %arg2, %c17_i32 : i32
    %10 = arith.extui %9 : i1 to i32
    %c0_i32_8 = arith.constant 0 : i32
    %11 = arith.cmpi ne, %10, %c0_i32_8 : i32
    scf.if %11 {
      %c0_9 = arith.constant 0 : index
      %c0_10 = arith.constant 0 : index
      %12 = vector.load %arg7[%c0_9, %c0_10] : memref<128x256xf32, #tpu.memory_space<vmem>>, vector<128x256xf32>
      %c0_11 = arith.constant 0 : index
      %c0_12 = arith.constant 0 : index
      %13 = vector.load %arg5[%c0_11, %c0_12] : memref<8x256xf32, #tpu.memory_space<vmem>>, vector<1x256xf32>
      %14 = vector.broadcast %13 : vector<1x256xf32> to vector<128x256xf32>
      %15 = arith.addf %12, %14 : vector<128x256xf32>
      %cst_13 = arith.constant 0.000000e+00 : f32
      %16 = vector.broadcast %cst_13 : f32 to vector<128x256xf32>
      %17 = arith.maximumf %15, %16 : vector<128x256xf32>
      %c1 = arith.constant 1 : index
      %c0_14 = arith.constant 0 : index
      %18 = vector.load %arg5[%c1, %c0_14] : memref<8x256xf32, #tpu.memory_space<vmem>>, vector<1x256xf32>
      %19 = vector.broadcast %18 : vector<1x256xf32> to vector<128x256xf32>
      %20 = arith.mulf %17, %19 : vector<128x256xf32>
      %c2 = arith.constant 2 : index
      %c0_15 = arith.constant 0 : index
      %21 = vector.load %arg5[%c2, %c0_15] : memref<8x256xf32, #tpu.memory_space<vmem>>, vector<1x256xf32>
      %22 = vector.broadcast %21 : vector<1x256xf32> to vector<128x256xf32>
      %23 = arith.addf %20, %22 : vector<128x256xf32>
      %c0_16 = arith.constant 0 : index
      %c0_17 = arith.constant 0 : index
      %24 = vector.load %arg6[%c0_16, %c0_17] : memref<128x256xf32, #tpu.memory_space<vmem>>, vector<128x256xf32>
      tpu.vector_store %arg6[%c0_16, %c0_17], %23 {strides = array<i32>} : memref<128x256xf32, #tpu.memory_space<vmem>>, vector<128x256xf32>,
    } else {
    }
    return
  }
  func.func @transform_0(%arg0: i32, %arg1: i32, %arg2: i32) -> (i32, i32) {
    %c0_i32 = arith.constant 0 : i32
    return %arg0, %arg2 : i32, i32
  }
  func.func @transform_1(%arg0: i32, %arg1: i32, %arg2: i32) -> (i32, i32) {
    %c0_i32 = arith.constant 0 : i32
    return %arg2, %arg1 : i32, i32
  }
  func.func @transform_2(%arg0: i32, %arg1: i32, %arg2: i32) -> (i32, i32) {
    %c0_i32 = arith.constant 0 : i32
    %c0_i32_0 = arith.constant 0 : i32
    return %c0_i32, %arg1 : i32, i32
  }
  func.func @transform_3(%arg0: i32, %arg1: i32, %arg2: i32) -> (i32, i32) {
    %c0_i32 = arith.constant 0 : i32
    return %arg0, %arg1 : i32, i32
  }
}

module attributes {stable_mosaic.version = 11 : i64} {
  func.func @kernel(%arg0: i32, %arg1: i32, %arg2: i32, %arg3: memref<128x1024xbf16, #tpu.memory_space<vmem>>, %arg4: memref<1024x128xbf16, #tpu.memory_space<vmem>>, %arg5: memref<8x128xf32, #tpu.memory_space<vmem>>, %arg6: memref<128x128xf32, #tpu.memory_space<vmem>>, %arg7: memref<128x128xf32, #tpu.memory_space<vmem>>) attributes {dimension_semantics = [#tpu.dimension_semantics<parallel>, #tpu.dimension_semantics<parallel>, #tpu.dimension_semantics<arbitrary>], iteration_bounds = array<i64: 2, 1, 8>, scalar_prefetch = 0 : i64, scratch_operands = 1 : i64, tpu.core_type = #tpu.core_type<tc>, window_params = [{transform_indices = @transform_0, window_bounds = array<i64: 128, 1024>}, {transform_indices = @transform_1, window_bounds = array<i64: 1024, 128>}, {transform_indices = @transform_2, window_bounds = array<i64: 8, 128>}, {transform_indices = @transform_3, window_bounds = array<i64: 128, 128>}]} {
    %c0_i32 = arith.constant 0 : i32
    %0 = arith.cmpi eq, %arg2, %c0_i32 : i32
    %1 = arith.extui %0 : i1 to i32
    %c0_i32_0 = arith.constant 0 : i32
    %2 = arith.cmpi ne, %1, %c0_i32_0 : i32
    scf.if %2 {
      %cst_9 = arith.constant 0.000000e+00 : f32
      %12 = vector.broadcast %cst_9 : f32 to vector<128x128xf32>
      %c0_10 = arith.constant 0 : index
      %c0_11 = arith.constant 0 : index
      %13 = vector.load %arg7[%c0_10, %c0_11] : memref<128x128xf32, #tpu.memory_space<vmem>>, vector<128x128xf32>
      tpu.vector_store %arg7[%c0_10, %c0_11], %12 {strides = array<i32>} : memref<128x128xf32, #tpu.memory_space<vmem>>, vector<128x128xf32>,
    } else {
    }
    %c0 = arith.constant 0 : index
    %c0_1 = arith.constant 0 : index
    %3 = vector.load %arg7[%c0, %c0_1] : memref<128x128xf32, #tpu.memory_space<vmem>>, vector<128x128xf32>
    %c0_2 = arith.constant 0 : index
    %c0_3 = arith.constant 0 : index
    %4 = vector.load %arg3[%c0_2, %c0_3] : memref<128x1024xbf16, #tpu.memory_space<vmem>>, vector<128x1024xbf16>
    %c0_4 = arith.constant 0 : index
    %c0_5 = arith.constant 0 : index
    %5 = vector.load %arg4[%c0_4, %c0_5] : memref<1024x128xbf16, #tpu.memory_space<vmem>>, vector<1024x128xbf16>
    %cst = arith.constant dense<0.000000e+00> : vector<128x128xf32>
    %6 = tpu.matmul %4, %5, %cst {dimension_numbers = #tpu.dot_dimension_numbers<[1], [0], [0], [1], [0, 0, 1, 1], [], []>} : vector<128x1024xbf16>, vector<1024x128xbf16>, vector<128x128xf32> -> vector<128x128xf32>
    %7 = arith.addf %3, %6 : vector<128x128xf32>
    %c0_6 = arith.constant 0 : index
    %c0_7 = arith.constant 0 : index
    %8 = vector.load %arg7[%c0_6, %c0_7] : memref<128x128xf32, #tpu.memory_space<vmem>>, vector<128x128xf32>
    tpu.vector_store %arg7[%c0_6, %c0_7], %7 {strides = array<i32>} : memref<128x128xf32, #tpu.memory_space<vmem>>, vector<128x128xf32>,
    %c7_i32 = arith.constant 7 : i32
    %9 = arith.cmpi eq, %arg2, %c7_i32 : i32
    %10 = arith.extui %9 : i1 to i32
    %c0_i32_8 = arith.constant 0 : i32
    %11 = arith.cmpi ne, %10, %c0_i32_8 : i32
    scf.if %11 {
      %c0_9 = arith.constant 0 : index
      %c0_10 = arith.constant 0 : index
      %12 = vector.load %arg7[%c0_9, %c0_10] : memref<128x128xf32, #tpu.memory_space<vmem>>, vector<128x128xf32>
      %c0_11 = arith.constant 0 : index
      %c0_12 = arith.constant 0 : index
      %13 = vector.load %arg5[%c0_11, %c0_12] : memref<8x128xf32, #tpu.memory_space<vmem>>, vector<1x128xf32>
      %14 = vector.broadcast %13 : vector<1x128xf32> to vector<128x128xf32>
      %15 = arith.addf %12, %14 : vector<128x128xf32>
      %cst_13 = arith.constant 0.000000e+00 : f32
      %16 = vector.broadcast %cst_13 : f32 to vector<128x128xf32>
      %17 = arith.maximumf %15, %16 : vector<128x128xf32>
      %c1 = arith.constant 1 : index
      %c0_14 = arith.constant 0 : index
      %18 = vector.load %arg5[%c1, %c0_14] : memref<8x128xf32, #tpu.memory_space<vmem>>, vector<1x128xf32>
      %19 = vector.broadcast %18 : vector<1x128xf32> to vector<128x128xf32>
      %20 = arith.mulf %17, %19 : vector<128x128xf32>
      %c2 = arith.constant 2 : index
      %c0_15 = arith.constant 0 : index
      %21 = vector.load %arg5[%c2, %c0_15] : memref<8x128xf32, #tpu.memory_space<vmem>>, vector<1x128xf32>
      %22 = vector.broadcast %21 : vector<1x128xf32> to vector<128x128xf32>
      %23 = arith.addf %20, %22 : vector<128x128xf32>
      %c0_16 = arith.constant 0 : index
      %c0_17 = arith.constant 0 : index
      %24 = vector.load %arg6[%c0_16, %c0_17] : memref<128x128xf32, #tpu.memory_space<vmem>>, vector<128x128xf32>
      tpu.vector_store %arg6[%c0_16, %c0_17], %23 {strides = array<i32>} : memref<128x128xf32, #tpu.memory_space<vmem>>, vector<128x128xf32>,
    } else {
    }
    return
  }
  func.func @transform_0(%arg0: i32, %arg1: i32, %arg2: i32) -> (i32, i32) {
    %c0_i32 = arith.constant 0 : i32
    return %arg0, %arg2 : i32, i32
  }
  func.func @transform_1(%arg0: i32, %arg1: i32, %arg2: i32) -> (i32, i32) {
    %c0_i32 = arith.constant 0 : i32
    return %arg2, %arg1 : i32, i32
  }
  func.func @transform_2(%arg0: i32, %arg1: i32, %arg2: i32) -> (i32, i32) {
    %c0_i32 = arith.constant 0 : i32
    %c0_i32_0 = arith.constant 0 : i32
    return %c0_i32, %arg1 : i32, i32
  }
  func.func @transform_3(%arg0: i32, %arg1: i32, %arg2: i32) -> (i32, i32) {
    %c0_i32 = arith.constant 0 : i32
    return %arg0, %arg1 : i32, i32
  }
}

module attributes {stable_mosaic.version = 11 : i64} {
  func.func @kernel(%arg0: i32, %arg1: i32, %arg2: i32, %arg3: memref<256x128xbf16, #tpu.memory_space<vmem>>, %arg4: memref<128x128xbf16, #tpu.memory_space<vmem>>, %arg5: memref<8x128xf32, #tpu.memory_space<vmem>>, %arg6: memref<256x128xf32, #tpu.memory_space<vmem>>, %arg7: memref<256x128xf32, #tpu.memory_space<vmem>>) attributes {dimension_semantics = [#tpu.dimension_semantics<parallel>, #tpu.dimension_semantics<parallel>, #tpu.dimension_semantics<arbitrary>], iteration_bounds = array<i64: 3, 1, 9>, scalar_prefetch = 0 : i64, scratch_operands = 1 : i64, tpu.core_type = #tpu.core_type<tc>, window_params = [{transform_indices = @transform_0, window_bounds = array<i64: 256, 128>}, {transform_indices = @transform_1, window_bounds = array<i64: 128, 128>}, {transform_indices = @transform_2, window_bounds = array<i64: 8, 128>}, {transform_indices = @transform_3, window_bounds = array<i64: 256, 128>}]} {
    %c0_i32 = arith.constant 0 : i32
    %0 = arith.cmpi eq, %arg2, %c0_i32 : i32
    %1 = arith.extui %0 : i1 to i32
    %c0_i32_0 = arith.constant 0 : i32
    %2 = arith.cmpi ne, %1, %c0_i32_0 : i32
    scf.if %2 {
      %cst_9 = arith.constant 0.000000e+00 : f32
      %12 = vector.broadcast %cst_9 : f32 to vector<256x128xf32>
      %c0_10 = arith.constant 0 : index
      %c0_11 = arith.constant 0 : index
      %13 = vector.load %arg7[%c0_10, %c0_11] : memref<256x128xf32, #tpu.memory_space<vmem>>, vector<256x128xf32>
      tpu.vector_store %arg7[%c0_10, %c0_11], %12 {strides = array<i32>} : memref<256x128xf32, #tpu.memory_space<vmem>>, vector<256x128xf32>,
    } else {
    }
    %c0 = arith.constant 0 : index
    %c0_1 = arith.constant 0 : index
    %3 = vector.load %arg7[%c0, %c0_1] : memref<256x128xf32, #tpu.memory_space<vmem>>, vector<256x128xf32>
    %c0_2 = arith.constant 0 : index
    %c0_3 = arith.constant 0 : index
    %4 = vector.load %arg3[%c0_2, %c0_3] : memref<256x128xbf16, #tpu.memory_space<vmem>>, vector<256x128xbf16>
    %c0_4 = arith.constant 0 : index
    %c0_5 = arith.constant 0 : index
    %5 = vector.load %arg4[%c0_4, %c0_5] : memref<128x128xbf16, #tpu.memory_space<vmem>>, vector<128x128xbf16>
    %cst = arith.constant dense<0.000000e+00> : vector<256x128xf32>
    %6 = tpu.matmul %4, %5, %cst {dimension_numbers = #tpu.dot_dimension_numbers<[1], [0], [0], [1], [0, 0, 1, 1], [], []>} : vector<256x128xbf16>, vector<128x128xbf16>, vector<256x128xf32> -> vector<256x128xf32>
    %7 = arith.addf %3, %6 : vector<256x128xf32>
    %c0_6 = arith.constant 0 : index
    %c0_7 = arith.constant 0 : index
    %8 = vector.load %arg7[%c0_6, %c0_7] : memref<256x128xf32, #tpu.memory_space<vmem>>, vector<256x128xf32>
    tpu.vector_store %arg7[%c0_6, %c0_7], %7 {strides = array<i32>} : memref<256x128xf32, #tpu.memory_space<vmem>>, vector<256x128xf32>,
    %c8_i32 = arith.constant 8 : i32
    %9 = arith.cmpi eq, %arg2, %c8_i32 : i32
    %10 = arith.extui %9 : i1 to i32
    %c0_i32_8 = arith.constant 0 : i32
    %11 = arith.cmpi ne, %10, %c0_i32_8 : i32
    scf.if %11 {
      %c0_9 = arith.constant 0 : index
      %c0_10 = arith.constant 0 : index
      %12 = vector.load %arg7[%c0_9, %c0_10] : memref<256x128xf32, #tpu.memory_space<vmem>>, vector<256x128xf32>
      %c0_11 = arith.constant 0 : index
      %c0_12 = arith.constant 0 : index
      %13 = vector.load %arg5[%c0_11, %c0_12] : memref<8x128xf32, #tpu.memory_space<vmem>>, vector<1x128xf32>
      %14 = vector.broadcast %13 : vector<1x128xf32> to vector<256x128xf32>
      %15 = arith.addf %12, %14 : vector<256x128xf32>
      %cst_13 = arith.constant 0.000000e+00 : f32
      %16 = vector.broadcast %cst_13 : f32 to vector<256x128xf32>
      %17 = arith.maximumf %15, %16 : vector<256x128xf32>
      %c1 = arith.constant 1 : index
      %c0_14 = arith.constant 0 : index
      %18 = vector.load %arg5[%c1, %c0_14] : memref<8x128xf32, #tpu.memory_space<vmem>>, vector<1x128xf32>
      %19 = vector.broadcast %18 : vector<1x128xf32> to vector<256x128xf32>
      %20 = arith.mulf %17, %19 : vector<256x128xf32>
      %c2 = arith.constant 2 : index
      %c0_15 = arith.constant 0 : index
      %21 = vector.load %arg5[%c2, %c0_15] : memref<8x128xf32, #tpu.memory_space<vmem>>, vector<1x128xf32>
      %22 = vector.broadcast %21 : vector<1x128xf32> to vector<256x128xf32>
      %23 = arith.addf %20, %22 : vector<256x128xf32>
      %c0_16 = arith.constant 0 : index
      %c0_17 = arith.constant 0 : index
      %24 = vector.load %arg6[%c0_16, %c0_17] : memref<256x128xf32, #tpu.memory_space<vmem>>, vector<256x128xf32>
      tpu.vector_store %arg6[%c0_16, %c0_17], %23 {strides = array<i32>} : memref<256x128xf32, #tpu.memory_space<vmem>>, vector<256x128xf32>,
    } else {
    }
    return
  }
  func.func @transform_0(%arg0: i32, %arg1: i32, %arg2: i32) -> (i32, i32) {
    %c0_i32 = arith.constant 0 : i32
    return %arg0, %arg2 : i32, i32
  }
  func.func @transform_1(%arg0: i32, %arg1: i32, %arg2: i32) -> (i32, i32) {
    %c0_i32 = arith.constant 0 : i32
    return %arg2, %arg1 : i32, i32
  }
  func.func @transform_2(%arg0: i32, %arg1: i32, %arg2: i32) -> (i32, i32) {
    %c0_i32 = arith.constant 0 : i32
    %c0_i32_0 = arith.constant 0 : i32
    return %c0_i32, %arg1 : i32, i32
  }
  func.func @transform_3(%arg0: i32, %arg1: i32, %arg2: i32) -> (i32, i32) {
    %c0_i32 = arith.constant 0 : i32
    return %arg0, %arg1 : i32, i32
  }
}

</mosaic_0001>

<bundles_post_ra>
// kernel: multitasking_forward.4
= control target key start
LH: loop header
LB: loop body
LE: loop exit
PB: predicated region body
PF: predicated region fallthrough
CT: control target
= control target key end

     0   :  { %s4778_s0 = inlined_call_operand.vmem [shape: bf16[128,18432], index: 0, kind: input, shape index: {}]   ;;  %s4779_s1 = inlined_call_operand.vmem [shape: bf16[18432,512], index: 1, kind: input, shape index: {}]   ;;  %s4780_s2 = inlined_call_operand.vmem [shape: f32[8,512], index: 2, kind: input, shape index: {}]   ;;  %s4781_s3 = inlined_call_operand.vmem [shape: f32[128,512], index: 3, kind: output, shape index: {}]  }
   0x1   :  { %4784 = sst [smem:[#allocation8_spill]] %s4778_s0 }
   0x2   :  { %4785 = sst [smem:[#allocation9_spill]] %s4779_s1 }
   0x3   :  { %s3813_s12 = smov 0   ;;  %s3815_s13 = smov 0  }
   0x4   :  { %s3817_s14 = smov 0   ;;  %s3819_s15 = smov 0  }
   0x5   :  { %s3821_s16 = smov 0   ;;  %s3823_s17 = smov 0  }
   0x6   :  { %s3825_s18 = smov 0   ;;  %s3827_s19 = smov 0  }
   0x7   :  { %s3829_s20 = smov 0   ;;  %s3831_s21 = smov 0  }
   0x8   :  { %s3833_s22 = smov 0  }
   0x9 LB: > { %s3105_s23 = sadd.s32 4294967295, %s3790_s22   ;;  %s25_s24 = sadd.s32 1, %s3782_s20  ;;  %s3790_s22 = sphi %s3833_s22, %s13_s22   ;;  %s3786_s21 = sphi %s3831_s21, %s4804_s21   ;;  %s3782_s20 = sphi %s3829_s20, %s4803_s20   ;;  %s3778_s19 = sphi %s3827_s19, %s4802_s19   ;;  %s3774_s18 = sphi %s3825_s18, %s4801_s18   ;;  %s3770_s17 = sphi %s3823_s17, %s4800_s17   ;;  %s3766_s16 = sphi %s3821_s16, %s4799_s16   ;;  %s3762_s15 = sphi %s3819_s15, %s4798_s15   ;;  %s3758_s14 = sphi %s3817_s14, %s4797_s14   ;;  %s3754_s13 = sphi %s3815_s13, %s4796_s13   ;;  %s3750_s12 = sphi %s3813_s12, %s4795_s12  }
   0xa   : > { %p26_p0 = scmp.ge.s32.totalorder %s25_s24, 18  ;;  %s28_s25 = sadd.s32 1, %s3786_s21 }
   0xb   : > { %s41_s26 = sadd.s32 1, %s3770_s17  ;;  %p48_p1 = scmp.ne.s32.totalorder %s3770_s17, %s3766_s16 }
   0xc   : > { %s4806_s24 = smov (%p26_p0, %s25_s24), 0  ;;  %s4808_s25 = smov (!%p26_p0, %s28_s25), %s3786_s21 }
   0xd   : > { %4786 = sst [smem:[#allocation6_spill]] %s4806_s24  ;;  %s37_s27 = ssub.s32 %s3782_s20, %s4806_s24 }
   0xe   : > { %p49_p2 = scmp.eq.s32.totalorder %s3790_s22, 0  ;;  %p30_p3 = scmp.ge.s32.totalorder %s4808_s25, 2 }
   0xf   : > { %p39_p4 = scmp.eq.s32.totalorder %s37_s27, 0  ;;  %s69_s29 = sadd.s32 1, %s3762_s15 }
  0x10   : > { %p3880_p5 = por %p49_p2, %p48_p1  ;;  %s4810_s25 = smov (%p30_p3, %s4808_s25), 0 }
  0x11   : > { %4788 = sst [smem:[#allocation7_spill]] %s4810_s25  ;;  %s65_s4 = ssub.s32 %s3786_s21, %s4810_s25 }
  0x12   : > { %s3888_s30 = scalar_select %p39_p4, %s3770_s17, %s41_s26  }
  0x13   : > { %p76_p6 = scmp.ne.s32.totalorder %s3762_s15, %s3758_s14  ;;  %s66_s5 = sor.u32 %s65_s4, %s37_s27 }
  0x14   : > { %p121_p7 = scmp.eq.s32.totalorder %s65_s4, 0  ;;  %p67_p8 = scmp.eq.s32.totalorder %s66_s5, 0 }
  0x15   : > { %p3894_p9 = por %p76_p6, %p49_p2  ;;  %s123_s7 = sadd.s32 1, %s3754_s13 }
  0x16   : > { %p133_p10 = scmp.ne.s32.totalorder %s3754_s13, %s3750_s12  ;;  %p134_p11 = scmp.eq.s32.totalorder %s3105_s23, 35 }
  0x17   : > { %s3902_s8 = scalar_select %p67_p8, %s3762_s15, %s69_s29  }
  0x18   : > { %s3905_s9 = scalar_select %p121_p7, %s3754_s13, %s123_s7  }
  0x19   : > { %p3907_p12 = por %p134_p11, %p133_p10  ;;  %p3108_p13 = scmp.ge.s32.totalorder %s3790_s22, 36 }
  0x1b   : > { %156 = sbr.rel (%p3108_p13) target bundleno = 150 (0x96), region = 16 }
  0x22   : > { %159 = sbr.rel (!%p3880_p5) target bundleno = 76 (0x4c), region = 20  ;;  %s161_s11 = sand.u32 (%p3880_p5), 1, %s3770_s17  }
  0x23   : > { %s3324_s26 = sshll.u32 (%p3880_p5), %s3782_s20, 5  ;;  %s3109_s27 = sshll.u32 (%p3880_p5), %s161_s11, 9 }
  0x24   : > { %s4791_s0 = sld [smem:[#allocation8_spill]] (%p3880_p5)  ;;  %s3924_s23 = scalar_lea.vmem (%p3880_p5), [#allocation3], %s3109_s27 }
  0x2a   : > { %s3919_s5 = scalar_lea.vmem %s4791_s0, %s3324_s26 }
  0x2b   : > { %v182_v0 = vld [vmem:[%s3919_s5] sm:$0xff]  ;;  %v184_v1 = vld [vmem:[%s3919_s5 + $0x8] sm:$0xff]  ;;  %v186_v2 = vld [vmem:[%s3919_s5 + $0x10] sm:$0xff] }
  0x2c   : > { %183 = vst [vmem:[%s3924_s23] sm:$0xff] %v182_v0  ;;  %185 = vst [vmem:[%s3924_s23 + $0x8] sm:$0xff] %v184_v1  ;;  %v188_v3 = vld [vmem:[%s3919_s5 + $0x18] sm:$0xff]  ;;  %v190_v4 = vld [vmem:[%s3919_s5 + $0x240] sm:$0xff] }
  0x2d   : > { %187 = vst [vmem:[%s3924_s23 + $0x10] sm:$0xff] %v186_v2  ;;  %v192_v5 = vld [vmem:[%s3919_s5 + $0x248] sm:$0xff]  ;;  %189 = vst [vmem:[%s3924_s23 + $0x18] sm:$0xff] %v188_v3  ;;  %v194_v6 = vld [vmem:[%s3919_s5 + $0x250] sm:$0xff] }
  0x2e   : > { %191 = vst [vmem:[%s3924_s23 + $0x20] sm:$0xff] %v190_v4  ;;  %193 = vst [vmem:[%s3924_s23 + $0x28] sm:$0xff] %v192_v5  ;;  %v196_v7 = vld [vmem:[%s3919_s5 + $0x258] sm:$0xff]  ;;  %v198_v8 = vld [vmem:[%s3919_s5 + $0x480] sm:$0xff] }
  0x2f   : > { %195 = vst [vmem:[%s3924_s23 + $0x30] sm:$0xff] %v194_v6  ;;  %197 = vst [vmem:[%s3924_s23 + $0x38] sm:$0xff] %v196_v7  ;;  %v200_v9 = vld [vmem:[%s3919_s5 + $0x488] sm:$0xff]  ;;  %v202_v10 = vld [vmem:[%s3919_s5 + $0x490] sm:$0xff] }
  0x30   : > { %199 = vst [vmem:[%s3924_s23 + $0x40] sm:$0xff] %v198_v8  ;;  %v204_v11 = vld [vmem:[%s3919_s5 + $0x498] sm:$0xff]  ;;  %201 = vst [vmem:[%s3924_s23 + $0x48] sm:$0xff] %v200_v9  ;;  %v206_v12 = vld [vmem:[%s3919_s5 + $0x6c0] sm:$0xff] }
  0x31   : > { %203 = vst [vmem:[%s3924_s23 + $0x50] sm:$0xff] %v202_v10  ;;  %205 = vst [vmem:[%s3924_s23 + $0x58] sm:$0xff] %v204_v11  ;;  %v208_v13 = vld [vmem:[%s3919_s5 + $0x6c8] sm:$0xff]  ;;  %v210_v14 = vld [vmem:[%s3919_s5 + $0x6d0] sm:$0xff] }
  0x32   : > { %207 = vst [vmem:[%s3924_s23 + $0x60] sm:$0xff] %v206_v12  ;;  %209 = vst [vmem:[%s3924_s23 + $0x68] sm:$0xff] %v208_v13  ;;  %v212_v15 = vld [vmem:[%s3919_s5 + $0x6d8] sm:$0xff]  ;;  %v214_v16 = vld [vmem:[%s3919_s5 + $0x900] sm:$0xff] }
  0x33   : > { %211 = vst [vmem:[%s3924_s23 + $0x70] sm:$0xff] %v210_v14  ;;  %v216_v17 = vld [vmem:[%s3919_s5 + $0x908] sm:$0xff]  ;;  %213 = vst [vmem:[%s3924_s23 + $0x78] sm:$0xff] %v212_v15  ;;  %v218_v18 = vld [vmem:[%s3919_s5 + $0x910] sm:$0xff] }
  0x34   : > { %215 = vst [vmem:[%s3924_s23 + $0x80] sm:$0xff] %v214_v16  ;;  %217 = vst [vmem:[%s3924_s23 + $0x88] sm:$0xff] %v216_v17  ;;  %v220_v19 = vld [vmem:[%s3919_s5 + $0x918] sm:$0xff]  ;;  %v222_v20 = vld [vmem:[%s3919_s5 + $0xb40] sm:$0xff] }
  0x35   : > { %219 = vst [vmem:[%s3924_s23 + $0x90] sm:$0xff] %v218_v18  ;;  %221 = vst [vmem:[%s3924_s23 + $0x98] sm:$0xff] %v220_v19  ;;  %v224_v21 = vld [vmem:[%s3919_s5 + $0xb48] sm:$0xff]  ;;  %v226_v22 = vld [vmem:[%s3919_s5 + $0xb50] sm:$0xff] }
  0x36   : > { %223 = vst [vmem:[%s3924_s23 + $0xa0] sm:$0xff] %v222_v20  ;;  %v228_v23 = vld [vmem:[%s3919_s5 + $0xb58] sm:$0xff]  ;;  %225 = vst [vmem:[%s3924_s23 + $0xa8] sm:$0xff] %v224_v21  ;;  %v230_v24 = vld [vmem:[%s3919_s5 + $0xd80] sm:$0xff] }
  0x37   : > { %227 = vst [vmem:[%s3924_s23 + $0xb0] sm:$0xff] %v226_v22  ;;  %229 = vst [vmem:[%s3924_s23 + $0xb8] sm:$0xff] %v228_v23  ;;  %v232_v25 = vld [vmem:[%s3919_s5 + $0xd88] sm:$0xff]  ;;  %v234_v26 = vld [vmem:[%s3919_s5 + $0xd90] sm:$0xff] }
  0x38   : > { %231 = vst [vmem:[%s3924_s23 + $0xc0] sm:$0xff] %v230_v24  ;;  %233 = vst [vmem:[%s3924_s23 + $0xc8] sm:$0xff] %v232_v25  ;;  %v236_v27 = vld [vmem:[%s3919_s5 + $0xd98] sm:$0xff]  ;;  %v238_v28 = vld [vmem:[%s3919_s5 + $0xfc0] sm:$0xff] }
  0x39   : > { %235 = vst [vmem:[%s3924_s23 + $0xd0] sm:$0xff] %v234_v26  ;;  %v240_v29 = vld [vmem:[%s3919_s5 + $0xfc8] sm:$0xff]  ;;  %237 = vst [vmem:[%s3924_s23 + $0xd8] sm:$0xff] %v236_v27  ;;  %v242_v30 = vld [vmem:[%s3919_s5 + $0xfd0] sm:$0xff] }
  0x3a   : > { %239 = vst [vmem:[%s3924_s23 + $0xe0] sm:$0xff] %v238_v28  ;;  %241 = vst [vmem:[%s3924_s23 + $0xe8] sm:$0xff] %v240_v29  ;;  %v244_v31 = vld [vmem:[%s3919_s5 + $0xfd8] sm:$0xff]  ;;  %v246_v32 = vld [vmem:[%s3919_s5 + $0x1200] sm:$0xff] }
  0x3b   : > { %243 = vst [vmem:[%s3924_s23 + $0xf0] sm:$0xff] %v242_v30  ;;  %245 = vst [vmem:[%s3924_s23 + $0xf8] sm:$0xff] %v244_v31  ;;  %v248_v33 = vld [vmem:[%s3919_s5 + $0x1208] sm:$0xff]  ;;  %v250_v34 = vld [vmem:[%s3919_s5 + $0x1210] sm:$0xff] }
  0x3c   : > { %247 = vst [vmem:[%s3924_s23 + $0x100] sm:$0xff] %v246_v32  ;;  %v252_v35 = vld [vmem:[%s3919_s5 + $0x1218] sm:$0xff]  ;;  %249 = vst [vmem:[%s3924_s23 + $0x108] sm:$0xff] %v248_v33  ;;  %v254_v36 = vld [vmem:[%s3919_s5 + $0x1440] sm:$0xff] }
  0x3d   : > { %251 = vst [vmem:[%s3924_s23 + $0x110] sm:$0xff] %v250_v34  ;;  %253 = vst [vmem:[%s3924_s23 + $0x118] sm:$0xff] %v252_v35  ;;  %v256_v37 = vld [vmem:[%s3919_s5 + $0x1448] sm:$0xff]  ;;  %v258_v38 = vld [vmem:[%s3919_s5 + $0x1450] sm:$0xff] }
  0x3e   : > { %255 = vst [vmem:[%s3924_s23 + $0x120] sm:$0xff] %v254_v36  ;;  %257 = vst [vmem:[%s3924_s23 + $0x128] sm:$0xff] %v256_v37  ;;  %v260_v39 = vld [vmem:[%s3919_s5 + $0x1458] sm:$0xff]  ;;  %v262_v40 = vld [vmem:[%s3919_s5 + $0x1680] sm:$0xff] }
  0x3f   : > { %259 = vst [vmem:[%s3924_s23 + $0x130] sm:$0xff] %v258_v38  ;;  %v264_v41 = vld [vmem:[%s3919_s5 + $0x1688] sm:$0xff]  ;;  %261 = vst [vmem:[%s3924_s23 + $0x138] sm:$0xff] %v260_v39  ;;  %v266_v42 = vld [vmem:[%s3919_s5 + $0x1690] sm:$0xff] }
  0x40   : > { %263 = vst [vmem:[%s3924_s23 + $0x140] sm:$0xff] %v262_v40  ;;  %265 = vst [vmem:[%s3924_s23 + $0x148] sm:$0xff] %v264_v41  ;;  %v268_v43 = vld [vmem:[%s3919_s5 + $0x1698] sm:$0xff]  ;;  %v270_v44 = vld [vmem:[%s3919_s5 + $0x18c0] sm:$0xff] }
  0x41   : > { %267 = vst [vmem:[%s3924_s23 + $0x150] sm:$0xff] %v266_v42  ;;  %269 = vst [vmem:[%s3924_s23 + $0x158] sm:$0xff] %v268_v43  ;;  %v272_v45 = vld [vmem:[%s3919_s5 + $0x18c8] sm:$0xff]  ;;  %v274_v46 = vld [vmem:[%s3919_s5 + $0x18d0] sm:$0xff] }
  0x42   : > { %271 = vst [vmem:[%s3924_s23 + $0x160] sm:$0xff] %v270_v44  ;;  %v276_v47 = vld [vmem:[%s3919_s5 + $0x18d8] sm:$0xff]  ;;  %273 = vst [vmem:[%s3924_s23 + $0x168] sm:$0xff] %v272_v45  ;;  %v278_v48 = vld [vmem:[%s3919_s5 + $0x1b00] sm:$0xff] }
  0x43   : > { %275 = vst [vmem:[%s3924_s23 + $0x170] sm:$0xff] %v274_v46  ;;  %277 = vst [vmem:[%s3924_s23 + $0x178] sm:$0xff] %v276_v47  ;;  %v280_v49 = vld [vmem:[%s3919_s5 + $0x1b08] sm:$0xff]  ;;  %v282_v50 = vld [vmem:[%s3919_s5 + $0x1b10] sm:$0xff] }
  0x44   : > { %279 = vst [vmem:[%s3924_s23 + $0x180] sm:$0xff] %v278_v48  ;;  %281 = vst [vmem:[%s3924_s23 + $0x188] sm:$0xff] %v280_v49  ;;  %v284_v51 = vld [vmem:[%s3919_s5 + $0x1b18] sm:$0xff]  ;;  %v286_v52 = vld [vmem:[%s3919_s5 + $0x1d40] sm:$0xff] }
  0x45   : > { %283 = vst [vmem:[%s3924_s23 + $0x190] sm:$0xff] %v282_v50  ;;  %v288_v53 = vld [vmem:[%s3919_s5 + $0x1d48] sm:$0xff]  ;;  %285 = vst [vmem:[%s3924_s23 + $0x198] sm:$0xff] %v284_v51  ;;  %v290_v54 = vld [vmem:[%s3919_s5 + $0x1d50] sm:$0xff] }
  0x46   : > { %287 = vst [vmem:[%s3924_s23 + $0x1a0] sm:$0xff] %v286_v52  ;;  %289 = vst [vmem:[%s3924_s23 + $0x1a8] sm:$0xff] %v288_v53  ;;  %v292_v55 = vld [vmem:[%s3919_s5 + $0x1d58] sm:$0xff]  ;;  %v294_v56 = vld [vmem:[%s3919_s5 + $0x1f80] sm:$0xff] }
  0x47   : > { %291 = vst [vmem:[%s3924_s23 + $0x1b0] sm:$0xff] %v290_v54  ;;  %293 = vst [vmem:[%s3924_s23 + $0x1b8] sm:$0xff] %v292_v55  ;;  %v296_v57 = vld [vmem:[%s3919_s5 + $0x1f88] sm:$0xff]  ;;  %v298_v58 = vld [vmem:[%s3919_s5 + $0x1f90] sm:$0xff] }
  0x48   : > { %295 = vst [vmem:[%s3924_s23 + $0x1c0] sm:$0xff] %v294_v56  ;;  %v300_v59 = vld [vmem:[%s3919_s5 + $0x1f98] sm:$0xff]  ;;  %297 = vst [vmem:[%s3924_s23 + $0x1c8] sm:$0xff] %v296_v57  ;;  %v302_v60 = vld [vmem:[%s3919_s5 + $0x21c0] sm:$0xff] }
  0x49   : > { %299 = vst [vmem:[%s3924_s23 + $0x1d0] sm:$0xff] %v298_v58  ;;  %301 = vst [vmem:[%s3924_s23 + $0x1d8] sm:$0xff] %v300_v59  ;;  %v304_v61 = vld [vmem:[%s3919_s5 + $0x21c8] sm:$0xff]  ;;  %v306_v62 = vld [vmem:[%s3919_s5 + $0x21d0] sm:$0xff] }
  0x4a   : > { %303 = vst [vmem:[%s3924_s23 + $0x1e0] sm:$0xff] %v302_v60  ;;  %305 = vst [vmem:[%s3924_s23 + $0x1e8] sm:$0xff] %v304_v61  ;;  %v308_v63 = vld [vmem:[%s3919_s5 + $0x21d8] sm:$0xff] }
  0x4b   : > { %307 = vst [vmem:[%s3924_s23 + $0x1f0] sm:$0xff] %v306_v62  ;;  %309 = vst [vmem:[%s3924_s23 + $0x1f8] sm:$0xff] %v308_v63 }
  0x4c PF: > { %315 = sbr.rel (!%p3894_p9) target bundleno = 150 (0x96), region = 43  ;;  %s317_s28 = sand.u32 (%p3894_p9), 1, %s3762_s15  }
  0x4d   : > { %s3114_s7 = sshll.u32 (%p3894_p9), %s3786_s21, 1  ;;  %s3112_s11 = sshll.u32 (%p3894_p9), %s317_s28, 10 }
  0x4e   : > { %s3325_s26 = sshll.u32 (%p3894_p9), %s3782_s20, 9  ;;  %s4792_s1 = sld [smem:[#allocation9_spill]] (%p3894_p9) }
  0x4f   : > { %s323_s27 = sadd.s32 (%p3894_p9), %s3325_s26, %s3114_s7  ;;  %s4064_s6 = scalar_lea.vmem (%p3894_p9), [#allocation4], %s3112_s11 }
  0x50   : > { %s3116_s29 = sshll.u32 (%p3894_p9), %s323_s27, 2 }
  0x54   : > { %s4059_s25 = scalar_lea.vmem %s4792_s1, %s3116_s29 }
  0x55   : > { %v607_v0 = vld [vmem:[%s4059_s25] sm:$0xff]  ;;  %v609_v1 = vld [vmem:[%s4059_s25 + $0x10] sm:$0xff] }
  0x56   : > { %v611_v2 = vld [vmem:[%s4059_s25 + $0x20] sm:$0xff]  ;;  %608 = vst [vmem:[%s4064_s6] sm:$0xff] %v607_v0  ;;  %610 = vst [vmem:[%s4064_s6 + $0x8] sm:$0xff] %v609_v1  ;;  %v613_v3 = vld [vmem:[%s4059_s25 + $0x30] sm:$0xff] }
  0x57   : > { %612 = vst [vmem:[%s4064_s6 + $0x10] sm:$0xff] %v611_v2  ;;  %v615_v4 = vld [vmem:[%s4059_s25 + $0x40] sm:$0xff]  ;;  %v617_v5 = vld [vmem:[%s4059_s25 + $0x50] sm:$0xff]  ;;  %614 = vst [vmem:[%s4064_s6 + $0x18] sm:$0xff] %v613_v3 }
  0x58   : > { %616 = vst [vmem:[%s4064_s6 + $0x20] sm:$0xff] %v615_v4  ;;  %618 = vst [vmem:[%s4064_s6 + $0x28] sm:$0xff] %v617_v5  ;;  %v619_v6 = vld [vmem:[%s4059_s25 + $0x60] sm:$0xff]  ;;  %v621_v7 = vld [vmem:[%s4059_s25 + $0x70] sm:$0xff] }
  0x59   : > { %v623_v8 = vld [vmem:[%s4059_s25 + $0x80] sm:$0xff]  ;;  %620 = vst [vmem:[%s4064_s6 + $0x30] sm:$0xff] %v619_v6  ;;  %622 = vst [vmem:[%s4064_s6 + $0x38] sm:$0xff] %v621_v7  ;;  %v625_v9 = vld [vmem:[%s4059_s25 + $0x90] sm:$0xff] }
  0x5a   : > { %624 = vst [vmem:[%s4064_s6 + $0x40] sm:$0xff] %v623_v8  ;;  %v627_v10 = vld [vmem:[%s4059_s25 + $0xa0] sm:$0xff]  ;;  %v629_v11 = vld [vmem:[%s4059_s25 + $0xb0] sm:$0xff]  ;;  %626 = vst [vmem:[%s4064_s6 + $0x48] sm:$0xff] %v625_v9 }
  0x5b   : > { %628 = vst [vmem:[%s4064_s6 + $0x50] sm:$0xff] %v627_v10  ;;  %630 = vst [vmem:[%s4064_s6 + $0x58] sm:$0xff] %v629_v11  ;;  %v631_v12 = vld [vmem:[%s4059_s25 + $0xc0] sm:$0xff]  ;;  %v633_v13 = vld [vmem:[%s4059_s25 + $0xd0] sm:$0xff] }
  0x5c   : > { %v635_v14 = vld [vmem:[%s4059_s25 + $0xe0] sm:$0xff]  ;;  %632 = vst [vmem:[%s4064_s6 + $0x60] sm:$0xff] %v631_v12  ;;  %634 = vst [vmem:[%s4064_s6 + $0x68] sm:$0xff] %v633_v13  ;;  %v637_v15 = vld [vmem:[%s4059_s25 + $0xf0] sm:$0xff] }
  0x5d   : > { %636 = vst [vmem:[%s4064_s6 + $0x70] sm:$0xff] %v635_v14  ;;  %v639_v16 = vld [vmem:[%s4059_s25 + $0x100] sm:$0xff]  ;;  %v641_v17 = vld [vmem:[%s4059_s25 + $0x110] sm:$0xff]  ;;  %638 = vst [vmem:[%s4064_s6 + $0x78] sm:$0xff] %v637_v15 }
  0x5e   : > { %640 = vst [vmem:[%s4064_s6 + $0x80] sm:$0xff] %v639_v16  ;;  %642 = vst [vmem:[%s4064_s6 + $0x88] sm:$0xff] %v641_v17  ;;  %v643_v18 = vld [vmem:[%s4059_s25 + $0x120] sm:$0xff]  ;;  %v645_v19 = vld [vmem:[%s4059_s25 + $0x130] sm:$0xff] }
  0x5f   : > { %v647_v20 = vld [vmem:[%s4059_s25 + $0x140] sm:$0xff]  ;;  %644 = vst [vmem:[%s4064_s6 + $0x90] sm:$0xff] %v643_v18  ;;  %646 = vst [vmem:[%s4064_s6 + $0x98] sm:$0xff] %v645_v19  ;;  %v649_v21 = vld [vmem:[%s4059_s25 + $0x150] sm:$0xff] }
  0x60   : > { %648 = vst [vmem:[%s4064_s6 + $0xa0] sm:$0xff] %v647_v20  ;;  %v651_v22 = vld [vmem:[%s4059_s25 + $0x160] sm:$0xff]  ;;  %v653_v23 = vld [vmem:[%s4059_s25 + $0x170] sm:$0xff]  ;;  %650 = vst [vmem:[%s4064_s6 + $0xa8] sm:$0xff] %v649_v21 }
  0x61   : > { %652 = vst [vmem:[%s4064_s6 + $0xb0] sm:$0xff] %v651_v22  ;;  %654 = vst [vmem:[%s4064_s6 + $0xb8] sm:$0xff] %v653_v23  ;;  %v655_v24 = vld [vmem:[%s4059_s25 + $0x180] sm:$0xff]  ;;  %v657_v25 = vld [vmem:[%s4059_s25 + $0x190] sm:$0xff] }
  0x62   : > { %v659_v26 = vld [vmem:[%s4059_s25 + $0x1a0] sm:$0xff]  ;;  %656 = vst [vmem:[%s4064_s6 + $0xc0] sm:$0xff] %v655_v24  ;;  %658 = vst [vmem:[%s4064_s6 + $0xc8] sm:$0xff] %v657_v25  ;;  %v661_v27 = vld [vmem:[%s4059_s25 + $0x1b0] sm:$0xff] }
  0x63   : > { %660 = vst [vmem:[%s4064_s6 + $0xd0] sm:$0xff] %v659_v26  ;;  %v663_v28 = vld [vmem:[%s4059_s25 + $0x1c0] sm:$0xff]  ;;  %v665_v29 = vld [vmem:[%s4059_s25 + $0x1d0] sm:$0xff]  ;;  %662 = vst [vmem:[%s4064_s6 + $0xd8] sm:$0xff] %v661_v27 }
  0x64   : > { %664 = vst [vmem:[%s4064_s6 + $0xe0] sm:$0xff] %v663_v28  ;;  %666 = vst [vmem:[%s4064_s6 + $0xe8] sm:$0xff] %v665_v29  ;;  %v667_v30 = vld [vmem:[%s4059_s25 + $0x1e0] sm:$0xff]  ;;  %v669_v31 = vld [vmem:[%s4059_s25 + $0x1f0] sm:$0xff] }
  0x65   : > { %v671_v32 = vld [vmem:[%s4059_s25 + $0x200] sm:$0xff]  ;;  %668 = vst [vmem:[%s4064_s6 + $0xf0] sm:$0xff] %v667_v30  ;;  %670 = vst [vmem:[%s4064_s6 + $0xf8] sm:$0xff] %v669_v31  ;;  %v673_v33 = vld [vmem:[%s4059_s25 + $0x210] sm:$0xff] }
  0x66   : > { %672 = vst [vmem:[%s4064_s6 + $0x100] sm:$0xff] %v671_v32  ;;  %v675_v34 = vld [vmem:[%s4059_s25 + $0x220] sm:$0xff]  ;;  %v677_v35 = vld [vmem:[%s4059_s25 + $0x230] sm:$0xff]  ;;  %674 = vst [vmem:[%s4064_s6 + $0x108] sm:$0xff] %v673_v33 }
  0x67   : > { %676 = vst [vmem:[%s4064_s6 + $0x110] sm:$0xff] %v675_v34  ;;  %678 = vst [vmem:[%s4064_s6 + $0x118] sm:$0xff] %v677_v35  ;;  %v679_v36 = vld [vmem:[%s4059_s25 + $0x240] sm:$0xff]  ;;  %v681_v37 = vld [vmem:[%s4059_s25 + $0x250] sm:$0xff] }
  0x68   : > { %v683_v38 = vld [vmem:[%s4059_s25 + $0x260] sm:$0xff]  ;;  %680 = vst [vmem:[%s4064_s6 + $0x120] sm:$0xff] %v679_v36  ;;  %682 = vst [vmem:[%s4064_s6 + $0x128] sm:$0xff] %v681_v37  ;;  %v685_v39 = vld [vmem:[%s4059_s25 + $0x270] sm:$0xff] }
  0x69   : > { %684 = vst [vmem:[%s4064_s6 + $0x130] sm:$0xff] %v683_v38  ;;  %v687_v40 = vld [vmem:[%s4059_s25 + $0x280] sm:$0xff]  ;;  %v689_v41 = vld [vmem:[%s4059_s25 + $0x290] sm:$0xff]  ;;  %686 = vst [vmem:[%s4064_s6 + $0x138] sm:$0xff] %v685_v39 }
  0x6a   : > { %688 = vst [vmem:[%s4064_s6 + $0x140] sm:$0xff] %v687_v40  ;;  %690 = vst [vmem:[%s4064_s6 + $0x148] sm:$0xff] %v689_v41  ;;  %v691_v42 = vld [vmem:[%s4059_s25 + $0x2a0] sm:$0xff]  ;;  %v693_v43 = vld [vmem:[%s4059_s25 + $0x2b0] sm:$0xff] }
  0x6b   : > { %v695_v44 = vld [vmem:[%s4059_s25 + $0x2c0] sm:$0xff]  ;;  %692 = vst [vmem:[%s4064_s6 + $0x150] sm:$0xff] %v691_v42  ;;  %694 = vst [vmem:[%s4064_s6 + $0x158] sm:$0xff] %v693_v43  ;;  %v697_v45 = vld [vmem:[%s4059_s25 + $0x2d0] sm:$0xff] }
  0x6c   : > { %696 = vst [vmem:[%s4064_s6 + $0x160] sm:$0xff] %v695_v44  ;;  %v699_v46 = vld [vmem:[%s4059_s25 + $0x2e0] sm:$0xff]  ;;  %v701_v47 = vld [vmem:[%s4059_s25 + $0x2f0] sm:$0xff]  ;;  %698 = vst [vmem:[%s4064_s6 + $0x168] sm:$0xff] %v697_v45 }
  0x6d   : > { %700 = vst [vmem:[%s4064_s6 + $0x170] sm:$0xff] %v699_v46  ;;  %702 = vst [vmem:[%s4064_s6 + $0x178] sm:$0xff] %v701_v47  ;;  %v703_v48 = vld [vmem:[%s4059_s25 + $0x300] sm:$0xff]  ;;  %v705_v49 = vld [vmem:[%s4059_s25 + $0x310] sm:$0xff] }
  0x6e   : > { %v707_v50 = vld [vmem:[%s4059_s25 + $0x320] sm:$0xff]  ;;  %704 = vst [vmem:[%s4064_s6 + $0x180] sm:$0xff] %v703_v48  ;;  %706 = vst [vmem:[%s4064_s6 + $0x188] sm:$0xff] %v705_v49  ;;  %v709_v51 = vld [vmem:[%s4059_s25 + $0x330] sm:$0xff] }
  0x6f   : > { %708 = vst [vmem:[%s4064_s6 + $0x190] sm:$0xff] %v707_v50  ;;  %v711_v52 = vld [vmem:[%s4059_s25 + $0x340] sm:$0xff]  ;;  %v713_v53 = vld [vmem:[%s4059_s25 + $0x350] sm:$0xff]  ;;  %710 = vst [vmem:[%s4064_s6 + $0x198] sm:$0xff] %v709_v51 }
  0x70   : > { %712 = vst [vmem:[%s4064_s6 + $0x1a0] sm:$0xff] %v711_v52  ;;  %714 = vst [vmem:[%s4064_s6 + $0x1a8] sm:$0xff] %v713_v53  ;;  %v715_v54 = vld [vmem:[%s4059_s25 + $0x360] sm:$0xff]  ;;  %v717_v55 = vld [vmem:[%s4059_s25 + $0x370] sm:$0xff] }
  0x71   : > { %v719_v56 = vld [vmem:[%s4059_s25 + $0x380] sm:$0xff]  ;;  %716 = vst [vmem:[%s4064_s6 + $0x1b0] sm:$0xff] %v715_v54  ;;  %718 = vst [vmem:[%s4064_s6 + $0x1b8] sm:$0xff] %v717_v55  ;;  %v721_v57 = vld [vmem:[%s4059_s25 + $0x390] sm:$0xff] }
  0x72   : > { %720 = vst [vmem:[%s4064_s6 + $0x1c0] sm:$0xff] %v719_v56  ;;  %v723_v58 = vld [vmem:[%s4059_s25 + $0x3a0] sm:$0xff]  ;;  %v725_v59 = vld [vmem:[%s4059_s25 + $0x3b0] sm:$0xff]  ;;  %722 = vst [vmem:[%s4064_s6 + $0x1c8] sm:$0xff] %v721_v57 }
  0x73   : > { %724 = vst [vmem:[%s4064_s6 + $0x1d0] sm:$0xff] %v723_v58  ;;  %726 = vst [vmem:[%s4064_s6 + $0x1d8] sm:$0xff] %v725_v59  ;;  %v727_v60 = vld [vmem:[%s4059_s25 + $0x3c0] sm:$0xff]  ;;  %v729_v61 = vld [vmem:[%s4059_s25 + $0x3d0] sm:$0xff] }
  0x74   : > { %v731_v62 = vld [vmem:[%s4059_s25 + $0x3e0] sm:$0xff]  ;;  %728 = vst [vmem:[%s4064_s6 + $0x1e0] sm:$0xff] %v727_v60  ;;  %730 = vst [vmem:[%s4064_s6 + $0x1e8] sm:$0xff] %v729_v61  ;;  %v733_v63 = vld [vmem:[%s4059_s25 + $0x3f0] sm:$0xff] }
  0x75   : > { %732 = vst [vmem:[%s4064_s6 + $0x1f0] sm:$0xff] %v731_v62  ;;  %v735_v0 = vld [vmem:[%s4059_s25 + $0x400] sm:$0xff]  ;;  %v737_v1 = vld [vmem:[%s4059_s25 + $0x410] sm:$0xff]  ;;  %734 = vst [vmem:[%s4064_s6 + $0x1f8] sm:$0xff] %v733_v63 }
  0x76   : > { %736 = vst [vmem:[%s4064_s6 + $0x200] sm:$0xff] %v735_v0  ;;  %738 = vst [vmem:[%s4064_s6 + $0x208] sm:$0xff] %v737_v1  ;;  %v739_v2 = vld [vmem:[%s4059_s25 + $0x420] sm:$0xff]  ;;  %v741_v3 = vld [vmem:[%s4059_s25 + $0x430] sm:$0xff] }
  0x77   : > { %v743_v4 = vld [vmem:[%s4059_s25 + $0x440] sm:$0xff]  ;;  %740 = vst [vmem:[%s4064_s6 + $0x210] sm:$0xff] %v739_v2  ;;  %742 = vst [vmem:[%s4064_s6 + $0x218] sm:$0xff] %v741_v3  ;;  %v745_v5 = vld [vmem:[%s4059_s25 + $0x450] sm:$0xff] }
  0x78   : > { %744 = vst [vmem:[%s4064_s6 + $0x220] sm:$0xff] %v743_v4  ;;  %v747_v6 = vld [vmem:[%s4059_s25 + $0x460] sm:$0xff]  ;;  %v749_v7 = vld [vmem:[%s4059_s25 + $0x470] sm:$0xff]  ;;  %746 = vst [vmem:[%s4064_s6 + $0x228] sm:$0xff] %v745_v5 }
  0x79   : > { %748 = vst [vmem:[%s4064_s6 + $0x230] sm:$0xff] %v747_v6  ;;  %750 = vst [vmem:[%s4064_s6 + $0x238] sm:$0xff] %v749_v7  ;;  %v751_v8 = vld [vmem:[%s4059_s25 + $0x480] sm:$0xff]  ;;  %v753_v9 = vld [vmem:[%s4059_s25 + $0x490] sm:$0xff] }
  0x7a   : > { %v755_v10 = vld [vmem:[%s4059_s25 + $0x4a0] sm:$0xff]  ;;  %752 = vst [vmem:[%s4064_s6 + $0x240] sm:$0xff] %v751_v8  ;;  %754 = vst [vmem:[%s4064_s6 + $0x248] sm:$0xff] %v753_v9  ;;  %v757_v11 = vld [vmem:[%s4059_s25 + $0x4b0] sm:$0xff] }
  0x7b   : > { %756 = vst [vmem:[%s4064_s6 + $0x250] sm:$0xff] %v755_v10  ;;  %v759_v12 = vld [vmem:[%s4059_s25 + $0x4c0] sm:$0xff]  ;;  %v761_v13 = vld [vmem:[%s4059_s25 + $0x4d0] sm:$0xff]  ;;  %758 = vst [vmem:[%s4064_s6 + $0x258] sm:$0xff] %v757_v11 }
  0x7c   : > { %760 = vst [vmem:[%s4064_s6 + $0x260] sm:$0xff] %v759_v12  ;;  %762 = vst [vmem:[%s4064_s6 + $0x268] sm:$0xff] %v761_v13  ;;  %v763_v14 = vld [vmem:[%s4059_s25 + $0x4e0] sm:$0xff]  ;;  %v765_v15 = vld [vmem:[%s4059_s25 + $0x4f0] sm:$0xff] }
  0x7d   : > { %v767_v16 = vld [vmem:[%s4059_s25 + $0x500] sm:$0xff]  ;;  %764 = vst [vmem:[%s4064_s6 + $0x270] sm:$0xff] %v763_v14  ;;  %766 = vst [vmem:[%s4064_s6 + $0x278] sm:$0xff] %v765_v15  ;;  %v769_v17 = vld [vmem:[%s4059_s25 + $0x510] sm:$0xff] }
  0x7e   : > { %768 = vst [vmem:[%s4064_s6 + $0x280] sm:$0xff] %v767_v16  ;;  %v771_v18 = vld [vmem:[%s4059_s25 + $0x520] sm:$0xff]  ;;  %v773_v19 = vld [vmem:[%s4059_s25 + $0x530] sm:$0xff]  ;;  %770 = vst [vmem:[%s4064_s6 + $0x288] sm:$0xff] %v769_v17 }
  0x7f   : > { %772 = vst [vmem:[%s4064_s6 + $0x290] sm:$0xff] %v771_v18  ;;  %774 = vst [vmem:[%s4064_s6 + $0x298] sm:$0xff] %v773_v19  ;;  %v775_v20 = vld [vmem:[%s4059_s25 + $0x540] sm:$0xff]  ;;  %v777_v21 = vld [vmem:[%s4059_s25 + $0x550] sm:$0xff] }
  0x80   : > { %v779_v22 = vld [vmem:[%s4059_s25 + $0x560] sm:$0xff]  ;;  %776 = vst [vmem:[%s4064_s6 + $0x2a0] sm:$0xff] %v775_v20  ;;  %778 = vst [vmem:[%s4064_s6 + $0x2a8] sm:$0xff] %v777_v21  ;;  %v781_v23 = vld [vmem:[%s4059_s25 + $0x570] sm:$0xff] }
  0x81   : > { %780 = vst [vmem:[%s4064_s6 + $0x2b0] sm:$0xff] %v779_v22  ;;  %v783_v24 = vld [vmem:[%s4059_s25 + $0x580] sm:$0xff]  ;;  %v785_v25 = vld [vmem:[%s4059_s25 + $0x590] sm:$0xff]  ;;  %782 = vst [vmem:[%s4064_s6 + $0x2b8] sm:$0xff] %v781_v23 }
  0x82   : > { %784 = vst [vmem:[%s4064_s6 + $0x2c0] sm:$0xff] %v783_v24  ;;  %786 = vst [vmem:[%s4064_s6 + $0x2c8] sm:$0xff] %v785_v25  ;;  %v787_v26 = vld [vmem:[%s4059_s25 + $0x5a0] sm:$0xff]  ;;  %v789_v27 = vld [vmem:[%s4059_s25 + $0x5b0] sm:$0xff] }
  0x83   : > { %v791_v28 = vld [vmem:[%s4059_s25 + $0x5c0] sm:$0xff]  ;;  %788 = vst [vmem:[%s4064_s6 + $0x2d0] sm:$0xff] %v787_v26  ;;  %790 = vst [vmem:[%s4064_s6 + $0x2d8] sm:$0xff] %v789_v27  ;;  %v793_v29 = vld [vmem:[%s4059_s25 + $0x5d0] sm:$0xff] }
  0x84   : > { %792 = vst [vmem:[%s4064_s6 + $0x2e0] sm:$0xff] %v791_v28  ;;  %v795_v30 = vld [vmem:[%s4059_s25 + $0x5e0] sm:$0xff]  ;;  %v797_v31 = vld [vmem:[%s4059_s25 + $0x5f0] sm:$0xff]  ;;  %794 = vst [vmem:[%s4064_s6 + $0x2e8] sm:$0xff] %v793_v29 }
  0x85   : > { %796 = vst [vmem:[%s4064_s6 + $0x2f0] sm:$0xff] %v795_v30  ;;  %798 = vst [vmem:[%s4064_s6 + $0x2f8] sm:$0xff] %v797_v31  ;;  %v799_v32 = vld [vmem:[%s4059_s25 + $0x600] sm:$0xff]  ;;  %v801_v33 = vld [vmem:[%s4059_s25 + $0x610] sm:$0xff] }
  0x86   : > { %v803_v34 = vld [vmem:[%s4059_s25 + $0x620] sm:$0xff]  ;;  %800 = vst [vmem:[%s4064_s6 + $0x300] sm:$0xff] %v799_v32  ;;  %802 = vst [vmem:[%s4064_s6 + $0x308] sm:$0xff] %v801_v33  ;;  %v805_v35 = vld [vmem:[%s4059_s25 + $0x630] sm:$0xff] }
  0x87   : > { %804 = vst [vmem:[%s4064_s6 + $0x310] sm:$0xff] %v803_v34  ;;  %v807_v36 = vld [vmem:[%s4059_s25 + $0x640] sm:$0xff]  ;;  %v809_v37 = vld [vmem:[%s4059_s25 + $0x650] sm:$0xff]  ;;  %806 = vst [vmem:[%s4064_s6 + $0x318] sm:$0xff] %v805_v35 }
  0x88   : > { %808 = vst [vmem:[%s4064_s6 + $0x320] sm:$0xff] %v807_v36  ;;  %810 = vst [vmem:[%s4064_s6 + $0x328] sm:$0xff] %v809_v37  ;;  %v811_v38 = vld [vmem:[%s4059_s25 + $0x660] sm:$0xff]  ;;  %v813_v39 = vld [vmem:[%s4059_s25 + $0x670] sm:$0xff] }
  0x89   : > { %v815_v40 = vld [vmem:[%s4059_s25 + $0x680] sm:$0xff]  ;;  %812 = vst [vmem:[%s4064_s6 + $0x330] sm:$0xff] %v811_v38  ;;  %814 = vst [vmem:[%s4064_s6 + $0x338] sm:$0xff] %v813_v39  ;;  %v817_v41 = vld [vmem:[%s4059_s25 + $0x690] sm:$0xff] }
  0x8a   : > { %816 = vst [vmem:[%s4064_s6 + $0x340] sm:$0xff] %v815_v40  ;;  %v819_v42 = vld [vmem:[%s4059_s25 + $0x6a0] sm:$0xff]  ;;  %v821_v43 = vld [vmem:[%s4059_s25 + $0x6b0] sm:$0xff]  ;;  %818 = vst [vmem:[%s4064_s6 + $0x348] sm:$0xff] %v817_v41 }
  0x8b   : > { %820 = vst [vmem:[%s4064_s6 + $0x350] sm:$0xff] %v819_v42  ;;  %822 = vst [vmem:[%s4064_s6 + $0x358] sm:$0xff] %v821_v43  ;;  %v823_v44 = vld [vmem:[%s4059_s25 + $0x6c0] sm:$0xff]  ;;  %v825_v45 = vld [vmem:[%s4059_s25 + $0x6d0] sm:$0xff] }
  0x8c   : > { %v827_v46 = vld [vmem:[%s4059_s25 + $0x6e0] sm:$0xff]  ;;  %824 = vst [vmem:[%s4064_s6 + $0x360] sm:$0xff] %v823_v44  ;;  %826 = vst [vmem:[%s4064_s6 + $0x368] sm:$0xff] %v825_v45  ;;  %v829_v47 = vld [vmem:[%s4059_s25 + $0x6f0] sm:$0xff] }
  0x8d   : > { %828 = vst [vmem:[%s4064_s6 + $0x370] sm:$0xff] %v827_v46  ;;  %v831_v48 = vld [vmem:[%s4059_s25 + $0x700] sm:$0xff]  ;;  %v833_v49 = vld [vmem:[%s4059_s25 + $0x710] sm:$0xff]  ;;  %830 = vst [vmem:[%s4064_s6 + $0x378] sm:$0xff] %v829_v47 }
  0x8e   : > { %832 = vst [vmem:[%s4064_s6 + $0x380] sm:$0xff] %v831_v48  ;;  %834 = vst [vmem:[%s4064_s6 + $0x388] sm:$0xff] %v833_v49  ;;  %v835_v50 = vld [vmem:[%s4059_s25 + $0x720] sm:$0xff]  ;;  %v837_v51 = vld [vmem:[%s4059_s25 + $0x730] sm:$0xff] }
  0x8f   : > { %v839_v52 = vld [vmem:[%s4059_s25 + $0x740] sm:$0xff]  ;;  %836 = vst [vmem:[%s4064_s6 + $0x390] sm:$0xff] %v835_v50  ;;  %838 = vst [vmem:[%s4064_s6 + $0x398] sm:$0xff] %v837_v51  ;;  %v841_v53 = vld [vmem:[%s4059_s25 + $0x750] sm:$0xff] }
  0x90   : > { %840 = vst [vmem:[%s4064_s6 + $0x3a0] sm:$0xff] %v839_v52  ;;  %v843_v54 = vld [vmem:[%s4059_s25 + $0x760] sm:$0xff]  ;;  %v845_v55 = vld [vmem:[%s4059_s25 + $0x770] sm:$0xff]  ;;  %842 = vst [vmem:[%s4064_s6 + $0x3a8] sm:$0xff] %v841_v53 }
  0x91   : > { %844 = vst [vmem:[%s4064_s6 + $0x3b0] sm:$0xff] %v843_v54  ;;  %846 = vst [vmem:[%s4064_s6 + $0x3b8] sm:$0xff] %v845_v55  ;;  %v847_v56 = vld [vmem:[%s4059_s25 + $0x780] sm:$0xff]  ;;  %v849_v57 = vld [vmem:[%s4059_s25 + $0x790] sm:$0xff] }
  0x92   : > { %v851_v58 = vld [vmem:[%s4059_s25 + $0x7a0] sm:$0xff]  ;;  %848 = vst [vmem:[%s4064_s6 + $0x3c0] sm:$0xff] %v847_v56  ;;  %850 = vst [vmem:[%s4064_s6 + $0x3c8] sm:$0xff] %v849_v57  ;;  %v853_v59 = vld [vmem:[%s4059_s25 + $0x7b0] sm:$0xff] }
  0x93   : > { %852 = vst [vmem:[%s4064_s6 + $0x3d0] sm:$0xff] %v851_v58  ;;  %v855_v60 = vld [vmem:[%s4059_s25 + $0x7c0] sm:$0xff]  ;;  %v857_v61 = vld [vmem:[%s4059_s25 + $0x7d0] sm:$0xff]  ;;  %854 = vst [vmem:[%s4064_s6 + $0x3d8] sm:$0xff] %v853_v59 }
  0x94   : > { %856 = vst [vmem:[%s4064_s6 + $0x3e0] sm:$0xff] %v855_v60  ;;  %858 = vst [vmem:[%s4064_s6 + $0x3e8] sm:$0xff] %v857_v61  ;;  %v859_v62 = vld [vmem:[%s4059_s25 + $0x7e0] sm:$0xff]  ;;  %v861_v63 = vld [vmem:[%s4059_s25 + $0x7f0] sm:$0xff] }
  0x95   : > { %860 = vst [vmem:[%s4064_s6 + $0x3f0] sm:$0xff] %v859_v62  ;;  %862 = vst [vmem:[%s4064_s6 + $0x3f8] sm:$0xff] %v861_v63 }
  0x96 PF: > { %p3117_p0 = scmp.ge.s32.totalorder %s3790_s22, 1  ;;  %p876_p1 = scmp.lt.s32.totalorder %s3790_s22, 37 }
  0x98   : > { %p877_p2 = pnand %p3117_p0, %p876_p1 }
  0x99   : > { %s883_s0 = sand.u32 (!%p877_p2), 1, %s3766_s16   ;;  %s890_s5 = sand.u32 (!%p877_p2), 1, %s3758_s14  }
  0x9a   : > { %880 = sbr.rel (%p877_p2) target bundleno = 630 (0x276), region = 85  ;;  %s3118_s23 = sshll.u32 (!%p877_p2), %s883_s0, 9 }
  0x9b   : > { %s3119_s28 = sshll.u32 (!%p877_p2), %s890_s5, 10  ;;  %s918_s7 = sand.u32 (!%p877_p2), 1, %s3750_s12  }
  0x9c   : > { %s3121_s25 = sshll.u32 (!%p877_p2), %s3778_s19, 1  ;;  %s3120_s11 = sshll.u32 (!%p877_p2), %s918_s7, 8 }
  0x9d   : > { %p926_p3 = scmp.lt.s32.totalorder (!%p877_p2), %s3121_s25, 3  ;;  %s4330_s6 = scalar_lea.vmem (!%p877_p2), [#allocation3], %s3118_s23 }
  0x9e   : > { %s4332_s1 = scalar_lea.vmem (!%p877_p2), [#allocation4], %s3119_s28  ;;  %s4334_s24 = scalar_lea.vmem (!%p877_p2), [#allocation5], %s3120_s11 }
  0x9f   : > { %p3123_p4 = scmp.ne.s32.totalorder (!%p877_p2), %s3774_s18, 0 }
  0xa1   : > { %s4812_s25 = smov (!%p926_p3, %s3121_s25), 3  ;;  %936 = sbr.rel (%p3123_p4) target bundleno = 179 (0xb3), region = 97 }
  0xa2   : > { %s3122_s26 = sshll.u32 %s4812_s25, 3  ;;  %v3792_v0 = vmov (!%p3123_p4), 0.0  }
  0xa3   : > { %s4328_s4 = scalar_lea.vmem %s4780_s2, %s3122_s26  ;;  %937 = vst [vmem:[#allocation2] sm:$0xff] (!%p3123_p4), %v3792_v0  ;;  %938 = vst [vmem:[#allocation2 + $0x8] sm:$0xff] (!%p3123_p4), %v3792_v0 }
  0xa4   : > { %939 = vst [vmem:[#allocation2 + $0x10] sm:$0xff] (!%p3123_p4), %v3792_v0  ;;  %940 = vst [vmem:[#allocation2 + $0x18] sm:$0xff] (!%p3123_p4), %v3792_v0 }
  0xa5   : > { %941 = vst [vmem:[#allocation2 + $0x20] sm:$0xff] (!%p3123_p4), %v3792_v0  ;;  %942 = vst [vmem:[#allocation2 + $0x28] sm:$0xff] (!%p3123_p4), %v3792_v0 }
  0xa6   : > { %943 = vst [vmem:[#allocation2 + $0x30] sm:$0xff] (!%p3123_p4), %v3792_v0  ;;  %944 = vst [vmem:[#allocation2 + $0x38] sm:$0xff] (!%p3123_p4), %v3792_v0 }
  0xa7   : > { %945 = vst [vmem:[#allocation2 + $0x40] sm:$0xff] (!%p3123_p4), %v3792_v0  ;;  %946 = vst [vmem:[#allocation2 + $0x48] sm:$0xff] (!%p3123_p4), %v3792_v0 }
  0xa8   : > { %947 = vst [vmem:[#allocation2 + $0x50] sm:$0xff] %v3792_v0  ;;  %948 = vst [vmem:[#allocation2 + $0x58] sm:$0xff] %v3792_v0 }
  0xa9   : > { %949 = vst [vmem:[#allocation2 + $0x60] sm:$0xff] %v3792_v0  ;;  %950 = vst [vmem:[#allocation2 + $0x68] sm:$0xff] %v3792_v0 }
  0xaa   : > { %951 = vst [vmem:[#allocation2 + $0x70] sm:$0xff] %v3792_v0  ;;  %952 = vst [vmem:[#allocation2 + $0x78] sm:$0xff] %v3792_v0 }
  0xab   : > { %953 = vst [vmem:[#allocation2 + $0x80] sm:$0xff] %v3792_v0  ;;  %954 = vst [vmem:[#allocation2 + $0x88] sm:$0xff] %v3792_v0 }
  0xac   : > { %955 = vst [vmem:[#allocation2 + $0x90] sm:$0xff] %v3792_v0  ;;  %956 = vst [vmem:[#allocation2 + $0x98] sm:$0xff] %v3792_v0 }
  0xad   : > { %957 = vst [vmem:[#allocation2 + $0xa0] sm:$0xff] %v3792_v0  ;;  %958 = vst [vmem:[#allocation2 + $0xa8] sm:$0xff] %v3792_v0 }
  0xae   : > { %959 = vst [vmem:[#allocation2 + $0xb0] sm:$0xff] %v3792_v0  ;;  %960 = vst [vmem:[#allocation2 + $0xb8] sm:$0xff] %v3792_v0 }
  0xaf   : > { %961 = vst [vmem:[#allocation2 + $0xc0] sm:$0xff] %v3792_v0  ;;  %962 = vst [vmem:[#allocation2 + $0xc8] sm:$0xff] %v3792_v0 }
  0xb0   : > { %963 = vst [vmem:[#allocation2 + $0xd0] sm:$0xff] %v3792_v0  ;;  %964 = vst [vmem:[#allocation2 + $0xd8] sm:$0xff] %v3792_v0 }
  0xb1   : > { %965 = vst [vmem:[#allocation2 + $0xe0] sm:$0xff] %v3792_v0  ;;  %966 = vst [vmem:[#allocation2 + $0xe8] sm:$0xff] %v3792_v0 }
  0xb2   : > { %967 = vst [vmem:[#allocation2 + $0xf0] sm:$0xff] %v3792_v0  ;;  %968 = vst [vmem:[#allocation2 + $0xf8] sm:$0xff] %v3792_v0 }
  0xb3 PF: > { %v3512_v1 = vld [vmem:[%s4332_s1 + $0x4] ss:$8 sps:$4 sm:$0xff]   ;;  %v3516_v3 = vld [vmem:[%s4332_s1] ss:$8 sps:$4 sm:$0xff]   ;;  %v3518_v5 = vld [vmem:[%s4332_s1 + $0x14] ss:$8 sps:$4 sm:$0xff]  }
  0xb4   : > { %v3514_v2 = vld [vmem:[%s4332_s1 + $0x204] ss:$8 sps:$4 sm:$0xff]   ;;  %2153 = vmatprep.subr.bf16.mxu1 %v3512_v1  ;;  %v3517_v4 = vld [vmem:[%s4332_s1 + $0x200] ss:$8 sps:$4 sm:$0xff]   ;;  %v3520_v6 = vld [vmem:[%s4332_s1 + $0x214] ss:$8 sps:$4 sm:$0xff]  }
  0xb5   : > { %2379 = vmatprep.subr.bf16.mxu0 %v3514_v2  ;;  %2154 = vmatpush1.bf16.msra.mxu1 %v3516_v3  ;;  %v3522_v7 = vld [vmem:[%s4332_s1 + $0x10] ss:$8 sps:$4 sm:$0xff]   ;;  %v3524_v9 = vld [vmem:[%s4332_s1 + $0x24] ss:$8 sps:$4 sm:$0xff]   ;;  %v3528_v11 = vld [vmem:[%s4332_s1 + $0x20] ss:$8 sps:$4 sm:$0xff]  }
  0xb6   : > { %2380 = vmatpush1.bf16.msra.mxu0 %v3517_v4  ;;  %2155 = vmatprep.subr.bf16.mxu1 %v3518_v5  ;;  %v3523_v8 = vld [vmem:[%s4332_s1 + $0x210] ss:$8 sps:$4 sm:$0xff]   ;;  %v3526_v10 = vld [vmem:[%s4332_s1 + $0x224] ss:$8 sps:$4 sm:$0xff]   ;;  %v3529_v12 = vld [vmem:[%s4332_s1 + $0x220] ss:$8 sps:$4 sm:$0xff]  }
  0xb7   : > { %2381 = vmatprep.subr.bf16.mxu0 %v3520_v6  ;;  %v3530_v13 = vld [vmem:[%s4332_s1 + $0x34] ss:$8 sps:$4 sm:$0xff]   ;;  %v3534_v15 = vld [vmem:[%s4332_s1 + $0x30] ss:$8 sps:$4 sm:$0xff]   ;;  %v3536_v17 = vld [vmem:[%s4332_s1 + $0x44] ss:$8 sps:$4 sm:$0xff]  }
  0xb8   : > { %v3532_v14 = vld [vmem:[%s4332_s1 + $0x234] ss:$8 sps:$4 sm:$0xff]   ;;  %v3535_v16 = vld [vmem:[%s4332_s1 + $0x230] ss:$8 sps:$4 sm:$0xff]   ;;  %v3538_v18 = vld [vmem:[%s4332_s1 + $0x244] ss:$8 sps:$4 sm:$0xff]  }
  0xb9   : > { %2156 = vmatpush1.bf16.msra.mxu1 %v3522_v7  ;;  %v3540_v19 = vld [vmem:[%s4332_s1 + $0x40] ss:$8 sps:$4 sm:$0xff]   ;;  %v3542_v21 = vld [vmem:[%s4332_s1 + $0x54] ss:$8 sps:$4 sm:$0xff]   ;;  %v3546_v23 = vld [vmem:[%s4332_s1 + $0x50] ss:$8 sps:$4 sm:$0xff]  }
  0xba   : > { %2382 = vmatpush1.bf16.msra.mxu0 %v3523_v8  ;;  %2157 = vmatprep.subr.bf16.mxu1 %v3524_v9  ;;  %v3541_v20 = vld [vmem:[%s4332_s1 + $0x240] ss:$8 sps:$4 sm:$0xff]   ;;  %v3544_v22 = vld [vmem:[%s4332_s1 + $0x254] ss:$8 sps:$4 sm:$0xff]   ;;  %v3547_v24 = vld [vmem:[%s4332_s1 + $0x250] ss:$8 sps:$4 sm:$0xff]  }
  0xbb   : > { %2383 = vmatprep.subr.bf16.mxu0 %v3526_v10  ;;  %v3548_v25 = vld [vmem:[%s4332_s1 + $0x64] ss:$8 sps:$4 sm:$0xff]   ;;  %v3552_v27 = vld [vmem:[%s4332_s1 + $0x60] ss:$8 sps:$4 sm:$0xff]   ;;  %v3554_v29 = vld [vmem:[%s4332_s1 + $0x74] ss:$8 sps:$4 sm:$0xff]  }
  0xbc   : > { %v3550_v26 = vld [vmem:[%s4332_s1 + $0x264] ss:$8 sps:$4 sm:$0xff]   ;;  %v3553_v28 = vld [vmem:[%s4332_s1 + $0x260] ss:$8 sps:$4 sm:$0xff]   ;;  %v3556_v30 = vld [vmem:[%s4332_s1 + $0x274] ss:$8 sps:$4 sm:$0xff]  }
  0xbd   : > { %2158 = vmatpush1.bf16.msra.mxu1 %v3528_v11  ;;  %v3558_v31 = vld [vmem:[%s4332_s1 + $0x70] ss:$8 sps:$4 sm:$0xff]   ;;  %v3560_v33 = vld [vmem:[%s4332_s1 + $0x84] ss:$8 sps:$4 sm:$0xff]   ;;  %v3564_v35 = vld [vmem:[%s4332_s1 + $0x80] ss:$8 sps:$4 sm:$0xff]  }
  0xbe   : > { %2384 = vmatpush1.bf16.msra.mxu0 %v3529_v12  ;;  %2159 = vmatprep.subr.bf16.mxu1 %v3530_v13  ;;  %v3559_v32 = vld [vmem:[%s4332_s1 + $0x270] ss:$8 sps:$4 sm:$0xff]   ;;  %v3562_v34 = vld [vmem:[%s4332_s1 + $0x284] ss:$8 sps:$4 sm:$0xff]   ;;  %v3565_v36 = vld [vmem:[%s4332_s1 + $0x280] ss:$8 sps:$4 sm:$0xff]  }
  0xbf   : > { %2385 = vmatprep.subr.bf16.mxu0 %v3532_v14  ;;  %v3566_v37 = vld [vmem:[%s4332_s1 + $0x94] ss:$8 sps:$4 sm:$0xff]   ;;  %v3570_v39 = vld [vmem:[%s4332_s1 + $0x90] ss:$8 sps:$4 sm:$0xff]   ;;  %v3572_v41 = vld [vmem:[%s4332_s1 + $0xa4] ss:$8 sps:$4 sm:$0xff]  }
  0xc0   : > { %v3568_v38 = vld [vmem:[%s4332_s1 + $0x294] ss:$8 sps:$4 sm:$0xff]   ;;  %v3571_v40 = vld [vmem:[%s4332_s1 + $0x290] ss:$8 sps:$4 sm:$0xff]   ;;  %v3574_v42 = vld [vmem:[%s4332_s1 + $0x2a4] ss:$8 sps:$4 sm:$0xff]  }
  0xc1   : > { %2160 = vmatpush1.bf16.msra.mxu1 %v3534_v15  ;;  %v3576_v43 = vld [vmem:[%s4332_s1 + $0xa0] ss:$8 sps:$4 sm:$0xff]   ;;  %v3578_v45 = vld [vmem:[%s4332_s1 + $0xb4] ss:$8 sps:$4 sm:$0xff]   ;;  %v3582_v47 = vld [vmem:[%s4332_s1 + $0xb0] ss:$8 sps:$4 sm:$0xff]  }
  0xc2   : > { %2386 = vmatpush1.bf16.msra.mxu0 %v3535_v16  ;;  %2161 = vmatprep.subr.bf16.mxu1 %v3536_v17  ;;  %v3577_v44 = vld [vmem:[%s4332_s1 + $0x2a0] ss:$8 sps:$4 sm:$0xff]   ;;  %v3580_v46 = vld [vmem:[%s4332_s1 + $0x2b4] ss:$8 sps:$4 sm:$0xff]   ;;  %v3583_v48 = vld [vmem:[%s4332_s1 + $0x2b0] ss:$8 sps:$4 sm:$0xff]  }
  0xc3   : > { %2387 = vmatprep.subr.bf16.mxu0 %v3538_v18  ;;  %v1001_v49 = vld [vmem:[%s4330_s6] sm:$0xff]  ;;  %v1003_v51 = vld [vmem:[%s4330_s6 + $0x10] sm:$0xff]  ;;  %p3316_p5 = scmp.ne.s32.totalorder %s3774_s18, 17 }
  0xc4   : > { %v1005_v50 = vld [vmem:[%s4330_s6 + $0x20] sm:$0xff]  ;;  %v1007_v52 = vld [vmem:[%s4330_s6 + $0x30] sm:$0xff] }
  0xc5   : > { %2162 = vmatpush1.bf16.msra.mxu1 %v3540_v19  ;;  %v3584_v53 = vld [vmem:[%s4332_s1 + $0xc4] ss:$8 sps:$4 sm:$0xff]   ;;  %v3125_v54 = vcombine.high %v1001_v49, %v1005_v50  ;;  %v3129_v56 = vcombine.high %v1003_v51, %v1007_v52  ;;  %v3588_v57 = vld [vmem:[%s4332_s1 + $0xc0] ss:$8 sps:$4 sm:$0xff]   ;;  %v3590_v59 = vld [vmem:[%s4332_s1 + $0xd4] ss:$8 sps:$4 sm:$0xff]   ;;  %v3124_v12 = vcombine.low %v1001_v49, %v1005_v50  ;;  %v3128_v13 = vcombine.low %v1003_v51, %v1007_v52 }
  0xc6   : > { %2388 = vmatpush1.bf16.msra.mxu0 %v3541_v20  ;;  %2163 = vmatprep.subr.bf16.mxu1 %v3542_v21  ;;  %v3586_v55 = vld [vmem:[%s4332_s1 + $0x2c4] ss:$8 sps:$4 sm:$0xff]   ;;  %v3589_v58 = vld [vmem:[%s4332_s1 + $0x2c0] ss:$8 sps:$4 sm:$0xff]   ;;  %v3592_v60 = vld [vmem:[%s4332_s1 + $0x2d4] ss:$8 sps:$4 sm:$0xff]  }
  0xc7   : > { %2389 = vmatprep.subr.bf16.mxu0 %v3544_v22  ;;  %2185 = vmatprep.mubr.bf16.mxu1 %v3125_v54  ;;  %v3594_v61 = vld [vmem:[%s4332_s1 + $0xd0] ss:$8 sps:$4 sm:$0xff]   ;;  %v3596_v63 = vld [vmem:[%s4332_s1 + $0xe4] ss:$8 sps:$4 sm:$0xff]   ;;  %v3600_v1 = vld [vmem:[%s4332_s1 + $0xe0] ss:$8 sps:$4 sm:$0xff]  }
  0xc8   : > { %2411 = vmatprep.mubr.bf16.mxu0 %v3129_v56  ;;  %v3595_v62 = vld [vmem:[%s4332_s1 + $0x2d0] ss:$8 sps:$4 sm:$0xff]   ;;  %v3598_v0 = vld [vmem:[%s4332_s1 + $0x2e4] ss:$8 sps:$4 sm:$0xff]   ;;  %v3601_v2 = vld [vmem:[%s4332_s1 + $0x2e0] ss:$8 sps:$4 sm:$0xff]  }
  0xc9   : > { %2164 = vmatpush1.bf16.msra.mxu1 %v3546_v23  ;;  %v3602_v3 = vld [vmem:[%s4332_s1 + $0xf4] ss:$8 sps:$4 sm:$0xff]   ;;  %v3606_v5 = vld [vmem:[%s4332_s1 + $0xf0] ss:$8 sps:$4 sm:$0xff]   ;;  %v3610_v7 = vld [vmem:[%s4332_s1 + $0x104] ss:$8 sps:$4 sm:$0xff]  }
  0xca   : > { %2390 = vmatpush1.bf16.msra.mxu0 %v3547_v24  ;;  %2165 = vmatprep.subr.bf16.mxu1 %v3548_v25  ;;  %v3604_v4 = vld [vmem:[%s4332_s1 + $0x2f4] ss:$8 sps:$4 sm:$0xff]   ;;  %v3607_v6 = vld [vmem:[%s4332_s1 + $0x2f0] ss:$8 sps:$4 sm:$0xff]   ;;  %v3613_v8 = vld [vmem:[%s4332_s1 + $0x304] ss:$8 sps:$4 sm:$0xff]  }
  0xcb   : > { %2391 = vmatprep.subr.bf16.mxu0 %v3550_v26  ;;  %v3608_v9 = vld [vmem:[%s4332_s1 + $0x100] ss:$8 sps:$4 sm:$0xff]   ;;  %v1011_v15 = vld [vmem:[%s4330_s6 + $0x50] sm:$0xff]  ;;  %v3622_v23 = vld [vmem:[%s4332_s1 + $0x124] ss:$8 sps:$4 sm:$0xff]  }
  0xcc   : > { %v3611_v10 = vld [vmem:[%s4332_s1 + $0x300] ss:$8 sps:$4 sm:$0xff]   ;;  %v1015_v16 = vld [vmem:[%s4330_s6 + $0x70] sm:$0xff]  ;;  %v3625_v24 = vld [vmem:[%s4332_s1 + $0x324] ss:$8 sps:$4 sm:$0xff]  }
  0xcd   : > { %2166 = vmatpush1.bf16.msra.mxu1 %v3552_v27  ;;  %v1009_v11 = vld [vmem:[%s4330_s6 + $0x40] sm:$0xff]  ;;  %v3616_v17 = vld [vmem:[%s4332_s1 + $0x114] ss:$8 sps:$4 sm:$0xff]   ;;  %v3137_v20 = vcombine.high %v1011_v15, %v1015_v16  ;;  %v3614_v21 = vld [vmem:[%s4332_s1 + $0x110] ss:$8 sps:$4 sm:$0xff]  }
  0xce   : > { %2392 = vmatpush1.bf16.msra.mxu0 %v3553_v28  ;;  %2167 = vmatprep.subr.bf16.mxu1 %v3554_v29  ;;  %v1013_v14 = vld [vmem:[%s4330_s6 + $0x60] sm:$0xff]  ;;  %v3619_v18 = vld [vmem:[%s4332_s1 + $0x314] ss:$8 sps:$4 sm:$0xff]   ;;  %v3617_v22 = vld [vmem:[%s4332_s1 + $0x310] ss:$8 sps:$4 sm:$0xff]  }
  0xcf   : > { %2393 = vmatprep.subr.bf16.mxu0 %v3556_v30  ;;  %v3133_v19 = vcombine.high %v1009_v11, %v1013_v14  ;;  %v3620_v25 = vld [vmem:[%s4332_s1 + $0x120] ss:$8 sps:$4 sm:$0xff]   ;;  %v3132_v29 = vcombine.low %v1009_v11, %v1013_v14  ;;  %v3136_v30 = vcombine.low %v1011_v15, %v1015_v16  ;;  %v3640_v49 = vld [vmem:[%s4332_s1 + $0x154] ss:$8 sps:$4 sm:$0xff]   ;;  %v3641_v54 = vld [vmem:[%s4332_s1 + $0x350] ss:$8 sps:$4 sm:$0xff]  }
  0xd0   : > { %v3623_v26 = vld [vmem:[%s4332_s1 + $0x320] ss:$8 sps:$4 sm:$0xff]   ;;  %v3643_v50 = vld [vmem:[%s4332_s1 + $0x354] ss:$8 sps:$4 sm:$0xff]   ;;  %v3649_v56 = vld [vmem:[%s4332_s1 + $0x364] ss:$8 sps:$4 sm:$0xff]  }
  0xd1   : > { %2168 = vmatpush1.bf16.msra.mxu1 %v3558_v31  ;;  %v1017_v27 = vld [vmem:[%s4330_s6 + $0x80] sm:$0xff]  ;;  %v1019_v31 = vld [vmem:[%s4330_s6 + $0x90] sm:$0xff] }
  0xd2   : > { %2394 = vmatpush1.bf16.msra.mxu0 %v3559_v32  ;;  %2169 = vmatprep.subr.bf16.mxu1 %v3560_v33  ;;  %v1021_v28 = vld [vmem:[%s4330_s6 + $0xa0] sm:$0xff]  ;;  %v1023_v32 = vld [vmem:[%s4330_s6 + $0xb0] sm:$0xff] }
  0xd3   : > { %2395 = vmatprep.subr.bf16.mxu0 %v3562_v34  ;;  %v3628_v33 = vld [vmem:[%s4332_s1 + $0x134] ss:$8 sps:$4 sm:$0xff]   ;;  %v3656_v15 = vld [vmem:[%s4332_s1 + $0x180] ss:$8 sps:$4 sm:$0xff]  }
  0xd4   : > { %v3631_v34 = vld [vmem:[%s4332_s1 + $0x334] ss:$8 sps:$4 sm:$0xff]   ;;  %v3659_v16 = vld [vmem:[%s4332_s1 + $0x380] ss:$8 sps:$4 sm:$0xff]  }
  0xd5   : > { %2170 = vmatpush1.bf16.msra.mxu1 %v3564_v35  ;;  %v3141_v35 = vcombine.high %v1017_v27, %v1021_v28  ;;  %v1047_v14 = vld [vmem:[%s4330_s6 + $0x170] sm:$0xff] }
  0xd6   : > { %2396 = vmatpush1.bf16.msra.mxu0 %v3565_v36  ;;  %2171 = vmatprep.subr.bf16.mxu1 %v3566_v37  ;;  %v3145_v36 = vcombine.high %v1019_v31, %v1023_v32  ;;  %v3626_v37 = vld [vmem:[%s4332_s1 + $0x130] ss:$8 sps:$4 sm:$0xff]  }
  0xd7   : > { %2397 = vmatprep.subr.bf16.mxu0 %v3568_v38  ;;  %v3629_v38 = vld [vmem:[%s4332_s1 + $0x330] ss:$8 sps:$4 sm:$0xff]  }
  0xd9   : > { %2172 = vmatpush1.bf16.msra.mxu1 %v3570_v39  ;;  %v3634_v39 = vld [vmem:[%s4332_s1 + $0x144] ss:$8 sps:$4 sm:$0xff]  }
  0xda   : > { %2398 = vmatpush1.bf16.msra.mxu0 %v3571_v40  ;;  %2173 = vmatprep.subr.bf16.mxu1 %v3572_v41  ;;  %v3637_v40 = vld [vmem:[%s4332_s1 + $0x344] ss:$8 sps:$4 sm:$0xff]   ;;  %v3632_v41 = vld [vmem:[%s4332_s1 + $0x140] ss:$8 sps:$4 sm:$0xff]  }
  0xdb   : > { %2399 = vmatprep.subr.bf16.mxu0 %v3574_v42  ;;  %v3635_v42 = vld [vmem:[%s4332_s1 + $0x340] ss:$8 sps:$4 sm:$0xff]  }
  0xdd   : > { %2174 = vmatpush1.bf16.msra.mxu1 %v3576_v43  ;;  %v1025_v43 = vld [vmem:[%s4330_s6 + $0xc0] sm:$0xff] }
  0xde   : > { %2400 = vmatpush1.bf16.msra.mxu0 %v3577_v44  ;;  %2175 = vmatprep.subr.bf16.mxu1 %v3578_v45  ;;  %v1029_v44 = vld [vmem:[%s4330_s6 + $0xe0] sm:$0xff]  ;;  %v3140_v45 = vcombine.low %v1017_v27, %v1021_v28 }
  0xdf   : > { %2401 = vmatprep.subr.bf16.mxu0 %v3580_v46  ;;  %v3144_v46 = vcombine.low %v1019_v31, %v1023_v32  ;;  %v3149_v51 = vcombine.high %v1025_v43, %v1029_v44  ;;  %v1053_v28 = vld [vmem:[%s4330_s6 + $0x1a0] sm:$0xff] }
  0xe0   : > { %v3668_v31 = vld [vmem:[%s4332_s1 + $0x1a0] ss:$8 sps:$4 sm:$0xff]  }
  0xe1   : > { %2176 = vmatpush1.bf16.msra.mxu1 %v3582_v47  ;;  %v1027_v47 = vld [vmem:[%s4330_s6 + $0xd0] sm:$0xff]  ;;  %v3671_v32 = vld [vmem:[%s4332_s1 + $0x3a0] ss:$8 sps:$4 sm:$0xff]  }
  0xe2   : > { %2402 = vmatpush1.bf16.msra.mxu0 %v3583_v48  ;;  %2177 = vmatprep.subr.bf16.mxu1 %v3584_v53  ;;  %v1031_v48 = vld [vmem:[%s4330_s6 + $0xf0] sm:$0xff] }
  0xe3   : > { %2403 = vmatprep.subr.bf16.mxu0 %v3586_v55  ;;  %v3153_v52 = vcombine.high %v1027_v47, %v1031_v48  ;;  %v3638_v53 = vld [vmem:[%s4332_s1 + $0x150] ss:$8 sps:$4 sm:$0xff]   ;;  %v3646_v55 = vld [vmem:[%s4332_s1 + $0x164] ss:$8 sps:$4 sm:$0xff]  }
  0xe5   : > { %2178 = vmatpush1.bf16.msra.mxu1 %v3588_v57  ;;  %v3644_v57 = vld [vmem:[%s4332_s1 + $0x160] ss:$8 sps:$4 sm:$0xff]  }
  0xe6   : > { %2404 = vmatpush1.bf16.msra.mxu0 %v3589_v58  ;;  %2179 = vmatprep.subr.bf16.mxu1 %v3590_v59  ;;  %v1033_v58 = vld [vmem:[%s4330_s6 + $0x100] sm:$0xff] }
  0xe7   : > { %2405 = vmatprep.subr.bf16.mxu0 %v3592_v60  ;;  %v1037_v59 = vld [vmem:[%s4330_s6 + $0x120] sm:$0xff]  ;;  %v3148_v60 = vcombine.low %v1025_v43, %v1029_v44 }
  0xe8   : > { %v3156_v11 = vcombine.low %v1033_v58, %v1037_v59  ;;  %v1061_v44 = vld [vmem:[%s4330_s6 + $0x1e0] sm:$0xff] }
  0xe9   : > { %2180 = vmatpush1.bf16.msra.mxu1 %v3594_v61  ;;  %v3152_v61 = vcombine.low %v1027_v47, %v1031_v48  ;;  %v3680_v47 = vld [vmem:[%s4332_s1 + $0x1c0] ss:$8 sps:$4 sm:$0xff]  }
  0xea   : > { %2406 = vmatpush1.bf16.msra.mxu0 %v3595_v62  ;;  %2181 = vmatprep.subr.bf16.mxu1 %v3596_v63  ;;  %v1035_v62 = vld [vmem:[%s4330_s6 + $0x110] sm:$0xff]  ;;  %v3683_v48 = vld [vmem:[%s4332_s1 + $0x3c0] ss:$8 sps:$4 sm:$0xff]  }
  0xeb   : > { %2407 = vmatprep.subr.bf16.mxu0 %v3598_v0  ;;  %v1039_v63 = vld [vmem:[%s4330_s6 + $0x130] sm:$0xff]  ;;  %v3647_v0 = vld [vmem:[%s4332_s1 + $0x360] ss:$8 sps:$4 sm:$0xff]  }
  0xed   : > { %2182 = vmatpush1.bf16.msra.mxu1 %v3600_v1  ;;  %v3652_v1 = vld [vmem:[%s4332_s1 + $0x174] ss:$8 sps:$4 sm:$0xff]  }
  0xee   : > { %2408 = vmatpush1.bf16.msra.mxu0 %v3601_v2  ;;  %2183 = vmatprep.subr.bf16.mxu1 %v3602_v3  ;;  %v3655_v2 = vld [vmem:[%s4332_s1 + $0x374] ss:$8 sps:$4 sm:$0xff]   ;;  %v3157_v3 = vcombine.high %v1033_v58, %v1037_v59 }
  0xef   : > { %2409 = vmatprep.subr.bf16.mxu0 %v3604_v4  ;;  %v3161_v4 = vcombine.high %v1035_v62, %v1039_v63 }
  0xf1   : > { %2184 = vmatpush1.bf16.msra.mxu1 %v3606_v5  ;;  %v3650_v5 = vld [vmem:[%s4332_s1 + $0x170] ss:$8 sps:$4 sm:$0xff]  }
  0xf2   : > { %2410 = vmatpush1.bf16.msra.mxu0 %v3607_v6  ;;  %2266 = vmatprep.subr.bf16.mxu1 %v3610_v7  ;;  %v3653_v6 = vld [vmem:[%s4332_s1 + $0x370] ss:$8 sps:$4 sm:$0xff]   ;;  %v3658_v7 = vld [vmem:[%s4332_s1 + $0x184] ss:$8 sps:$4 sm:$0xff]  }
  0xf3   : > { %2492 = vmatprep.subr.bf16.mxu0 %v3613_v8  ;;  %v3661_v8 = vld [vmem:[%s4332_s1 + $0x384] ss:$8 sps:$4 sm:$0xff]  }
  0xf4   : > { %2186 = vmatmul.mubr.bf16.vlgmr.msra.gmra.mrb[0].mxu1 %v3124_v12  ;;  %v3160_v12 = vcombine.low %v1035_v62, %v1039_v63  ;;  %v1008_v62 = vld [vmem:[%s4330_s6 + $0x38] sm:$0xff]  ;;  %v3692_v63 = vld [vmem:[%s4332_s1 + $0x1e0] ss:$8 sps:$4 sm:$0xff]  }
  0xf5   : > { %2412 = vmatmul.mubr.bf16.vlgmr.msra.gmra.mrb[0].mxu0 %v3128_v13  ;;  %2267 = vmatpush1.bf16.msra.mxu1 %v3608_v9  ;;  %v1041_v9 = vld [vmem:[%s4330_s6 + $0x140] sm:$0xff]  ;;  %v1043_v13 = vld [vmem:[%s4330_s6 + $0x150] sm:$0xff] }
  0xf6   : > { %2493 = vmatpush1.bf16.msra.mxu0 %v3611_v10  ;;  %2268 = vmatprep.subr.bf16.mxu1 %v3616_v17  ;;  %v1045_v10 = vld [vmem:[%s4330_s6 + $0x160] sm:$0xff]  ;;  %v3664_v17 = vld [vmem:[%s4332_s1 + $0x194] ss:$8 sps:$4 sm:$0xff]   ;;  %v3168_v27 = vcombine.low %v1043_v13, %v1047_v14 }
  0xf7   : > { %2494 = vmatprep.subr.bf16.mxu0 %v3619_v18  ;;  %2195 = vmatprep.mubr.bf16.mxu1 %v3133_v19  ;;  %v3667_v18 = vld [vmem:[%s4332_s1 + $0x394] ss:$8 sps:$4 sm:$0xff]   ;;  %v3165_v19 = vcombine.high %v1041_v9, %v1045_v10 }
  0xf8   : > { %2421 = vmatprep.mubr.bf16.mxu0 %v3137_v20  ;;  %v3169_v20 = vcombine.high %v1043_v13, %v1047_v14 }
  0xf9   : > { %2269 = vmatpush1.bf16.msra.mxu1 %v3614_v21  ;;  %v3662_v21 = vld [vmem:[%s4332_s1 + $0x190] ss:$8 sps:$4 sm:$0xff]  }
  0xfa   : > { %2495 = vmatpush1.bf16.msra.mxu0 %v3617_v22  ;;  %2270 = vmatprep.subr.bf16.mxu1 %v3622_v23  ;;  %v3665_v22 = vld [vmem:[%s4332_s1 + $0x390] ss:$8 sps:$4 sm:$0xff]   ;;  %v3670_v23 = vld [vmem:[%s4332_s1 + $0x1a4] ss:$8 sps:$4 sm:$0xff]  }
  0xfb   : > { %2496 = vmatprep.subr.bf16.mxu0 %v3625_v24  ;;  %v3673_v24 = vld [vmem:[%s4332_s1 + $0x3a4] ss:$8 sps:$4 sm:$0xff]  }
  0xfc   : > { %2196 = vmatmul.mubr.bf16.gmra.mrb[4].mxu1 %v3132_v29  ;;  %v1051_v29 = vld [vmem:[%s4330_s6 + $0x190] sm:$0xff] }
  0xfd   : > { %2422 = vmatmul.mubr.bf16.gmra.mrb[4].mxu0 %v3136_v30  ;;  %2271 = vmatpush1.bf16.msra.mxu1 %v3620_v25  ;;  %v1049_v25 = vld [vmem:[%s4330_s6 + $0x180] sm:$0xff]  ;;  %v1055_v30 = vld [vmem:[%s4330_s6 + $0x1b0] sm:$0xff] }
  0xfe   : > { %2497 = vmatpush1.bf16.msra.mxu0 %v3623_v26  ;;  %2272 = vmatprep.subr.bf16.mxu1 %v3628_v33  ;;  %v3164_v26 = vcombine.low %v1041_v9, %v1045_v10  ;;  %v3676_v33 = vld [vmem:[%s4332_s1 + $0x1b4] ss:$8 sps:$4 sm:$0xff]   ;;  %v3176_v43 = vcombine.low %v1051_v29, %v1055_v30 }
  0xff   : > { %2498 = vmatprep.subr.bf16.mxu0 %v3631_v34  ;;  %2205 = vmatprep.mubr.bf16.mxu1 %v3141_v35  ;;  %v3679_v34 = vld [vmem:[%s4332_s1 + $0x3b4] ss:$8 sps:$4 sm:$0xff]   ;;  %v3173_v35 = vcombine.high %v1049_v25, %v1053_v28 }
 0x100   : > { %2431 = vmatprep.mubr.bf16.mxu0 %v3145_v36  ;;  %v3177_v36 = vcombine.high %v1051_v29, %v1055_v30  ;;  %v1012_v9 = vld [vmem:[%s4330_s6 + $0x58] sm:$0xff] }
 0x101   : > { %2273 = vmatpush1.bf16.msra.mxu1 %v3626_v37  ;;  %v3674_v37 = vld [vmem:[%s4332_s1 + $0x1b0] ss:$8 sps:$4 sm:$0xff]  }
 0x102   : > { %2499 = vmatpush1.bf16.msra.mxu0 %v3629_v38  ;;  %2274 = vmatprep.subr.bf16.mxu1 %v3634_v39  ;;  %v3677_v38 = vld [vmem:[%s4332_s1 + $0x3b0] ss:$8 sps:$4 sm:$0xff]   ;;  %v3682_v39 = vld [vmem:[%s4332_s1 + $0x1c4] ss:$8 sps:$4 sm:$0xff]  }
 0x103   : > { %2500 = vmatprep.subr.bf16.mxu0 %v3637_v40  ;;  %v3685_v40 = vld [vmem:[%s4332_s1 + $0x3c4] ss:$8 sps:$4 sm:$0xff]   ;;  %v1016_v10 = vld [vmem:[%s4330_s6 + $0x78] sm:$0xff] }
 0x104   : > { %2206 = vmatmul.mubr.bf16.gmra.mrb[8].mxu1 %v3140_v45  ;;  %v1059_v45 = vld [vmem:[%s4330_s6 + $0x1d0] sm:$0xff]  ;;  %v3139_v14 = vcombine.high %v1012_v9, %v1016_v10 }
 0x105   : > { %2432 = vmatmul.mubr.bf16.gmra.mrb[8].mxu0 %v3144_v46  ;;  %2275 = vmatpush1.bf16.msra.mxu1 %v3632_v41  ;;  %v1057_v41 = vld [vmem:[%s4330_s6 + $0x1c0] sm:$0xff]  ;;  %v1063_v46 = vld [vmem:[%s4330_s6 + $0x1f0] sm:$0xff] }
 0x106   : > { %2501 = vmatpush1.bf16.msra.mxu0 %v3635_v42  ;;  %2276 = vmatprep.subr.bf16.mxu1 %v3640_v49  ;;  %v3172_v42 = vcombine.low %v1049_v25, %v1053_v28  ;;  %v3688_v49 = vld [vmem:[%s4332_s1 + $0x1d4] ss:$8 sps:$4 sm:$0xff]   ;;  %v3180_v58 = vcombine.low %v1057_v41, %v1061_v44  ;;  %v3184_v59 = vcombine.low %v1059_v45, %v1063_v46 }
 0x107   : > { %2502 = vmatprep.subr.bf16.mxu0 %v3643_v50  ;;  %2215 = vmatprep.mubr.bf16.mxu1 %v3149_v51  ;;  %v3691_v50 = vld [vmem:[%s4332_s1 + $0x3d4] ss:$8 sps:$4 sm:$0xff]   ;;  %v3181_v51 = vcombine.high %v1057_v41, %v1061_v44 }
 0x108   : > { %2441 = vmatprep.mubr.bf16.mxu0 %v3153_v52  ;;  %v3185_v52 = vcombine.high %v1059_v45, %v1063_v46  ;;  %v1028_v25 = vld [vmem:[%s4330_s6 + $0xd8] sm:$0xff] }
 0x109   : > { %2277 = vmatpush1.bf16.msra.mxu1 %v3638_v53  ;;  %v3686_v53 = vld [vmem:[%s4332_s1 + $0x1d0] ss:$8 sps:$4 sm:$0xff]  }
 0x10a   : > { %2503 = vmatpush1.bf16.msra.mxu0 %v3641_v54  ;;  %2278 = vmatprep.subr.bf16.mxu1 %v3646_v55  ;;  %v3689_v54 = vld [vmem:[%s4332_s1 + $0x3d0] ss:$8 sps:$4 sm:$0xff]   ;;  %v3694_v55 = vld [vmem:[%s4332_s1 + $0x1e4] ss:$8 sps:$4 sm:$0xff]  }
 0x10b   : > { %2504 = vmatprep.subr.bf16.mxu0 %v3649_v56  ;;  %v3697_v56 = vld [vmem:[%s4332_s1 + $0x3e4] ss:$8 sps:$4 sm:$0xff]   ;;  %v1044_v41 = vld [vmem:[%s4330_s6 + $0x158] sm:$0xff] }
 0x10c   : > { %2216 = vmatmul.mubr.bf16.gmra.mrb[12].mxu1 %v3148_v60  ;;  %v1006_v60 = vld [vmem:[%s4330_s6 + $0x28] sm:$0xff] }
 0x10d   : > { %2442 = vmatmul.mubr.bf16.gmra.mrb[12].mxu0 %v3152_v61  ;;  %2279 = vmatpush1.bf16.msra.mxu1 %v3644_v57  ;;  %v1002_v57 = vld [vmem:[%s4330_s6 + $0x8] sm:$0xff]  ;;  %v1004_v61 = vld [vmem:[%s4330_s6 + $0x18] sm:$0xff] }
 0x10e   : > { %2505 = vmatpush1.bf16.msra.mxu0 %v3647_v0  ;;  %2280 = vmatprep.subr.bf16.mxu1 %v3652_v1  ;;  %v3695_v0 = vld [vmem:[%s4332_s1 + $0x3e0] ss:$8 sps:$4 sm:$0xff]   ;;  %v3700_v1 = vld [vmem:[%s4332_s1 + $0x1f4] ss:$8 sps:$4 sm:$0xff]  }
 0x10f   : > { %2506 = vmatprep.subr.bf16.mxu0 %v3655_v2  ;;  %2225 = vmatprep.mubr.bf16.mxu1 %v3157_v3  ;;  %v3703_v2 = vld [vmem:[%s4332_s1 + $0x3f4] ss:$8 sps:$4 sm:$0xff]   ;;  %v3127_v3 = vcombine.high %v1002_v57, %v1006_v60 }
 0x110   : > { %2451 = vmatprep.mubr.bf16.mxu0 %v3161_v4  ;;  %v3131_v4 = vcombine.high %v1004_v61, %v1008_v62 }
 0x111   : > { %2281 = vmatpush1.bf16.msra.mxu1 %v3650_v5  ;;  %v3698_v5 = vld [vmem:[%s4332_s1 + $0x1f0] ss:$8 sps:$4 sm:$0xff]  }
 0x112   : > { %2507 = vmatpush1.bf16.msra.mxu0 %v3653_v6  ;;  %2282 = vmatprep.subr.bf16.mxu1 %v3658_v7  ;;  %v3701_v6 = vld [vmem:[%s4332_s1 + $0x3f0] ss:$8 sps:$4 sm:$0xff]   ;;  %v1010_v7 = vld [vmem:[%s4330_s6 + $0x48] sm:$0xff] }
 0x113   : > { %2508 = vmatprep.subr.bf16.mxu0 %v3661_v8  ;;  %v1014_v8 = vld [vmem:[%s4330_s6 + $0x68] sm:$0xff] }
 0x114   : > { %2226 = vmatmul.mubr.bf16.gmra.mrb[16].mxu1 %v3156_v11  ;;  %v3126_v11 = vcombine.low %v1002_v57, %v1006_v60  ;;  %v3135_v13 = vcombine.high %v1010_v7, %v1014_v8  ;;  %v1060_v57 = vld [vmem:[%s4330_s6 + $0x1d8] sm:$0xff] }
 0x115   : > { %2452 = vmatmul.mubr.bf16.gmra.mrb[16].mxu0 %v3160_v12  ;;  %2283 = vmatpush1.bf16.msra.mxu1 %v3656_v15  ;;  %v3130_v12 = vcombine.low %v1004_v61, %v1008_v62  ;;  %v1018_v15 = vld [vmem:[%s4330_s6 + $0x88] sm:$0xff] }
 0x116   : > { %2509 = vmatpush1.bf16.msra.mxu0 %v3659_v16  ;;  %2284 = vmatprep.subr.bf16.mxu1 %v3664_v17  ;;  %v1022_v16 = vld [vmem:[%s4330_s6 + $0xa8] sm:$0xff]  ;;  %v1020_v17 = vld [vmem:[%s4330_s6 + $0x98] sm:$0xff] }
 0x117   : > { %2510 = vmatprep.subr.bf16.mxu0 %v3667_v18  ;;  %2235 = vmatprep.mubr.bf16.mxu1 %v3165_v19  ;;  %v1024_v18 = vld [vmem:[%s4330_s6 + $0xb8] sm:$0xff]  ;;  %v3134_v19 = vcombine.low %v1010_v7, %v1014_v8 }
 0x118   : > { %2461 = vmatprep.mubr.bf16.mxu0 %v3169_v20  ;;  %v3138_v20 = vcombine.low %v1012_v9, %v1016_v10  ;;  %v3146_v28 = vcombine.low %v1020_v17, %v1024_v18  ;;  %v971_v10 = vld [vmem:[#allocation2 + $0x10] sm:$0xff] }
 0x119   : > { %2285 = vmatpush1.bf16.msra.mxu1 %v3662_v21  ;;  %v3143_v21 = vcombine.high %v1018_v15, %v1022_v16 }
 0x11a   : > { %2511 = vmatpush1.bf16.msra.mxu0 %v3665_v22  ;;  %2286 = vmatprep.subr.bf16.mxu1 %v3670_v23  ;;  %v3147_v22 = vcombine.high %v1020_v17, %v1024_v18  ;;  %v1026_v23 = vld [vmem:[%s4330_s6 + $0xc8] sm:$0xff] }
 0x11b   : > { %2512 = vmatprep.subr.bf16.mxu0 %v3673_v24  ;;  %v1030_v24 = vld [vmem:[%s4330_s6 + $0xe8] sm:$0xff] }
 0x11c   : > { %2236 = vmatmul.mubr.bf16.gmra.mrb[20].mxu1 %v3164_v26  ;;  %v1032_v26 = vld [vmem:[%s4330_s6 + $0xf8] sm:$0xff]  ;;  %v3151_v29 = vcombine.high %v1026_v23, %v1030_v24 }
 0x11d   : > { %2462 = vmatmul.mubr.bf16.gmra.mrb[20].mxu0 %v3168_v27  ;;  %2287 = vmatpush1.bf16.msra.mxu1 %v3668_v31  ;;  %v3142_v27 = vcombine.low %v1018_v15, %v1022_v16  ;;  %v3155_v30 = vcombine.high %v1028_v25, %v1032_v26  ;;  %v1034_v31 = vld [vmem:[%s4330_s6 + $0x108] sm:$0xff]  ;;  %v972_v15 = vld [vmem:[#allocation2 + $0x18] sm:$0xff] }
 0x11e   : > { %2513 = vmatpush1.bf16.msra.mxu0 %v3671_v32  ;;  %2288 = vmatprep.subr.bf16.mxu1 %v3676_v33  ;;  %v1038_v32 = vld [vmem:[%s4330_s6 + $0x128] sm:$0xff]  ;;  %v1036_v33 = vld [vmem:[%s4330_s6 + $0x118] sm:$0xff] }
 0x11f   : > { %2514 = vmatprep.subr.bf16.mxu0 %v3679_v34  ;;  %2245 = vmatprep.mubr.bf16.mxu1 %v3173_v35  ;;  %v1040_v34 = vld [vmem:[%s4330_s6 + $0x138] sm:$0xff]  ;;  %v3150_v35 = vcombine.low %v1026_v23, %v1030_v24 }
 0x120   : > { %2471 = vmatprep.mubr.bf16.mxu0 %v3177_v36  ;;  %v3154_v36 = vcombine.low %v1028_v25, %v1032_v26  ;;  %v3162_v44 = vcombine.low %v1036_v33, %v1040_v34  ;;  %v974_v26 = vld [vmem:[#allocation2 + $0x28] sm:$0xff] }
 0x121   : > { %2289 = vmatpush1.bf16.msra.mxu1 %v3674_v37  ;;  %v3159_v37 = vcombine.high %v1034_v31, %v1038_v32 }
 0x122   : > { %2515 = vmatpush1.bf16.msra.mxu0 %v3677_v38  ;;  %2290 = vmatprep.subr.bf16.mxu1 %v3682_v39  ;;  %v3163_v38 = vcombine.high %v1036_v33, %v1040_v34  ;;  %v1042_v39 = vld [vmem:[%s4330_s6 + $0x148] sm:$0xff] }
 0x123   : > { %2516 = vmatprep.subr.bf16.mxu0 %v3685_v40  ;;  %v1046_v40 = vld [vmem:[%s4330_s6 + $0x168] sm:$0xff] }
 0x124   : > { %2246 = vmatmul.mubr.bf16.gmra.mrb[24].mxu1 %v3172_v42  ;;  %v1048_v42 = vld [vmem:[%s4330_s6 + $0x178] sm:$0xff]  ;;  %v3167_v45 = vcombine.high %v1042_v39, %v1046_v40 }
 0x125   : > { %2472 = vmatmul.mubr.bf16.gmra.mrb[24].mxu0 %v3176_v43  ;;  %2291 = vmatpush1.bf16.msra.mxu1 %v3680_v47  ;;  %v3158_v43 = vcombine.low %v1034_v31, %v1038_v32  ;;  %v3171_v46 = vcombine.high %v1044_v41, %v1048_v42  ;;  %v1050_v47 = vld [vmem:[%s4330_s6 + $0x188] sm:$0xff] }
 0x126   : > { %2517 = vmatpush1.bf16.msra.mxu0 %v3683_v48  ;;  %2292 = vmatprep.subr.bf16.mxu1 %v3688_v49  ;;  %v1054_v48 = vld [vmem:[%s4330_s6 + $0x1a8] sm:$0xff]  ;;  %v1052_v49 = vld [vmem:[%s4330_s6 + $0x198] sm:$0xff] }
 0x127   : > { %2518 = vmatprep.subr.bf16.mxu0 %v3691_v50  ;;  %2255 = vmatprep.mubr.bf16.mxu1 %v3181_v51  ;;  %v1056_v50 = vld [vmem:[%s4330_s6 + $0x1b8] sm:$0xff]  ;;  %v3166_v51 = vcombine.low %v1042_v39, %v1046_v40 }
 0x128   : > { %2481 = vmatprep.mubr.bf16.mxu0 %v3185_v52  ;;  %v3170_v52 = vcombine.low %v1044_v41, %v1048_v42  ;;  %v3178_v60 = vcombine.low %v1052_v49, %v1056_v50  ;;  %v977_v42 = vld [vmem:[#allocation2 + $0x40] sm:$0xff] }
 0x129   : > { %2293 = vmatpush1.bf16.msra.mxu1 %v3686_v53  ;;  %v3175_v53 = vcombine.high %v1050_v47, %v1054_v48 }
 0x12a   : > { %2519 = vmatpush1.bf16.msra.mxu0 %v3689_v54  ;;  %2294 = vmatprep.subr.bf16.mxu1 %v3694_v55  ;;  %v3179_v54 = vcombine.high %v1052_v49, %v1056_v50  ;;  %v1058_v55 = vld [vmem:[%s4330_s6 + $0x1c8] sm:$0xff]  ;;  %v979_v50 = vld [vmem:[#allocation2 + $0x50] sm:$0xff] }
 0x12b   : > { %2520 = vmatprep.subr.bf16.mxu0 %v3697_v56  ;;  %v1062_v56 = vld [vmem:[%s4330_s6 + $0x1e8] sm:$0xff] }
 0x12c   : > { %2256 = vmatmul.mubr.bf16.gmra.mrb[28].mxu1 %v3180_v58  ;;  %v1064_v58 = vld [vmem:[%s4330_s6 + $0x1f8] sm:$0xff]  ;;  %v3183_v61 = vcombine.high %v1058_v55, %v1062_v56 }
 0x12d   : > { %2482 = vmatmul.mubr.bf16.gmra.mrb[28].mxu0 %v3184_v59  ;;  %2295 = vmatpush1.bf16.msra.mxu1 %v3692_v63  ;;  %v3174_v59 = vcombine.low %v1050_v47, %v1054_v48  ;;  %v3187_v62 = vcombine.high %v1060_v57, %v1064_v58  ;;  %v3182_v63 = vcombine.low %v1058_v55, %v1062_v56  ;;  %v980_v55 = vld [vmem:[#allocation2 + $0x58] sm:$0xff] }
 0x12e   : > { %2521 = vmatpush1.bf16.msra.mxu0 %v3695_v0  ;;  %2296 = vmatprep.subr.bf16.mxu1 %v3700_v1  ;;  %v3186_v0 = vcombine.low %v1060_v57, %v1064_v58 }
 0x12f   : > { %2522 = vmatprep.subr.bf16.mxu0 %v3703_v2  ;;  %2298 = vmatprep.mubr.bf16.mxu1 %v3127_v3  ;;  %v969_v2 = vld [vmem:[#allocation2] sm:$0xff] }
 0x130   : > { %2524 = vmatprep.mubr.bf16.mxu0 %v3131_v4 }
 0x131   : > { %2297 = vmatpush1.bf16.msra.mxu1 %v3698_v5 }
 0x132   : > { %2523 = vmatpush1.bf16.msra.mxu0 %v3701_v6  ;;  %v970_v6 = vld [vmem:[#allocation2 + $0x8] sm:$0xff] }
 0x134   : > { %2299 = vmatmul.mubr.bf16.vlgmr.msra.gmra.mrb[0].mxu1 %v3126_v11 }
 0x135   : > { %2525 = vmatmul.mubr.bf16.vlgmr.msra.gmra.mrb[0].mxu0 %v3130_v12  ;;  %2308 = vmatprep.mubr.bf16.mxu1 %v3135_v13 }
 0x136   : > { %2534 = vmatprep.mubr.bf16.mxu0 %v3139_v14 }
 0x13c   : > { %2309 = vmatmul.mubr.bf16.gmra.mrb[4].mxu1 %v3134_v19 }
 0x13d   : > { %2535 = vmatmul.mubr.bf16.gmra.mrb[4].mxu0 %v3138_v20  ;;  %2318 = vmatprep.mubr.bf16.mxu1 %v3143_v21 }
 0x13e   : > { %2544 = vmatprep.mubr.bf16.mxu0 %v3147_v22  ;;  %v973_v22 = vld [vmem:[#allocation2 + $0x20] sm:$0xff] }
 0x144   : > { %2319 = vmatmul.mubr.bf16.gmra.mrb[8].mxu1 %v3142_v27 }
 0x145   : > { %2545 = vmatmul.mubr.bf16.gmra.mrb[8].mxu0 %v3146_v28  ;;  %2328 = vmatprep.mubr.bf16.mxu1 %v3151_v29 }
 0x146   : > { %2554 = vmatprep.mubr.bf16.mxu0 %v3155_v30  ;;  %v975_v30 = vld [vmem:[#allocation2 + $0x30] sm:$0xff] }
 0x14c   : > { %2329 = vmatmul.mubr.bf16.gmra.mrb[12].mxu1 %v3150_v35  ;;  %v976_v35 = vld [vmem:[#allocation2 + $0x38] sm:$0xff] }
 0x14d   : > { %2555 = vmatmul.mubr.bf16.gmra.mrb[12].mxu0 %v3154_v36  ;;  %2338 = vmatprep.mubr.bf16.mxu1 %v3159_v37 }
 0x14e   : > { %2564 = vmatprep.mubr.bf16.mxu0 %v3163_v38 }
 0x154   : > { %2339 = vmatmul.mubr.bf16.gmra.mrb[16].mxu1 %v3158_v43 }
 0x155   : > { %2565 = vmatmul.mubr.bf16.gmra.mrb[16].mxu0 %v3162_v44  ;;  %2348 = vmatprep.mubr.bf16.mxu1 %v3167_v45 }
 0x156   : > { %2574 = vmatprep.mubr.bf16.mxu0 %v3171_v46  ;;  %v978_v46 = vld [vmem:[#allocation2 + $0x48] sm:$0xff] }
 0x15c   : > { %2349 = vmatmul.mubr.bf16.gmra.mrb[20].mxu1 %v3166_v51 }
 0x15d   : > { %2575 = vmatmul.mubr.bf16.gmra.mrb[20].mxu0 %v3170_v52  ;;  %2358 = vmatprep.mubr.bf16.mxu1 %v3175_v53 }
 0x15e   : > { %2584 = vmatprep.mubr.bf16.mxu0 %v3179_v54 }
 0x164   : > { %2359 = vmatmul.mubr.bf16.gmra.mrb[24].mxu1 %v3174_v59 }
 0x165   : > { %2585 = vmatmul.mubr.bf16.gmra.mrb[24].mxu0 %v3178_v60  ;;  %2368 = vmatprep.mubr.bf16.mxu1 %v3183_v61 }
 0x166   : > { %2594 = vmatprep.mubr.bf16.mxu0 %v3187_v62  ;;  %v981_v62 = vld [vmem:[#allocation2 + $0x60] sm:$0xff] }
 0x16c   : > { %2369 = vmatmul.mubr.bf16.gmra.mrb[28].mxu1 %v3182_v63 }
 0x16d   : > { %2595 = vmatmul.mubr.bf16.gmra.mrb[28].mxu0 %v3186_v0 }
 0x207   : > { %v2300_v1 = vpop.f32.mrb[0].mxu1 }
 0x208   : > { %v2526_v3 = vpop.f32.mrb[0].mxu0  ;;  %v2302_v5 = vpop.f32.mrb[1].mxu1 }
 0x209   : > { %v3327_v4 = vadd.f32 %v2526_v3, %v2300_v1  ;;  %v2528_v7 = vpop.f32.mrb[1].mxu0  ;;  %v2304_v9 = vpop.f32.mrb[2].mxu1 }
 0x20a   : > { %v3328_v8 = vadd.f32 %v2528_v7, %v2302_v5  ;;  %v2530_v11 = vpop.f32.mrb[2].mxu0  ;;  %v2306_v14 = vpop.f32.mrb[3].mxu1 }
 0x20b   : > { %v2605_v12 = vadd.f32 %v3327_v4, %v969_v2  ;;  %v3329_v13 = vadd.f32 %v2530_v11, %v2304_v9  ;;  %v2532_v16 = vpop.f32.mrb[3].mxu0  ;;  %v982_v2 = vld [vmem:[#allocation2 + $0x68] sm:$0xff]  ;;  %v984_v11 = vld [vmem:[#allocation2 + $0x78] sm:$0xff] }
 0x20c   : > { %v2606_v17 = vadd.f32 %v3328_v8, %v970_v6  ;;  %v3330_v18 = vadd.f32 %v2532_v16, %v2306_v14  ;;  %v983_v6 = vld [vmem:[#allocation2 + $0x70] sm:$0xff] }
 0x20d   : > { %2637 = vst [vmem:[#allocation2] sm:$0xff] %v2605_v12  ;;  %v2607_v19 = vadd.f32 %v3329_v13, %v971_v10 }
 0x20e   : > { %2638 = vst [vmem:[#allocation2 + $0x8] sm:$0xff] %v2606_v17  ;;  %v2608_v20 = vadd.f32 %v3330_v18, %v972_v15  ;;  %v985_v18 = vld [vmem:[#allocation2 + $0x80] sm:$0xff] }
 0x20f   : > { %2639 = vst [vmem:[#allocation2 + $0x10] sm:$0xff] %v2607_v19  ;;  %v2310_v21 = vpop.f32.mrb[4].mxu1 }
 0x210   : > { %2640 = vst [vmem:[#allocation2 + $0x18] sm:$0xff] %v2608_v20  ;;  %v2536_v23 = vpop.f32.mrb[4].mxu0  ;;  %v2312_v25 = vpop.f32.mrb[5].mxu1 }
 0x211   : > { %v3331_v24 = vadd.f32 %v2536_v23, %v2310_v21  ;;  %v2538_v27 = vpop.f32.mrb[5].mxu0  ;;  %v2314_v29 = vpop.f32.mrb[6].mxu1 }
 0x212   : > { %v3332_v28 = vadd.f32 %v2538_v27, %v2312_v25  ;;  %v2540_v31 = vpop.f32.mrb[6].mxu0  ;;  %v2316_v34 = vpop.f32.mrb[7].mxu1 }
 0x213   : > { %v2609_v32 = vadd.f32 %v3331_v24, %v973_v22  ;;  %v3333_v33 = vadd.f32 %v2540_v31, %v2314_v29  ;;  %v2542_v36 = vpop.f32.mrb[7].mxu0  ;;  %v986_v22 = vld [vmem:[#allocation2 + $0x88] sm:$0xff]  ;;  %v988_v31 = vld [vmem:[#allocation2 + $0x98] sm:$0xff] }
 0x214   : > { %v2610_v37 = vadd.f32 %v3332_v28, %v974_v26  ;;  %v3334_v38 = vadd.f32 %v2542_v36, %v2316_v34  ;;  %v987_v26 = vld [vmem:[#allocation2 + $0x90] sm:$0xff] }
 0x215   : > { %2641 = vst [vmem:[#allocation2 + $0x20] sm:$0xff] %v2609_v32  ;;  %v2611_v39 = vadd.f32 %v3333_v33, %v975_v30 }
 0x216   : > { %2642 = vst [vmem:[#allocation2 + $0x28] sm:$0xff] %v2610_v37  ;;  %v2612_v40 = vadd.f32 %v3334_v38, %v976_v35  ;;  %v989_v38 = vld [vmem:[#allocation2 + $0xa0] sm:$0xff] }
 0x217   : > { %2643 = vst [vmem:[#allocation2 + $0x30] sm:$0xff] %v2611_v39  ;;  %v2320_v41 = vpop.f32.mrb[8].mxu1 }
 0x218   : > { %2644 = vst [vmem:[#allocation2 + $0x38] sm:$0xff] %v2612_v40  ;;  %v2546_v43 = vpop.f32.mrb[8].mxu0  ;;  %v2322_v45 = vpop.f32.mrb[9].mxu1 }
 0x219   : > { %v3335_v44 = vadd.f32 %v2546_v43, %v2320_v41  ;;  %v2548_v47 = vpop.f32.mrb[9].mxu0  ;;  %v2324_v49 = vpop.f32.mrb[10].mxu1 }
 0x21a   : > { %v3336_v48 = vadd.f32 %v2548_v47, %v2322_v45  ;;  %v2550_v51 = vpop.f32.mrb[10].mxu0  ;;  %v2326_v54 = vpop.f32.mrb[11].mxu1 }
 0x21b   : > { %v2613_v52 = vadd.f32 %v3335_v44, %v977_v42  ;;  %v3337_v53 = vadd.f32 %v2550_v51, %v2324_v49  ;;  %v2552_v56 = vpop.f32.mrb[11].mxu0  ;;  %v990_v42 = vld [vmem:[#allocation2 + $0xa8] sm:$0xff]  ;;  %v992_v51 = vld [vmem:[#allocation2 + $0xb8] sm:$0xff] }
 0x21c   : > { %v2614_v57 = vadd.f32 %v3336_v48, %v978_v46  ;;  %v3338_v58 = vadd.f32 %v2552_v56, %v2326_v54  ;;  %v991_v46 = vld [vmem:[#allocation2 + $0xb0] sm:$0xff] }
 0x21d   : > { %2645 = vst [vmem:[#allocation2 + $0x40] sm:$0xff] %v2613_v52  ;;  %v2615_v59 = vadd.f32 %v3337_v53, %v979_v50 }
 0x21e   : > { %2646 = vst [vmem:[#allocation2 + $0x48] sm:$0xff] %v2614_v57  ;;  %v2616_v60 = vadd.f32 %v3338_v58, %v980_v55  ;;  %v993_v58 = vld [vmem:[#allocation2 + $0xc0] sm:$0xff] }
 0x21f   : > { %2647 = vst [vmem:[#allocation2 + $0x50] sm:$0xff] %v2615_v59  ;;  %v2330_v61 = vpop.f32.mrb[12].mxu1 }
 0x220   : > { %2648 = vst [vmem:[#allocation2 + $0x58] sm:$0xff] %v2616_v60  ;;  %v2556_v63 = vpop.f32.mrb[12].mxu0  ;;  %v2332_v1 = vpop.f32.mrb[13].mxu1 }
 0x221   : > { %v3339_v0 = vadd.f32 %v2556_v63, %v2330_v61  ;;  %v2558_v3 = vpop.f32.mrb[13].mxu0  ;;  %v2334_v5 = vpop.f32.mrb[14].mxu1 }
 0x222   : > { %v3340_v4 = vadd.f32 %v2558_v3, %v2332_v1  ;;  %v2560_v7 = vpop.f32.mrb[14].mxu0  ;;  %v2336_v10 = vpop.f32.mrb[15].mxu1 }
 0x223   : > { %v2617_v8 = vadd.f32 %v3339_v0, %v981_v62  ;;  %v3341_v9 = vadd.f32 %v2560_v7, %v2334_v5  ;;  %v2562_v12 = vpop.f32.mrb[15].mxu0  ;;  %v994_v62 = vld [vmem:[#allocation2 + $0xc8] sm:$0xff]  ;;  %v996_v7 = vld [vmem:[#allocation2 + $0xd8] sm:$0xff] }
 0x224   : > { %v2618_v13 = vadd.f32 %v3340_v4, %v982_v2  ;;  %v3342_v14 = vadd.f32 %v2562_v12, %v2336_v10  ;;  %v995_v2 = vld [vmem:[#allocation2 + $0xd0] sm:$0xff] }
 0x225   : > { %2649 = vst [vmem:[#allocation2 + $0x60] sm:$0xff] %v2617_v8  ;;  %v2619_v15 = vadd.f32 %v3341_v9, %v983_v6 }
 0x226   : > { %2650 = vst [vmem:[#allocation2 + $0x68] sm:$0xff] %v2618_v13  ;;  %v2620_v16 = vadd.f32 %v3342_v14, %v984_v11  ;;  %v997_v14 = vld [vmem:[#allocation2 + $0xe0] sm:$0xff] }
 0x227   : > { %2651 = vst [vmem:[#allocation2 + $0x70] sm:$0xff] %v2619_v15  ;;  %v2340_v17 = vpop.f32.mrb[16].mxu1 }
 0x228   : > { %2652 = vst [vmem:[#allocation2 + $0x78] sm:$0xff] %v2620_v16  ;;  %v2566_v19 = vpop.f32.mrb[16].mxu0  ;;  %v2342_v21 = vpop.f32.mrb[17].mxu1 }
 0x229   : > { %v3343_v20 = vadd.f32 %v2566_v19, %v2340_v17  ;;  %v2568_v23 = vpop.f32.mrb[17].mxu0  ;;  %v2344_v25 = vpop.f32.mrb[18].mxu1 }
 0x22a   : > { %v3344_v24 = vadd.f32 %v2568_v23, %v2342_v21  ;;  %v2570_v27 = vpop.f32.mrb[18].mxu0  ;;  %v2346_v30 = vpop.f32.mrb[19].mxu1 }
 0x22b   : > { %v2621_v28 = vadd.f32 %v3343_v20, %v985_v18  ;;  %v3345_v29 = vadd.f32 %v2570_v27, %v2344_v25  ;;  %v2572_v32 = vpop.f32.mrb[19].mxu0  ;;  %v998_v18 = vld [vmem:[#allocation2 + $0xe8] sm:$0xff]  ;;  %v1000_v27 = vld [vmem:[#allocation2 + $0xf8] sm:$0xff] }
 0x22c   : > { %v2622_v33 = vadd.f32 %v3344_v24, %v986_v22  ;;  %v3346_v34 = vadd.f32 %v2572_v32, %v2346_v30  ;;  %v999_v22 = vld [vmem:[#allocation2 + $0xf0] sm:$0xff] }
 0x22d   : > { %2653 = vst [vmem:[#allocation2 + $0x80] sm:$0xff] %v2621_v28  ;;  %v2623_v35 = vadd.f32 %v3345_v29, %v987_v26 }
 0x22e   : > { %2654 = vst [vmem:[#allocation2 + $0x88] sm:$0xff] %v2622_v33  ;;  %v2624_v36 = vadd.f32 %v3346_v34, %v988_v31  ;;  %v2707_v33 = vlaneseq (!%p3316_p5) }
 0x22f   : > { %2655 = vst [vmem:[#allocation2 + $0x90] sm:$0xff] %v2623_v35  ;;  %v2350_v37 = vpop.f32.mrb[20].mxu1  ;;  %v2673_v35 = vld [vmem:[#allocation2] sm:$0xff] (!%p3316_p5) }
 0x230   : > { %2656 = vst [vmem:[#allocation2 + $0x98] sm:$0xff] %v2624_v36  ;;  %v2576_v39 = vpop.f32.mrb[20].mxu0  ;;  %v2352_v41 = vpop.f32.mrb[21].mxu1  ;;  %v2708_v34 = vshrl.u32 (!%p3316_p5), %v2707_v33, 7 }
 0x231   : > { %v3347_v40 = vadd.f32 %v2576_v39, %v2350_v37  ;;  %v2578_v43 = vpop.f32.mrb[21].mxu0  ;;  %v2354_v45 = vpop.f32.mrb[22].mxu1  ;;  %v2705_v36 = vld [vmem:[%s4328_s4] ss:$8 sm:$0x3] (!%p3316_p5) }
 0x232   : > { %v3348_v44 = vadd.f32 %v2578_v43, %v2352_v41  ;;  %v2580_v47 = vpop.f32.mrb[22].mxu0  ;;  %v2356_v50 = vpop.f32.mrb[23].mxu1  ;;  %v3317_v37 = vld [vmem:[%s4328_s4 + $0x1] ss:$8 sm:$0x3] (!%p3316_p5)  ;;  %v2713_v41 = vsub.s32 (!%p3316_p5), 1, %v2708_v34 }
 0x233   : > { %v2625_v48 = vadd.f32 %v3347_v40, %v989_v38  ;;  %v3349_v49 = vadd.f32 %v2580_v47, %v2354_v45  ;;  %v2582_v52 = vpop.f32.mrb[23].mxu0  ;;  %v2709_v38 = vsub.s32 (!%p3316_p5), 0, %v2708_v34  ;;  %v3318_v39 = vld [vmem:[%s4328_s4 + $0x2] ss:$8 sm:$0x3] (!%p3316_p5)  ;;  %v2676_v43 = vld [vmem:[#allocation2 + $0x18] sm:$0xff] (!%p3316_p5) }
 0x234   : > { %v2626_v53 = vadd.f32 %v3348_v44, %v990_v42  ;;  %v3350_v54 = vadd.f32 %v2582_v52, %v2356_v50  ;;  %v2674_v40 = vld [vmem:[#allocation2 + $0x8] sm:$0xff] (!%p3316_p5)  ;;  %v2675_v42 = vld [vmem:[#allocation2 + $0x10] sm:$0xff] (!%p3316_p5)  ;;  %v2677_v44 = vld [vmem:[#allocation2 + $0x20] sm:$0xff] (!%p3316_p5)  ;;  %v4541_v52 = vrot.slane (!%p3316_p5), %v3317_v37, %v2713_v41 }
 0x235   : > { %2657 = vst [vmem:[#allocation2 + $0xa0] sm:$0xff] %v2625_v48  ;;  %v2627_v55 = vadd.f32 %v3349_v49, %v991_v46  ;;  %v4533_v45 = vrot.slane (!%p3316_p5), %v2705_v36, %v2709_v38  ;;  %v4535_v46 = vrot.slane (!%p3316_p5), %v2705_v36, %v2713_v41  ;;  %v2678_v47 = vld [vmem:[#allocation2 + $0x28] sm:$0xff] (!%p3316_p5)  ;;  %v2679_v48 = vld [vmem:[#allocation2 + $0x30] sm:$0xff] (!%p3316_p5)  ;;  %v2680_v49 = vld [vmem:[#allocation2 + $0x38] sm:$0xff] (!%p3316_p5)  ;;  %v4537_v50 = vrot.slane (!%p3316_p5), %v3317_v37, %v2709_v38 }
 0x236   : > { %2658 = vst [vmem:[#allocation2 + $0xa8] sm:$0xff] %v2626_v53  ;;  %v2628_v56 = vadd.f32 %v3350_v54, %v992_v51  ;;  %v4539_v51 = vrot.slane (!%p3316_p5), %v3318_v39, %v2709_v38  ;;  %v4543_v53 = vrot.slane (!%p3316_p5), %v3318_v39, %v2713_v41 }
 0x237   : > { %2659 = vst [vmem:[#allocation2 + $0xb0] sm:$0xff] %v2627_v55  ;;  %v2360_v57 = vpop.f32.mrb[24].mxu1  ;;  %v2717_v54 = vadd.f32 (!%p3316_p5), %v4533_v45, %v2673_v35  ;;  %v2718_v55 = vadd.f32 (!%p3316_p5), %v4535_v46, %v2674_v40 }
 0x238   : > { %2660 = vst [vmem:[#allocation2 + $0xb8] sm:$0xff] %v2628_v56  ;;  %v2586_v59 = vpop.f32.mrb[24].mxu0  ;;  %v2362_v61 = vpop.f32.mrb[25].mxu1  ;;  %v2719_v56 = vadd.f32 (!%p3316_p5), %v4533_v45, %v2675_v42 }
 0x239   : > { %v3351_v60 = vadd.f32 %v2586_v59, %v2360_v57  ;;  %v2588_v63 = vpop.f32.mrb[25].mxu0  ;;  %v2364_v1 = vpop.f32.mrb[26].mxu1  ;;  %v2720_v57 = vadd.f32 (!%p3316_p5), %v4535_v46, %v2676_v43  ;;  %v2722_v59 = vadd.f32 (!%p3316_p5), %v4535_v46, %v2678_v47 }
 0x23a   : > { %v3352_v0 = vadd.f32 %v2588_v63, %v2362_v61  ;;  %v2590_v3 = vpop.f32.mrb[26].mxu0  ;;  %v2366_v6 = vpop.f32.mrb[27].mxu1  ;;  %v2724_v61 = vadd.f32 (!%p3316_p5), %v4535_v46, %v2680_v49  ;;  %v2750_v63 = vmax.f32 (!%p3316_p5), %v2718_v55, 0.0 }
 0x23b   : > { %v2629_v4 = vadd.f32 %v3351_v60, %v993_v58  ;;  %v3353_v5 = vadd.f32 %v2590_v3, %v2364_v1  ;;  %v2592_v8 = vpop.f32.mrb[27].mxu0  ;;  %v2721_v58 = vadd.f32 (!%p3316_p5), %v4533_v45, %v2677_v44  ;;  %v2723_v60 = vadd.f32 (!%p3316_p5), %v4533_v45, %v2679_v48 }
 0x23c   : > { %v2630_v9 = vadd.f32 %v3352_v0, %v994_v62  ;;  %v3354_v10 = vadd.f32 %v2592_v8, %v2366_v6  ;;  %v2749_v62 = vmax.f32 (!%p3316_p5), %v2717_v54, 0.0  ;;  %v2751_v0 = vmax.f32 (!%p3316_p5), %v2719_v56, 0.0  ;;  %v2689_v56 = vld [vmem:[#allocation2 + $0x80] sm:$0xff] (!%p3316_p5) }
 0x23d   : > { %2661 = vst [vmem:[#allocation2 + $0xc0] sm:$0xff] %v2629_v4  ;;  %v2631_v11 = vadd.f32 %v3353_v5, %v995_v2  ;;  %v2752_v1 = vmax.f32 (!%p3316_p5), %v2720_v57, 0.0  ;;  %v2753_v2 = vmax.f32 (!%p3316_p5), %v2721_v58, 0.0  ;;  %v2754_v3 = vmax.f32 (!%p3316_p5), %v2722_v59, 0.0  ;;  %v2690_v57 = vld [vmem:[#allocation2 + $0x88] sm:$0xff] (!%p3316_p5) }
 0x23e   : > { %2662 = vst [vmem:[#allocation2 + $0xc8] sm:$0xff] %v2630_v9  ;;  %v2632_v12 = vadd.f32 %v3354_v10, %v996_v7  ;;  %v2755_v4 = vmax.f32 (!%p3316_p5), %v2723_v60, 0.0  ;;  %v2756_v5 = vmax.f32 (!%p3316_p5), %v2724_v61, 0.0  ;;  %v2794_v6 = vmul.f32 (!%p3316_p5), %v4537_v50, %v2749_v62  ;;  %v2681_v10 = vld [vmem:[#allocation2 + $0x40] sm:$0xff] (!%p3316_p5)  ;;  %v2691_v62 = vld [vmem:[#allocation2 + $0x90] sm:$0xff] (!%p3316_p5) }
 0x23f   : > { %2663 = vst [vmem:[#allocation2 + $0xd0] sm:$0xff] %v2631_v11  ;;  %v2370_v13 = vpop.f32.mrb[28].mxu1  ;;  %v2795_v7 = vmul.f32 (!%p3316_p5), %v4541_v52, %v2750_v63  ;;  %v2796_v8 = vmul.f32 (!%p3316_p5), %v4537_v50, %v2751_v0  ;;  %v2797_v9 = vmul.f32 (!%p3316_p5), %v4541_v52, %v2752_v1  ;;  %v2682_v11 = vld [vmem:[#allocation2 + $0x48] sm:$0xff] (!%p3316_p5)  ;;  %v2692_v63 = vld [vmem:[#allocation2 + $0x98] sm:$0xff] (!%p3316_p5)  ;;  %v2693_v0 = vld [vmem:[#allocation2 + $0xa0] sm:$0xff] (!%p3316_p5) }
 0x240   : > { %2664 = vst [vmem:[#allocation2 + $0xd8] sm:$0xff] %v2632_v12  ;;  %v2596_v15 = vpop.f32.mrb[28].mxu0  ;;  %v2372_v17 = vpop.f32.mrb[29].mxu1  ;;  %v2798_v12 = vmul.f32 (!%p3316_p5), %v4537_v50, %v2753_v2 }
 0x241   : > { %v3355_v16 = vadd.f32 %v2596_v15, %v2370_v13  ;;  %v2598_v19 = vpop.f32.mrb[29].mxu0  ;;  %v2374_v21 = vpop.f32.mrb[30].mxu1  ;;  %v2799_v13 = vmul.f32 (!%p3316_p5), %v4541_v52, %v2754_v3  ;;  %v2801_v15 = vmul.f32 (!%p3316_p5), %v4541_v52, %v2756_v5  ;;  %v2694_v5 = vld [vmem:[#allocation2 + $0xa8] sm:$0xff] (!%p3316_p5) }
 0x242   : > { %v3356_v20 = vadd.f32 %v2598_v19, %v2372_v17  ;;  %v2600_v23 = vpop.f32.mrb[30].mxu0  ;;  %v2376_v26 = vpop.f32.mrb[31].mxu1  ;;  %2672 = sbr.rel (%p3316_p5) target bundleno = 612 (0x264), region = 101  ;;  %v2684_v17 = vld [vmem:[#allocation2 + $0x58] sm:$0xff] (!%p3316_p5)  ;;  %v2839_v19 = vadd.f32 (!%p3316_p5), %v4539_v51, %v2794_v6  ;;  %v2695_v6 = vld [vmem:[#allocation2 + $0xb0] sm:$0xff] (!%p3316_p5) }
 0x243   : > { %v2633_v24 = vadd.f32 %v3355_v16, %v997_v14  ;;  %v3357_v25 = vadd.f32 %v2600_v23, %v2374_v21  ;;  %v2602_v28 = vpop.f32.mrb[31].mxu0  ;;  %v2800_v14 = vmul.f32 (!%p3316_p5), %v4537_v50, %v2755_v4  ;;  %v2683_v16 = vld [vmem:[#allocation2 + $0x50] sm:$0xff] (!%p3316_p5)  ;;  %v2841_v21 = vadd.f32 (!%p3316_p5), %v4539_v51, %v2796_v8  ;;  %v2686_v23 = vld [vmem:[#allocation2 + $0x68] sm:$0xff] (!%p3316_p5) }
 0x244   : > { %v2634_v29 = vadd.f32 %v3356_v20, %v998_v18  ;;  %v3358_v30 = vadd.f32 %v2602_v28, %v2376_v26  ;;  %v2685_v18 = vld [vmem:[#allocation2 + $0x60] sm:$0xff] (!%p3316_p5)  ;;  %v2840_v20 = vadd.f32 (!%p3316_p5), %v4543_v53, %v2795_v7  ;;  %v2843_v26 = vadd.f32 (!%p3316_p5), %v4539_v51, %v2798_v12  ;;  %2871 = vst [vmem:[%s4334_s24] sm:$0xff] (!%p3316_p5), %v2839_v19  ;;  %v2696_v7 = vld [vmem:[#allocation2 + $0xb8] sm:$0xff] (!%p3316_p5) }
 0x245   : > { %2665 = vst [vmem:[#allocation2 + $0xe0] sm:$0xff] %v2633_v24  ;;  %v2635_v31 = vadd.f32 %v3357_v25, %v999_v22  ;;  %v2842_v22 = vadd.f32 (!%p3316_p5), %v4543_v53, %v2797_v9  ;;  %v2687_v24 = vld [vmem:[#allocation2 + $0x70] sm:$0xff] (!%p3316_p5)  ;;  %v2688_v25 = vld [vmem:[#allocation2 + $0x78] sm:$0xff] (!%p3316_p5)  ;;  %v2845_v28 = vadd.f32 (!%p3316_p5), %v4539_v51, %v2800_v14  ;;  %2873 = vst [vmem:[%s4334_s24 + $0x10] sm:$0xff] (!%p3316_p5), %v2841_v21 }
 0x246   : > { %2666 = vst [vmem:[#allocation2 + $0xe8] sm:$0xff] %v2634_v29  ;;  %v2636_v32 = vadd.f32 %v3358_v30, %v1000_v27  ;;  %v2844_v27 = vadd.f32 (!%p3316_p5), %v4543_v53, %v2799_v13  ;;  %v2846_v29 = vadd.f32 (!%p3316_p5), %v4543_v53, %v2801_v15  ;;  %2872 = vst [vmem:[%s4334_s24 + $0x8] sm:$0xff] (!%p3316_p5), %v2840_v20 }
 0x247   : > { %2667 = vst [vmem:[#allocation2 + $0xf0] sm:$0xff] %v2635_v31  ;;  %2874 = vst [vmem:[%s4334_s24 + $0x18] sm:$0xff] (!%p3316_p5), %v2842_v22  ;;  %v2725_v30 = vadd.f32 (!%p3316_p5), %v4533_v45, %v2681_v10  ;;  %v2726_v31 = vadd.f32 (!%p3316_p5), %v4535_v46, %v2682_v11  ;;  %v2728_v33 = vadd.f32 (!%p3316_p5), %v4535_v46, %v2684_v17 }
 0x248   : > { %2668 = vst [vmem:[#allocation2 + $0xf8] sm:$0xff] %v2636_v32  ;;  %v2727_v32 = vadd.f32 (!%p3316_p5), %v4533_v45, %v2683_v16  ;;  %2875 = vst [vmem:[%s4334_s24 + $0x20] sm:$0xff] (!%p3316_p5), %v2843_v26  ;;  %v2729_v34 = vadd.f32 (!%p3316_p5), %v4533_v45, %v2685_v18  ;;  %v2730_v35 = vadd.f32 (!%p3316_p5), %v4535_v46, %v2686_v23 }
 0x249   : > { %2876 = vst [vmem:[%s4334_s24 + $0x28] sm:$0xff] %v2844_v27  ;;  %2877 = vst [vmem:[%s4334_s24 + $0x30] sm:$0xff] %v2845_v28  ;;  %v2731_v36 = vadd.f32 %v4533_v45, %v2687_v24  ;;  %v2732_v37 = vadd.f32 %v4535_v46, %v2688_v25  ;;  %v2757_v38 = vmax.f32 %v2725_v30, 0.0  ;;  %v2758_v39 = vmax.f32 %v2726_v31, 0.0 }
 0x24a   : > { %2878 = vst [vmem:[%s4334_s24 + $0x38] sm:$0xff] %v2846_v29  ;;  %v2759_v40 = vmax.f32 %v2727_v32, 0.0  ;;  %v2760_v41 = vmax.f32 %v2728_v33, 0.0  ;;  %v2761_v42 = vmax.f32 %v2729_v34, 0.0  ;;  %v2762_v43 = vmax.f32 %v2730_v35, 0.0  ;;  %v2697_v32 = vld [vmem:[#allocation2 + $0xc0] sm:$0xff] }
 0x24b   : > { %v2763_v44 = vmax.f32 %v2731_v36, 0.0  ;;  %v2764_v47 = vmax.f32 %v2732_v37, 0.0  ;;  %v2802_v48 = vmul.f32 %v4537_v50, %v2757_v38  ;;  %v2803_v49 = vmul.f32 %v4541_v52, %v2758_v39  ;;  %v2698_v33 = vld [vmem:[#allocation2 + $0xc8] sm:$0xff]  ;;  %v2699_v38 = vld [vmem:[#allocation2 + $0xd0] sm:$0xff]  ;;  %v2700_v39 = vld [vmem:[#allocation2 + $0xd8] sm:$0xff] }
 0x24c   : > { %v2804_v54 = vmul.f32 %v4537_v50, %v2759_v40  ;;  %v2805_v55 = vmul.f32 %v4541_v52, %v2760_v41  ;;  %v2806_v58 = vmul.f32 %v4537_v50, %v2761_v42  ;;  %v2807_v59 = vmul.f32 %v4541_v52, %v2762_v43  ;;  %v2701_v40 = vld [vmem:[#allocation2 + $0xe0] sm:$0xff] }
 0x24d   : > { %v2808_v60 = vmul.f32 %v4537_v50, %v2763_v44  ;;  %v2809_v61 = vmul.f32 %v4541_v52, %v2764_v47  ;;  %v2847_v1 = vadd.f32 %v4539_v51, %v2802_v48  ;;  %v2848_v2 = vadd.f32 %v4543_v53, %v2803_v49  ;;  %v2702_v47 = vld [vmem:[#allocation2 + $0xe8] sm:$0xff] }
 0x24e   : > { %v2849_v3 = vadd.f32 %v4539_v51, %v2804_v54  ;;  %v2850_v4 = vadd.f32 %v4543_v53, %v2805_v55  ;;  %v2851_v8 = vadd.f32 %v4539_v51, %v2806_v58  ;;  %v2852_v9 = vadd.f32 %v4543_v53, %v2807_v59  ;;  %v2703_v48 = vld [vmem:[#allocation2 + $0xf0] sm:$0xff] }
 0x24f   : > { %v2853_v10 = vadd.f32 %v4539_v51, %v2808_v60  ;;  %v2854_v11 = vadd.f32 %v4543_v53, %v2809_v61  ;;  %2879 = vst [vmem:[%s4334_s24 + $0x40] sm:$0xff] %v2847_v1  ;;  %2880 = vst [vmem:[%s4334_s24 + $0x48] sm:$0xff] %v2848_v2  ;;  %v2733_v12 = vadd.f32 %v4533_v45, %v2689_v56  ;;  %v2704_v49 = vld [vmem:[#allocation2 + $0xf8] sm:$0xff] }
 0x250   : > { %2881 = vst [vmem:[%s4334_s24 + $0x50] sm:$0xff] %v2849_v3  ;;  %2882 = vst [vmem:[%s4334_s24 + $0x58] sm:$0xff] %v2850_v4  ;;  %v2734_v13 = vadd.f32 %v4535_v46, %v2690_v57  ;;  %v2735_v14 = vadd.f32 %v4533_v45, %v2691_v62  ;;  %v2736_v15 = vadd.f32 %v4535_v46, %v2692_v63 }
 0x251   : > { %2883 = vst [vmem:[%s4334_s24 + $0x60] sm:$0xff] %v2851_v8  ;;  %2884 = vst [vmem:[%s4334_s24 + $0x68] sm:$0xff] %v2852_v9  ;;  %v2737_v16 = vadd.f32 %v4533_v45, %v2693_v0  ;;  %v2738_v17 = vadd.f32 %v4535_v46, %v2694_v5  ;;  %v2739_v18 = vadd.f32 %v4533_v45, %v2695_v6  ;;  %v2765_v20 = vmax.f32 %v2733_v12, 0.0 }
 0x252   : > { %2885 = vst [vmem:[%s4334_s24 + $0x70] sm:$0xff] %v2853_v10  ;;  %2886 = vst [vmem:[%s4334_s24 + $0x78] sm:$0xff] %v2854_v11  ;;  %v2740_v19 = vadd.f32 %v4535_v46, %v2696_v7  ;;  %v2766_v21 = vmax.f32 %v2734_v13, 0.0  ;;  %v2767_v22 = vmax.f32 %v2735_v14, 0.0  ;;  %v2768_v23 = vmax.f32 %v2736_v15, 0.0 }
 0x253   : > { %v2769_v24 = vmax.f32 %v2737_v16, 0.0  ;;  %v2770_v25 = vmax.f32 %v2738_v17, 0.0  ;;  %v2771_v26 = vmax.f32 %v2739_v18, 0.0  ;;  %v2810_v28 = vmul.f32 %v4537_v50, %v2765_v20 }
 0x254   : > { %v2772_v27 = vmax.f32 %v2740_v19, 0.0  ;;  %v2811_v29 = vmul.f32 %v4541_v52, %v2766_v21  ;;  %v2812_v30 = vmul.f32 %v4537_v50, %v2767_v22  ;;  %v2813_v31 = vmul.f32 %v4541_v52, %v2768_v23 }
 0x255   : > { %v2814_v34 = vmul.f32 %v4537_v50, %v2769_v24  ;;  %v2815_v35 = vmul.f32 %v4541_v52, %v2770_v25  ;;  %v2816_v36 = vmul.f32 %v4537_v50, %v2771_v26  ;;  %v2855_v41 = vadd.f32 %v4539_v51, %v2810_v28 }
 0x256   : > { %v2817_v37 = vmul.f32 %v4541_v52, %v2772_v27  ;;  %v2856_v42 = vadd.f32 %v4543_v53, %v2811_v29  ;;  %v2857_v43 = vadd.f32 %v4539_v51, %v2812_v30  ;;  %v2858_v44 = vadd.f32 %v4543_v53, %v2813_v31 }
 0x257   : > { %v2859_v54 = vadd.f32 %v4539_v51, %v2814_v34  ;;  %v2860_v55 = vadd.f32 %v4543_v53, %v2815_v35  ;;  %v2861_v56 = vadd.f32 %v4539_v51, %v2816_v36  ;;  %2887 = vst [vmem:[%s4334_s24 + $0x80] sm:$0xff] %v2855_v41  ;;  %v2741_v58 = vadd.f32 %v4533_v45, %v2697_v32 }
 0x258   : > { %v2862_v57 = vadd.f32 %v4543_v53, %v2817_v37  ;;  %2888 = vst [vmem:[%s4334_s24 + $0x88] sm:$0xff] %v2856_v42  ;;  %2889 = vst [vmem:[%s4334_s24 + $0x90] sm:$0xff] %v2857_v43  ;;  %v2742_v59 = vadd.f32 %v4535_v46, %v2698_v33  ;;  %v2743_v60 = vadd.f32 %v4533_v45, %v2699_v38 }
 0x259   : > { %2890 = vst [vmem:[%s4334_s24 + $0x98] sm:$0xff] %v2858_v44  ;;  %v2744_v61 = vadd.f32 %v4535_v46, %v2700_v39  ;;  %2891 = vst [vmem:[%s4334_s24 + $0xa0] sm:$0xff] %v2859_v54  ;;  %v2745_v62 = vadd.f32 %v4533_v45, %v2701_v40  ;;  %v2746_v63 = vadd.f32 %v4535_v46, %v2702_v47  ;;  %v2773_v2 = vmax.f32 %v2741_v58, 0.0 }
 0x25a   : > { %2892 = vst [vmem:[%s4334_s24 + $0xa8] sm:$0xff] %v2860_v55  ;;  %2893 = vst [vmem:[%s4334_s24 + $0xb0] sm:$0xff] %v2861_v56  ;;  %v2747_v0 = vadd.f32 %v4533_v45, %v2703_v48  ;;  %v2748_v1 = vadd.f32 %v4535_v46, %v2704_v49  ;;  %v2774_v3 = vmax.f32 %v2742_v59, 0.0  ;;  %v2775_v4 = vmax.f32 %v2743_v60, 0.0 }
 0x25b   : > { %2894 = vst [vmem:[%s4334_s24 + $0xb8] sm:$0xff] %v2862_v57  ;;  %v2776_v5 = vmax.f32 %v2744_v61, 0.0  ;;  %v2777_v6 = vmax.f32 %v2745_v62, 0.0  ;;  %v2778_v7 = vmax.f32 %v2746_v63, 0.0  ;;  %v2818_v10 = vmul.f32 %v4537_v50, %v2773_v2 }
 0x25c   : > { %v2779_v8 = vmax.f32 %v2747_v0, 0.0  ;;  %v2780_v9 = vmax.f32 %v2748_v1, 0.0  ;;  %v2819_v11 = vmul.f32 %v4541_v52, %v2774_v3  ;;  %v2820_v12 = vmul.f32 %v4537_v50, %v2775_v4 }
 0x25d   : > { %v2821_v45 = vmul.f32 %v4541_v52, %v2776_v5  ;;  %v2822_v46 = vmul.f32 %v4537_v50, %v2777_v6  ;;  %v2823_v13 = vmul.f32 %v4541_v52, %v2778_v7  ;;  %v2863_v16 = vadd.f32 %v4539_v51, %v2818_v10 }
 0x25e   : > { %v2824_v14 = vmul.f32 %v4537_v50, %v2779_v8  ;;  %v2825_v15 = vmul.f32 %v4541_v52, %v2780_v9  ;;  %v2864_v17 = vadd.f32 %v4543_v53, %v2819_v11  ;;  %v2865_v18 = vadd.f32 %v4539_v51, %v2820_v12 }
 0x25f   : > { %v2866_v19 = vadd.f32 %v4543_v53, %v2821_v45  ;;  %v2867_v20 = vadd.f32 %v4539_v51, %v2822_v46  ;;  %v2868_v21 = vadd.f32 %v4543_v53, %v2823_v13  ;;  %2895 = vst [vmem:[%s4334_s24 + $0xc0] sm:$0xff] %v2863_v16 }
 0x260   : > { %v2869_v22 = vadd.f32 %v4539_v51, %v2824_v14  ;;  %v2870_v50 = vadd.f32 %v4543_v53, %v2825_v15  ;;  %2896 = vst [vmem:[%s4334_s24 + $0xc8] sm:$0xff] %v2864_v17  ;;  %2897 = vst [vmem:[%s4334_s24 + $0xd0] sm:$0xff] %v2865_v18 }
 0x261   : > { %2898 = vst [vmem:[%s4334_s24 + $0xd8] sm:$0xff] %v2866_v19  ;;  %2899 = vst [vmem:[%s4334_s24 + $0xe0] sm:$0xff] %v2867_v20 }
 0x262   : > { %2900 = vst [vmem:[%s4334_s24 + $0xe8] sm:$0xff] %v2868_v21  ;;  %2901 = vst [vmem:[%s4334_s24 + $0xf0] sm:$0xff] %v2869_v22 }
 0x263   : > { %2902 = vst [vmem:[%s4334_s24 + $0xf8] sm:$0xff] %v2870_v50 }
 0x264 PF: > { %2909 = sbr.rel (!%p3907_p12) target bundleno = 630 (0x276), region = 105  ;;  %s3326_s1 = sshll.u32 (%p3907_p12), %s3778_s19, 4  ;;  %v2942_v27 = vld [vmem:[%s4334_s24 + $0x38] sm:$0xff] (%p3907_p12)  ;;  %v2944_v28 = vld [vmem:[%s4334_s24 + $0x40] sm:$0xff] (%p3907_p12)  ;;  %v2946_v29 = vld [vmem:[%s4334_s24 + $0x48] sm:$0xff] (%p3907_p12) }
 0x265   : > { %s4682_s16 = scalar_lea.vmem (%p3907_p12), %s4781_s3, %s3326_s1  ;;  %v2948_v30 = vld [vmem:[%s4334_s24 + $0x50] sm:$0xff] (%p3907_p12)  ;;  %v2950_v31 = vld [vmem:[%s4334_s24 + $0x58] sm:$0xff] (%p3907_p12)  ;;  %v2952_v32 = vld [vmem:[%s4334_s24 + $0x60] sm:$0xff] (%p3907_p12) }
 0x266   : > { %v2928_v51 = vld [vmem:[%s4334_s24] sm:$0xff] (%p3907_p12)  ;;  %2943 = vst [vmem:[%s4682_s16 + $0x68] sm:$0xff] (%p3907_p12), %v2942_v27  ;;  %2945 = vst [vmem:[%s4682_s16 + $0x80] sm:$0xff] (%p3907_p12), %v2944_v28  ;;  %v2954_v33 = vld [vmem:[%s4334_s24 + $0x68] sm:$0xff] (%p3907_p12) }
 0x267   : > { %v2932_v53 = vld [vmem:[%s4334_s24 + $0x10] sm:$0xff] (%p3907_p12)  ;;  %2929 = vst [vmem:[%s4682_s16] sm:$0xff] (%p3907_p12), %v2928_v51  ;;  %2947 = vst [vmem:[%s4682_s16 + $0x88] sm:$0xff] (%p3907_p12), %v2946_v29  ;;  %v2958_v35 = vld [vmem:[%s4334_s24 + $0x78] sm:$0xff] (%p3907_p12) }
 0x268   : > { %v2930_v52 = vld [vmem:[%s4334_s24 + $0x8] sm:$0xff] (%p3907_p12)  ;;  %2933 = vst [vmem:[%s4682_s16 + $0x20] sm:$0xff] (%p3907_p12), %v2932_v53  ;;  %2949 = vst [vmem:[%s4682_s16 + $0xa0] sm:$0xff] (%p3907_p12), %v2948_v30  ;;  %v2956_v34 = vld [vmem:[%s4334_s24 + $0x70] sm:$0xff] (%p3907_p12) }
 0x269   : > { %v2934_v23 = vld [vmem:[%s4334_s24 + $0x18] sm:$0xff] (%p3907_p12)  ;;  %2931 = vst [vmem:[%s4682_s16 + $0x8] sm:$0xff] (%p3907_p12), %v2930_v52  ;;  %2951 = vst [vmem:[%s4682_s16 + $0xa8] sm:$0xff] (%p3907_p12), %v2950_v31  ;;  %v2960_v36 = vld [vmem:[%s4334_s24 + $0x80] sm:$0xff] (%p3907_p12) }
 0x26a   : > { %v2936_v24 = vld [vmem:[%s4334_s24 + $0x20] sm:$0xff] (%p3907_p12)  ;;  %2935 = vst [vmem:[%s4682_s16 + $0x28] sm:$0xff] (%p3907_p12), %v2934_v23  ;;  %2953 = vst [vmem:[%s4682_s16 + $0xc0] sm:$0xff] (%p3907_p12), %v2952_v32  ;;  %v2962_v37 = vld [vmem:[%s4334_s24 + $0x88] sm:$0xff] (%p3907_p12) }
 0x26b   : > { %v2938_v25 = vld [vmem:[%s4334_s24 + $0x28] sm:$0xff]  ;;  %2937 = vst [vmem:[%s4682_s16 + $0x40] sm:$0xff] %v2936_v24  ;;  %v2940_v26 = vld [vmem:[%s4334_s24 + $0x30] sm:$0xff]  ;;  %2955 = vst [vmem:[%s4682_s16 + $0xc8] sm:$0xff] %v2954_v33 }
 0x26c   : > { %2939 = vst [vmem:[%s4682_s16 + $0x48] sm:$0xff] %v2938_v25  ;;  %2941 = vst [vmem:[%s4682_s16 + $0x60] sm:$0xff] %v2940_v26  ;;  %v2964_v38 = vld [vmem:[%s4334_s24 + $0x90] sm:$0xff]  ;;  %v2966_v39 = vld [vmem:[%s4334_s24 + $0x98] sm:$0xff] }
 0x26d   : > { %2957 = vst [vmem:[%s4682_s16 + $0xe0] sm:$0xff] %v2956_v34  ;;  %2959 = vst [vmem:[%s4682_s16 + $0xe8] sm:$0xff] %v2958_v35  ;;  %v2968_v40 = vld [vmem:[%s4334_s24 + $0xa0] sm:$0xff]  ;;  %v2970_v41 = vld [vmem:[%s4334_s24 + $0xa8] sm:$0xff] }
 0x26e   : > { %2961 = vst [vmem:[%s4682_s16 + $0x100] sm:$0xff] %v2960_v36  ;;  %2963 = vst [vmem:[%s4682_s16 + $0x108] sm:$0xff] %v2962_v37  ;;  %v2972_v42 = vld [vmem:[%s4334_s24 + $0xb0] sm:$0xff]  ;;  %v2974_v43 = vld [vmem:[%s4334_s24 + $0xb8] sm:$0xff] }
 0x26f   : > { %2965 = vst [vmem:[%s4682_s16 + $0x120] sm:$0xff] %v2964_v38  ;;  %2967 = vst [vmem:[%s4682_s16 + $0x128] sm:$0xff] %v2966_v39  ;;  %v2976_v44 = vld [vmem:[%s4334_s24 + $0xc0] sm:$0xff]  ;;  %v2978_v47 = vld [vmem:[%s4334_s24 + $0xc8] sm:$0xff] }
 0x270   : > { %2969 = vst [vmem:[%s4682_s16 + $0x140] sm:$0xff] %v2968_v40  ;;  %2971 = vst [vmem:[%s4682_s16 + $0x148] sm:$0xff] %v2970_v41  ;;  %v2980_v48 = vld [vmem:[%s4334_s24 + $0xd0] sm:$0xff]  ;;  %v2982_v49 = vld [vmem:[%s4334_s24 + $0xd8] sm:$0xff] }
 0x271   : > { %2973 = vst [vmem:[%s4682_s16 + $0x160] sm:$0xff] %v2972_v42  ;;  %2975 = vst [vmem:[%s4682_s16 + $0x168] sm:$0xff] %v2974_v43  ;;  %v2984_v54 = vld [vmem:[%s4334_s24 + $0xe0] sm:$0xff]  ;;  %v2986_v55 = vld [vmem:[%s4334_s24 + $0xe8] sm:$0xff] }
 0x272   : > { %2977 = vst [vmem:[%s4682_s16 + $0x180] sm:$0xff] %v2976_v44  ;;  %2979 = vst [vmem:[%s4682_s16 + $0x188] sm:$0xff] %v2978_v47  ;;  %v2988_v56 = vld [vmem:[%s4334_s24 + $0xf0] sm:$0xff]  ;;  %v2990_v57 = vld [vmem:[%s4334_s24 + $0xf8] sm:$0xff] }
 0x273   : > { %2981 = vst [vmem:[%s4682_s16 + $0x1a0] sm:$0xff] %v2980_v48  ;;  %2983 = vst [vmem:[%s4682_s16 + $0x1a8] sm:$0xff] %v2982_v49 }
 0x274   : > { %2985 = vst [vmem:[%s4682_s16 + $0x1c0] sm:$0xff] %v2984_v54  ;;  %2987 = vst [vmem:[%s4682_s16 + $0x1c8] sm:$0xff] %v2986_v55 }
 0x275   : > { %2989 = vst [vmem:[%s4682_s16 + $0x1e0] sm:$0xff] %v2988_v56  ;;  %2991 = vst [vmem:[%s4682_s16 + $0x1e8] sm:$0xff] %v2990_v57 }
 0x276 PF: > { %s13_s22 = sadd.s32 1, %s3790_s22   ;;  %s4793_s10 = sld [smem:[#allocation6_spill]] }
 0x277   : > { %p10_p6 = scmp.ge.s32.totalorder %s13_s22, 38   ;;  %s4794_s0 = sld [smem:[#allocation7_spill]] }
 0x278   : > { %s4795_s12 = smov %s3754_s13  ;;  %s4796_s13 = smov %s3905_s9 }
 0x279   : > { %s4797_s14 = smov %s3762_s15  ;;  %s4798_s15 = smov %s3902_s8 }
 0x27a   : > { %s4799_s16 = smov %s3770_s17  ;;  %s4800_s17 = smov %s3888_s30 }
 0x27b   : > { %s4801_s18 = smov %s3782_s20  ;;  %s4802_s19 = smov %s3786_s21 }
 0x27c   : > { %s4803_s20 = smov %s4793_s10  ;;  %12 = sbr.rel (!%p10_p6) target bundleno = 9 (0x9), region = 172 }
 0x27d   : > { %s4804_s21 = smov %s4794_s0 }

// kernel: multitasking_forward.5
= control target key start
LH: loop header
LB: loop body
LE: loop exit
PB: predicated region body
PF: predicated region fallthrough
CT: control target
= control target key end

     0   :  { %s2596_s12 = smov 0   ;;  %s2598_s13 = smov 0   ;;  %s3083_s0 = inlined_call_operand.vmem [shape: bf16[256,8192], index: 0, kind: input, shape index: {}]   ;;  %s3084_s1 = inlined_call_operand.vmem [shape: bf16[8192,128], index: 1, kind: input, shape index: {}]   ;;  %s3085_s2 = inlined_call_operand.vmem [shape: f32[8,128], index: 2, kind: input, shape index: {}]   ;;  %s3086_s3 = inlined_call_operand.vmem [shape: f32[256,128], index: 3, kind: output, shape index: {}]  }
   0x1   :  { %s2600_s14 = smov 0   ;;  %s2602_s15 = smov 0  }
   0x2   :  { %s2604_s16 = smov 0   ;;  %s2606_s17 = smov 0  }
   0x3   :  { %s2608_s18 = smov 0  }
   0x4 LB: > { %s25_s19 = sadd.s32 1, %s2565_s16  ;;  %s32_s20 = sadd.s32 1, %s2569_s17  ;;  %s2573_s18 = sphi %s2608_s18, %s13_s18   ;;  %s2569_s17 = sphi %s2606_s17, %s3092_s17   ;;  %s2565_s16 = sphi %s2604_s16, %s3091_s16   ;;  %s2561_s15 = sphi %s2602_s15, %s3090_s15   ;;  %s2557_s14 = sphi %s2600_s14, %s3089_s14   ;;  %s2553_s13 = sphi %s2598_s13, %s3088_s13   ;;  %s2549_s12 = sphi %s2596_s12, %s3087_s12  }
   0x5   : > { %p26_p0 = scmp.ge.s32.totalorder %s25_s19, 8  ;;  %p48_p1 = scmp.ne.s32.totalorder %s2553_s13, %s2549_s12 }
   0x6   : > { %p49_p2 = scmp.eq.s32.totalorder %s2573_s18, 0  ;;  %s41_s24 = sadd.s32 1, %s2553_s13 }
   0x7   : > { %s3094_s19 = smov (%p26_p0, %s25_s19), 0  ;;  %s3096_s20 = smov (!%p26_p0, %s32_s20), %s2569_s17 }
   0x8   : > { %p50_p3 = por %p49_p2, %p48_p1  ;;  %p34_p4 = scmp.ge.s32.totalorder %s3096_s20, 2 }
   0x9   : > { %s37_s21 = ssub.s32 %s2565_s16, %s3094_s19  ;;  %p1994_p6 = scmp.ge.s32.totalorder %s2573_s18, 16 }
   0xa   : > { %s3098_s20 = smov (%p34_p4, %s3096_s20), 0 }
   0xb   : > { %s36_s22 = ssub.s32 %s2569_s17, %s3098_s20  ;;  %163 = sbr.rel (%p1994_p6) target bundleno = 57 (0x39), region = 20 }
   0xc   : > { %s38_s23 = sor.u32 %s37_s21, %s36_s22 }
   0xd   : > { %p39_p5 = scmp.eq.s32.totalorder %s38_s23, 0 }
   0xf   : > { %s2647_s25 = scalar_select %p39_p5, %s2553_s13, %s41_s24  }
  0x12   : > { %166 = sbr.rel (!%p50_p3) target bundleno = 57 (0x39), region = 24  ;;  %s168_s26 = sand.u32 (%p50_p3), 1, %s2553_s13  }
  0x13   : > { %s1997_s27 = sshll.u32 (%p50_p3), %s2565_s16, 3  ;;  %s1995_s28 = sshll.u32 (%p50_p3), %s168_s26, 9 }
  0x14   : > { %s2141_s29 = sshll.u32 (%p50_p3), %s2569_s17, 10  ;;  %s2661_s8 = scalar_lea.vmem (%p50_p3), [#allocation3], %s1995_s28 }
  0x15   : > { %s174_s30 = sadd.s32 (%p50_p3), %s2141_s29, %s1997_s27 }
  0x16   : > { %s1999_s4 = sshll.u32 (%p50_p3), %s174_s30, 2 }
  0x17   : > { %s2656_s7 = scalar_lea.vmem (%p50_p3), %s3083_s0, %s1999_s4 }
  0x18   : > { %v189_v0 = vld [vmem:[%s2656_s7] sm:$0xff] (%p50_p3)  ;;  %v191_v1 = vld [vmem:[%s2656_s7 + $0x8] sm:$0xff] (%p50_p3)  ;;  %v193_v2 = vld [vmem:[%s2656_s7 + $0x10] sm:$0xff] (%p50_p3) }
  0x19   : > { %190 = vst [vmem:[%s2661_s8] sm:$0xff] %v189_v0  ;;  %192 = vst [vmem:[%s2661_s8 + $0x8] sm:$0xff] %v191_v1  ;;  %v195_v3 = vld [vmem:[%s2656_s7 + $0x18] sm:$0xff]  ;;  %v197_v4 = vld [vmem:[%s2656_s7 + $0x100] sm:$0xff] }
  0x1a   : > { %194 = vst [vmem:[%s2661_s8 + $0x10] sm:$0xff] %v193_v2  ;;  %v199_v5 = vld [vmem:[%s2656_s7 + $0x108] sm:$0xff]  ;;  %196 = vst [vmem:[%s2661_s8 + $0x18] sm:$0xff] %v195_v3  ;;  %v201_v6 = vld [vmem:[%s2656_s7 + $0x110] sm:$0xff] }
  0x1b   : > { %198 = vst [vmem:[%s2661_s8 + $0x20] sm:$0xff] %v197_v4  ;;  %200 = vst [vmem:[%s2661_s8 + $0x28] sm:$0xff] %v199_v5  ;;  %v203_v7 = vld [vmem:[%s2656_s7 + $0x118] sm:$0xff]  ;;  %v205_v8 = vld [vmem:[%s2656_s7 + $0x200] sm:$0xff] }
  0x1c   : > { %202 = vst [vmem:[%s2661_s8 + $0x30] sm:$0xff] %v201_v6  ;;  %204 = vst [vmem:[%s2661_s8 + $0x38] sm:$0xff] %v203_v7  ;;  %v207_v9 = vld [vmem:[%s2656_s7 + $0x208] sm:$0xff]  ;;  %v209_v10 = vld [vmem:[%s2656_s7 + $0x210] sm:$0xff] }
  0x1d   : > { %206 = vst [vmem:[%s2661_s8 + $0x40] sm:$0xff] %v205_v8  ;;  %v211_v11 = vld [vmem:[%s2656_s7 + $0x218] sm:$0xff]  ;;  %208 = vst [vmem:[%s2661_s8 + $0x48] sm:$0xff] %v207_v9  ;;  %v213_v12 = vld [vmem:[%s2656_s7 + $0x300] sm:$0xff] }
  0x1e   : > { %210 = vst [vmem:[%s2661_s8 + $0x50] sm:$0xff] %v209_v10  ;;  %212 = vst [vmem:[%s2661_s8 + $0x58] sm:$0xff] %v211_v11  ;;  %v215_v13 = vld [vmem:[%s2656_s7 + $0x308] sm:$0xff]  ;;  %v217_v14 = vld [vmem:[%s2656_s7 + $0x310] sm:$0xff] }
  0x1f   : > { %214 = vst [vmem:[%s2661_s8 + $0x60] sm:$0xff] %v213_v12  ;;  %216 = vst [vmem:[%s2661_s8 + $0x68] sm:$0xff] %v215_v13  ;;  %v219_v15 = vld [vmem:[%s2656_s7 + $0x318] sm:$0xff]  ;;  %v221_v16 = vld [vmem:[%s2656_s7 + $0x400] sm:$0xff] }
  0x20   : > { %218 = vst [vmem:[%s2661_s8 + $0x70] sm:$0xff] %v217_v14  ;;  %v223_v17 = vld [vmem:[%s2656_s7 + $0x408] sm:$0xff]  ;;  %220 = vst [vmem:[%s2661_s8 + $0x78] sm:$0xff] %v219_v15  ;;  %v225_v18 = vld [vmem:[%s2656_s7 + $0x410] sm:$0xff] }
  0x21   : > { %222 = vst [vmem:[%s2661_s8 + $0x80] sm:$0xff] %v221_v16  ;;  %224 = vst [vmem:[%s2661_s8 + $0x88] sm:$0xff] %v223_v17  ;;  %v227_v19 = vld [vmem:[%s2656_s7 + $0x418] sm:$0xff]  ;;  %v229_v20 = vld [vmem:[%s2656_s7 + $0x500] sm:$0xff] }
  0x22   : > { %226 = vst [vmem:[%s2661_s8 + $0x90] sm:$0xff] %v225_v18  ;;  %228 = vst [vmem:[%s2661_s8 + $0x98] sm:$0xff] %v227_v19  ;;  %v231_v21 = vld [vmem:[%s2656_s7 + $0x508] sm:$0xff]  ;;  %v233_v22 = vld [vmem:[%s2656_s7 + $0x510] sm:$0xff] }
  0x23   : > { %230 = vst [vmem:[%s2661_s8 + $0xa0] sm:$0xff] %v229_v20  ;;  %v235_v23 = vld [vmem:[%s2656_s7 + $0x518] sm:$0xff]  ;;  %232 = vst [vmem:[%s2661_s8 + $0xa8] sm:$0xff] %v231_v21  ;;  %v237_v24 = vld [vmem:[%s2656_s7 + $0x600] sm:$0xff] }
  0x24   : > { %234 = vst [vmem:[%s2661_s8 + $0xb0] sm:$0xff] %v233_v22  ;;  %236 = vst [vmem:[%s2661_s8 + $0xb8] sm:$0xff] %v235_v23  ;;  %v239_v25 = vld [vmem:[%s2656_s7 + $0x608] sm:$0xff]  ;;  %v241_v26 = vld [vmem:[%s2656_s7 + $0x610] sm:$0xff] }
  0x25   : > { %238 = vst [vmem:[%s2661_s8 + $0xc0] sm:$0xff] %v237_v24  ;;  %240 = vst [vmem:[%s2661_s8 + $0xc8] sm:$0xff] %v239_v25  ;;  %v243_v27 = vld [vmem:[%s2656_s7 + $0x618] sm:$0xff]  ;;  %v245_v28 = vld [vmem:[%s2656_s7 + $0x700] sm:$0xff] }
  0x26   : > { %242 = vst [vmem:[%s2661_s8 + $0xd0] sm:$0xff] %v241_v26  ;;  %v247_v29 = vld [vmem:[%s2656_s7 + $0x708] sm:$0xff]  ;;  %244 = vst [vmem:[%s2661_s8 + $0xd8] sm:$0xff] %v243_v27  ;;  %v249_v30 = vld [vmem:[%s2656_s7 + $0x710] sm:$0xff] }
  0x27   : > { %246 = vst [vmem:[%s2661_s8 + $0xe0] sm:$0xff] %v245_v28  ;;  %248 = vst [vmem:[%s2661_s8 + $0xe8] sm:$0xff] %v247_v29  ;;  %v251_v31 = vld [vmem:[%s2656_s7 + $0x718] sm:$0xff]  ;;  %v253_v32 = vld [vmem:[%s2656_s7 + $0x800] sm:$0xff] }
  0x28   : > { %250 = vst [vmem:[%s2661_s8 + $0xf0] sm:$0xff] %v249_v30  ;;  %252 = vst [vmem:[%s2661_s8 + $0xf8] sm:$0xff] %v251_v31  ;;  %v255_v33 = vld [vmem:[%s2656_s7 + $0x808] sm:$0xff]  ;;  %v257_v34 = vld [vmem:[%s2656_s7 + $0x810] sm:$0xff] }
  0x29   : > { %254 = vst [vmem:[%s2661_s8 + $0x100] sm:$0xff] %v253_v32  ;;  %v259_v35 = vld [vmem:[%s2656_s7 + $0x818] sm:$0xff]  ;;  %256 = vst [vmem:[%s2661_s8 + $0x108] sm:$0xff] %v255_v33  ;;  %v261_v36 = vld [vmem:[%s2656_s7 + $0x900] sm:$0xff] }
  0x2a   : > { %258 = vst [vmem:[%s2661_s8 + $0x110] sm:$0xff] %v257_v34  ;;  %260 = vst [vmem:[%s2661_s8 + $0x118] sm:$0xff] %v259_v35  ;;  %v263_v37 = vld [vmem:[%s2656_s7 + $0x908] sm:$0xff]  ;;  %v265_v38 = vld [vmem:[%s2656_s7 + $0x910] sm:$0xff] }
  0x2b   : > { %262 = vst [vmem:[%s2661_s8 + $0x120] sm:$0xff] %v261_v36  ;;  %264 = vst [vmem:[%s2661_s8 + $0x128] sm:$0xff] %v263_v37  ;;  %v267_v39 = vld [vmem:[%s2656_s7 + $0x918] sm:$0xff]  ;;  %v269_v40 = vld [vmem:[%s2656_s7 + $0xa00] sm:$0xff] }
  0x2c   : > { %266 = vst [vmem:[%s2661_s8 + $0x130] sm:$0xff] %v265_v38  ;;  %v271_v41 = vld [vmem:[%s2656_s7 + $0xa08] sm:$0xff]  ;;  %268 = vst [vmem:[%s2661_s8 + $0x138] sm:$0xff] %v267_v39  ;;  %v273_v42 = vld [vmem:[%s2656_s7 + $0xa10] sm:$0xff] }
  0x2d   : > { %270 = vst [vmem:[%s2661_s8 + $0x140] sm:$0xff] %v269_v40  ;;  %272 = vst [vmem:[%s2661_s8 + $0x148] sm:$0xff] %v271_v41  ;;  %v275_v43 = vld [vmem:[%s2656_s7 + $0xa18] sm:$0xff]  ;;  %v277_v44 = vld [vmem:[%s2656_s7 + $0xb00] sm:$0xff] }
  0x2e   : > { %274 = vst [vmem:[%s2661_s8 + $0x150] sm:$0xff] %v273_v42  ;;  %276 = vst [vmem:[%s2661_s8 + $0x158] sm:$0xff] %v275_v43  ;;  %v279_v45 = vld [vmem:[%s2656_s7 + $0xb08] sm:$0xff]  ;;  %v281_v46 = vld [vmem:[%s2656_s7 + $0xb10] sm:$0xff] }
  0x2f   : > { %278 = vst [vmem:[%s2661_s8 + $0x160] sm:$0xff] %v277_v44  ;;  %v283_v47 = vld [vmem:[%s2656_s7 + $0xb18] sm:$0xff]  ;;  %280 = vst [vmem:[%s2661_s8 + $0x168] sm:$0xff] %v279_v45  ;;  %v285_v48 = vld [vmem:[%s2656_s7 + $0xc00] sm:$0xff] }
  0x30   : > { %282 = vst [vmem:[%s2661_s8 + $0x170] sm:$0xff] %v281_v46  ;;  %284 = vst [vmem:[%s2661_s8 + $0x178] sm:$0xff] %v283_v47  ;;  %v287_v49 = vld [vmem:[%s2656_s7 + $0xc08] sm:$0xff]  ;;  %v289_v50 = vld [vmem:[%s2656_s7 + $0xc10] sm:$0xff] }
  0x31   : > { %286 = vst [vmem:[%s2661_s8 + $0x180] sm:$0xff] %v285_v48  ;;  %288 = vst [vmem:[%s2661_s8 + $0x188] sm:$0xff] %v287_v49  ;;  %v291_v51 = vld [vmem:[%s2656_s7 + $0xc18] sm:$0xff]  ;;  %v293_v52 = vld [vmem:[%s2656_s7 + $0xd00] sm:$0xff] }
  0x32   : > { %290 = vst [vmem:[%s2661_s8 + $0x190] sm:$0xff] %v289_v50  ;;  %v295_v53 = vld [vmem:[%s2656_s7 + $0xd08] sm:$0xff]  ;;  %292 = vst [vmem:[%s2661_s8 + $0x198] sm:$0xff] %v291_v51  ;;  %v297_v54 = vld [vmem:[%s2656_s7 + $0xd10] sm:$0xff] }
  0x33   : > { %294 = vst [vmem:[%s2661_s8 + $0x1a0] sm:$0xff] %v293_v52  ;;  %296 = vst [vmem:[%s2661_s8 + $0x1a8] sm:$0xff] %v295_v53  ;;  %v299_v55 = vld [vmem:[%s2656_s7 + $0xd18] sm:$0xff]  ;;  %v301_v56 = vld [vmem:[%s2656_s7 + $0xe00] sm:$0xff] }
  0x34   : > { %298 = vst [vmem:[%s2661_s8 + $0x1b0] sm:$0xff] %v297_v54  ;;  %300 = vst [vmem:[%s2661_s8 + $0x1b8] sm:$0xff] %v299_v55  ;;  %v303_v57 = vld [vmem:[%s2656_s7 + $0xe08] sm:$0xff]  ;;  %v305_v58 = vld [vmem:[%s2656_s7 + $0xe10] sm:$0xff] }
  0x35   : > { %302 = vst [vmem:[%s2661_s8 + $0x1c0] sm:$0xff] %v301_v56  ;;  %v307_v59 = vld [vmem:[%s2656_s7 + $0xe18] sm:$0xff]  ;;  %304 = vst [vmem:[%s2661_s8 + $0x1c8] sm:$0xff] %v303_v57  ;;  %v309_v60 = vld [vmem:[%s2656_s7 + $0xf00] sm:$0xff] }
  0x36   : > { %306 = vst [vmem:[%s2661_s8 + $0x1d0] sm:$0xff] %v305_v58  ;;  %308 = vst [vmem:[%s2661_s8 + $0x1d8] sm:$0xff] %v307_v59  ;;  %v311_v61 = vld [vmem:[%s2656_s7 + $0xf08] sm:$0xff]  ;;  %v313_v62 = vld [vmem:[%s2656_s7 + $0xf10] sm:$0xff] }
  0x37   : > { %310 = vst [vmem:[%s2661_s8 + $0x1e0] sm:$0xff] %v309_v60  ;;  %312 = vst [vmem:[%s2661_s8 + $0x1e8] sm:$0xff] %v311_v61  ;;  %v315_v63 = vld [vmem:[%s2656_s7 + $0xf18] sm:$0xff] }
  0x38   : > { %314 = vst [vmem:[%s2661_s8 + $0x1f0] sm:$0xff] %v313_v62  ;;  %316 = vst [vmem:[%s2661_s8 + $0x1f8] sm:$0xff] %v315_v63 }
  0x39 PF: > { %p2000_p7 = scmp.ge.s32.totalorder %s2573_s18, 1  ;;  %p333_p8 = scmp.lt.s32.totalorder %s2573_s18, 17 }
  0x3b   : > { %p334_p9 = pnand %p2000_p7, %p333_p8 }
  0x3c   : > { %s340_s9 = sand.u32 (!%p334_p9), 1, %s2549_s12   ;;  %s2002_s10 = sshll.u32 (!%p334_p9), %s2557_s14, 7 }
  0x3d   : > { %337 = sbr.rel (%p334_p9) target bundleno = 472 (0x1d8), region = 51  ;;  %s2001_s11 = sshll.u32 (!%p334_p9), %s340_s9, 9 }
  0x3e   : > { %p381_p10 = scmp.lt.s32.totalorder (!%p334_p9), %s2002_s10, 1023  ;;  %s2004_s21 = sshll.u32 (!%p334_p9), %s2561_s15, 4 }
  0x3f   : > { %p394_p11 = scmp.lt.s32.totalorder (!%p334_p9), %s2004_s21, 31  ;;  %s2803_s12 = scalar_lea.vmem (!%p334_p9), [#allocation3], %s2001_s11 }
  0x40   : > { %p2006_p12 = scmp.ne.s32.totalorder (!%p334_p9), %s2557_s14, 0 }
  0x44   : > { %s3100_s10 = smov (!%p381_p10, %s2002_s10), 1023  ;;  %s3102_s21 = smov (!%p394_p11, %s2004_s21), 31 }
  0x45   : > { %s2003_s22 = sshll.u32 %s3100_s10, 2  ;;  %s2005_s27 = sshll.u32 %s3102_s21, 3  ;;  %v2575_v0 = vmov (!%p2006_p12), 0.0  }
  0x46   : > { %s2796_s26 = scalar_lea.vmem %s3084_s1, %s2003_s22  ;;  %s2801_s30 = scalar_lea.vmem %s3086_s3, %s2005_s27  ;;  %407 = vst [vmem:[#allocation2] sm:$0xff] (!%p2006_p12), %v2575_v0  ;;  %408 = vst [vmem:[#allocation2 + $0x8] sm:$0xff] (!%p2006_p12), %v2575_v0 }
  0x47   : > { %406 = sbr.rel (%p2006_p12) target bundleno = 78 (0x4e), region = 59  ;;  %409 = vst [vmem:[#allocation2 + $0x10] sm:$0xff] (!%p2006_p12), %v2575_v0  ;;  %410 = vst [vmem:[#allocation2 + $0x18] sm:$0xff] (!%p2006_p12), %v2575_v0 }
  0x48   : > { %411 = vst [vmem:[#allocation2 + $0x20] sm:$0xff] (!%p2006_p12), %v2575_v0  ;;  %412 = vst [vmem:[#allocation2 + $0x28] sm:$0xff] (!%p2006_p12), %v2575_v0 }
  0x49   : > { %413 = vst [vmem:[#allocation2 + $0x30] sm:$0xff] (!%p2006_p12), %v2575_v0  ;;  %414 = vst [vmem:[#allocation2 + $0x38] sm:$0xff] (!%p2006_p12), %v2575_v0 }
  0x4a   : > { %415 = vst [vmem:[#allocation2 + $0x40] sm:$0xff] (!%p2006_p12), %v2575_v0  ;;  %416 = vst [vmem:[#allocation2 + $0x48] sm:$0xff] (!%p2006_p12), %v2575_v0 }
  0x4b   : > { %417 = vst [vmem:[#allocation2 + $0x50] sm:$0xff] (!%p2006_p12), %v2575_v0  ;;  %418 = vst [vmem:[#allocation2 + $0x58] sm:$0xff] (!%p2006_p12), %v2575_v0 }
  0x4c   : > { %419 = vst [vmem:[#allocation2 + $0x60] sm:$0xff] (!%p2006_p12), %v2575_v0  ;;  %420 = vst [vmem:[#allocation2 + $0x68] sm:$0xff] (!%p2006_p12), %v2575_v0 }
  0x4d   : > { %421 = vst [vmem:[#allocation2 + $0x70] sm:$0xff] (!%p2006_p12), %v2575_v0  ;;  %422 = vst [vmem:[#allocation2 + $0x78] sm:$0xff] (!%p2006_p12), %v2575_v0 }
  0x4e PF: > { %v2455_v1 = vld [vmem:[%s2796_s26 + $0x40] sm:$0xff]   ;;  %v2459_v5 = vld [vmem:[%s2796_s26 + $0x48] sm:$0xff]   ;;  %v2463_v9 = vld [vmem:[%s2796_s26 + $0x50] sm:$0xff]   ;;  %p2135_p13 = scmp.ne.s32.totalorder %s2557_s14, 7 }
  0x4f   : > { %v2456_v2 = vld [vmem:[%s2796_s26 + $0xc0] sm:$0xff]   ;;  %2142 = vmatprep.subr.bf16.mxu0 %v2455_v1  ;;  %v2460_v6 = vld [vmem:[%s2796_s26 + $0xc8] sm:$0xff]   ;;  %v2464_v10 = vld [vmem:[%s2796_s26 + $0xd0] sm:$0xff]  }
  0x50   : > { %v2457_v3 = vld [vmem:[%s2796_s26] sm:$0xff]   ;;  %2206 = vmatprep.subr.bf16.mxu1 %v2456_v2  ;;  %v2461_v7 = vld [vmem:[%s2796_s26 + $0x8] sm:$0xff]   ;;  %v2465_v11 = vld [vmem:[%s2796_s26 + $0x10] sm:$0xff]  }
  0x51   : > { %v2458_v4 = vld [vmem:[%s2796_s26 + $0x80] sm:$0xff]   ;;  %2143 = vmatpush3.bf16.msra.mxu0 %v2457_v3  ;;  %v2462_v8 = vld [vmem:[%s2796_s26 + $0x88] sm:$0xff]   ;;  %v2466_v12 = vld [vmem:[%s2796_s26 + $0x90] sm:$0xff]  }
  0x52   : > { %2207 = vmatpush3.bf16.msra.mxu1 %v2458_v4  ;;  %2144 = vmatprep.subr.bf16.mxu0 %v2459_v5  ;;  %v2467_v13 = vld [vmem:[%s2796_s26 + $0x58] sm:$0xff]   ;;  %v2471_v17 = vld [vmem:[%s2796_s26 + $0x60] sm:$0xff]   ;;  %v2475_v21 = vld [vmem:[%s2796_s26 + $0x68] sm:$0xff]  }
  0x53   : > { %2208 = vmatprep.subr.bf16.mxu1 %v2460_v6  ;;  %v2468_v14 = vld [vmem:[%s2796_s26 + $0xd8] sm:$0xff]   ;;  %v2472_v18 = vld [vmem:[%s2796_s26 + $0xe0] sm:$0xff]   ;;  %v2476_v22 = vld [vmem:[%s2796_s26 + $0xe8] sm:$0xff]  }
  0x54   : > { %v2469_v15 = vld [vmem:[%s2796_s26 + $0x18] sm:$0xff]   ;;  %v2473_v19 = vld [vmem:[%s2796_s26 + $0x20] sm:$0xff]   ;;  %v2477_v23 = vld [vmem:[%s2796_s26 + $0x28] sm:$0xff]  }
  0x55   : > { %2145 = vmatpush3.bf16.msra.mxu0 %v2461_v7  ;;  %v2470_v16 = vld [vmem:[%s2796_s26 + $0x98] sm:$0xff]   ;;  %v2474_v20 = vld [vmem:[%s2796_s26 + $0xa0] sm:$0xff]   ;;  %v2478_v24 = vld [vmem:[%s2796_s26 + $0xa8] sm:$0xff]  }
  0x56   : > { %2209 = vmatpush3.bf16.msra.mxu1 %v2462_v8  ;;  %2146 = vmatprep.subr.bf16.mxu0 %v2463_v9  ;;  %v2479_v25 = vld [vmem:[%s2796_s26 + $0x70] sm:$0xff]   ;;  %v2483_v29 = vld [vmem:[%s2796_s26 + $0x78] sm:$0xff]   ;;  %v439_v33 = vld [vmem:[%s2803_s12] sm:$0xff] }
  0x57   : > { %2210 = vmatprep.subr.bf16.mxu1 %v2464_v10  ;;  %v2480_v26 = vld [vmem:[%s2796_s26 + $0xf0] sm:$0xff]   ;;  %v2484_v30 = vld [vmem:[%s2796_s26 + $0xf8] sm:$0xff]   ;;  %v443_v34 = vld [vmem:[%s2803_s12 + $0x20] sm:$0xff] }
  0x58   : > { %v2481_v27 = vld [vmem:[%s2796_s26 + $0x30] sm:$0xff]   ;;  %v2485_v31 = vld [vmem:[%s2796_s26 + $0x38] sm:$0xff]   ;;  %v440_v35 = vld [vmem:[%s2803_s12 + $0x8] sm:$0xff]  ;;  %v2007_v36 = vcombine.low %v439_v33, %v443_v34  ;;  %v2008_v37 = vcombine.high %v439_v33, %v443_v34 }
  0x59   : > { %2147 = vmatpush3.bf16.msra.mxu0 %v2465_v11  ;;  %v2482_v28 = vld [vmem:[%s2796_s26 + $0xb0] sm:$0xff]   ;;  %v2486_v32 = vld [vmem:[%s2796_s26 + $0xb8] sm:$0xff]   ;;  %v444_v38 = vld [vmem:[%s2803_s12 + $0x28] sm:$0xff] }
  0x5a   : > { %2211 = vmatpush3.bf16.msra.mxu1 %v2466_v12  ;;  %2148 = vmatprep.subr.bf16.mxu0 %v2467_v13  ;;  %v2009_v39 = vcombine.low %v440_v35, %v444_v38  ;;  %v2010_v40 = vcombine.high %v440_v35, %v444_v38  ;;  %v2487_v41 = vld [vmem:[%s2796_s26 + $0x140] sm:$0xff]   ;;  %v448_v48 = vld [vmem:[%s2803_s12 + $0x48] sm:$0xff]  ;;  %v2495_v63 = vld [vmem:[%s2796_s26 + $0x150] sm:$0xff]  }
  0x5b   : > { %2212 = vmatprep.subr.bf16.mxu1 %v2468_v14  ;;  %1367 = vmatprep.mubr.bf16.mxu0 %v2008_v37  ;;  %v2488_v42 = vld [vmem:[%s2796_s26 + $0x100] sm:$0xff]   ;;  %v452_v49 = vld [vmem:[%s2803_s12 + $0x68] sm:$0xff]  ;;  %v2496_v0 = vld [vmem:[%s2796_s26 + $0x110] sm:$0xff]  }
  0x5c   : > { %1464 = vmatprep.mubr.bf16.mxu1 %v2010_v40  ;;  %v2489_v43 = vld [vmem:[%s2796_s26 + $0x1c0] sm:$0xff]   ;;  %v2018_v50 = vcombine.high %v448_v48, %v452_v49  ;;  %v2491_v51 = vld [vmem:[%s2796_s26 + $0x148] sm:$0xff]   ;;  %v2017_v54 = vcombine.low %v448_v48, %v452_v49  ;;  %v2497_v1 = vld [vmem:[%s2796_s26 + $0x1d0] sm:$0xff]  }
  0x5d   : > { %2149 = vmatpush3.bf16.msra.mxu0 %v2469_v15  ;;  %v2490_v44 = vld [vmem:[%s2796_s26 + $0x180] sm:$0xff]   ;;  %v2492_v53 = vld [vmem:[%s2796_s26 + $0x108] sm:$0xff]   ;;  %v2498_v2 = vld [vmem:[%s2796_s26 + $0x190] sm:$0xff]  }
  0x5e   : > { %2213 = vmatpush3.bf16.msra.mxu1 %v2470_v16  ;;  %2150 = vmatprep.subr.bf16.mxu0 %v2471_v17  ;;  %v447_v45 = vld [vmem:[%s2803_s12 + $0x40] sm:$0xff]  ;;  %v2493_v55 = vld [vmem:[%s2796_s26 + $0x1c8] sm:$0xff]   ;;  %v2499_v11 = vld [vmem:[%s2796_s26 + $0x158] sm:$0xff]  }
  0x5f   : > { %2214 = vmatprep.subr.bf16.mxu1 %v2472_v18  ;;  %v451_v46 = vld [vmem:[%s2803_s12 + $0x60] sm:$0xff]  ;;  %v2494_v56 = vld [vmem:[%s2796_s26 + $0x188] sm:$0xff]   ;;  %v2500_v12 = vld [vmem:[%s2796_s26 + $0x118] sm:$0xff]  }
  0x60   : > { %v2016_v47 = vcombine.high %v447_v45, %v451_v46  ;;  %v2015_v52 = vcombine.low %v447_v45, %v451_v46  ;;  %v455_v57 = vld [vmem:[%s2803_s12 + $0x80] sm:$0xff]  ;;  %v456_v59 = vld [vmem:[%s2803_s12 + $0x88] sm:$0xff]  ;;  %v2501_v13 = vld [vmem:[%s2796_s26 + $0x1d8] sm:$0xff]  }
  0x61   : > { %2151 = vmatpush3.bf16.msra.mxu0 %v2473_v19  ;;  %v459_v58 = vld [vmem:[%s2803_s12 + $0xa0] sm:$0xff]  ;;  %v460_v60 = vld [vmem:[%s2803_s12 + $0xa8] sm:$0xff]  ;;  %v2502_v14 = vld [vmem:[%s2796_s26 + $0x198] sm:$0xff]  }
  0x62   : > { %2215 = vmatpush3.bf16.msra.mxu1 %v2474_v20  ;;  %2152 = vmatprep.subr.bf16.mxu0 %v2475_v21  ;;  %v2024_v61 = vcombine.high %v455_v57, %v459_v58  ;;  %v2026_v62 = vcombine.high %v456_v59, %v460_v60  ;;  %v2023_v3 = vcombine.low %v455_v57, %v459_v58  ;;  %v463_v4 = vld [vmem:[%s2803_s12 + $0xc0] sm:$0xff]  ;;  %v464_v6 = vld [vmem:[%s2803_s12 + $0xc8] sm:$0xff]  ;;  %v2512_v40 = vld [vmem:[%s2796_s26 + $0x130] sm:$0xff]  }
  0x63   : > { %2216 = vmatprep.subr.bf16.mxu1 %v2476_v22  ;;  %v467_v5 = vld [vmem:[%s2803_s12 + $0xe0] sm:$0xff]  ;;  %v2025_v7 = vcombine.low %v456_v59, %v460_v60  ;;  %v468_v9 = vld [vmem:[%s2803_s12 + $0xe8] sm:$0xff]  ;;  %v2516_v49 = vld [vmem:[%s2796_s26 + $0x138] sm:$0xff]  }
  0x64   : > { %v2032_v8 = vcombine.high %v463_v4, %v467_v5  ;;  %v2034_v10 = vcombine.high %v464_v6, %v468_v9  ;;  %v471_v15 = vld [vmem:[%s2803_s12 + $0x100] sm:$0xff]  ;;  %v472_v17 = vld [vmem:[%s2803_s12 + $0x108] sm:$0xff]  ;;  %v2031_v20 = vcombine.low %v463_v4, %v467_v5  ;;  %v2033_v22 = vcombine.low %v464_v6, %v468_v9  ;;  %v450_v9 = vld [vmem:[%s2803_s12 + $0x58] sm:$0xff] }
  0x65   : > { %2153 = vmatpush3.bf16.msra.mxu0 %v2477_v23  ;;  %v475_v16 = vld [vmem:[%s2803_s12 + $0x120] sm:$0xff]  ;;  %v476_v18 = vld [vmem:[%s2803_s12 + $0x128] sm:$0xff] }
  0x66   : > { %2217 = vmatpush3.bf16.msra.mxu1 %v2478_v24  ;;  %2154 = vmatprep.subr.bf16.mxu0 %v2479_v25  ;;  %v2503_v19 = vld [vmem:[%s2796_s26 + $0x160] sm:$0xff]   ;;  %v2040_v23 = vcombine.high %v471_v15, %v475_v16  ;;  %v2042_v25 = vcombine.high %v472_v17, %v476_v18  ;;  %v2509_v33 = vld [vmem:[%s2796_s26 + $0x1e8] sm:$0xff]   ;;  %v2039_v35 = vcombine.low %v471_v15, %v475_v16  ;;  %v457_v15 = vld [vmem:[%s2803_s12 + $0x90] sm:$0xff] }
  0x67   : > { %2218 = vmatprep.subr.bf16.mxu1 %v2480_v26  ;;  %v2504_v21 = vld [vmem:[%s2796_s26 + $0x120] sm:$0xff]   ;;  %v2510_v34 = vld [vmem:[%s2796_s26 + $0x1a8] sm:$0xff]   ;;  %v461_v16 = vld [vmem:[%s2803_s12 + $0xb0] sm:$0xff] }
  0x68   : > { %v2505_v24 = vld [vmem:[%s2796_s26 + $0x1e0] sm:$0xff]   ;;  %v488_v45 = vld [vmem:[%s2803_s12 + $0x188] sm:$0xff] }
  0x69   : > { %2155 = vmatpush3.bf16.msra.mxu0 %v2481_v27  ;;  %v2506_v26 = vld [vmem:[%s2796_s26 + $0x1a0] sm:$0xff]   ;;  %v492_v46 = vld [vmem:[%s2803_s12 + $0x1a8] sm:$0xff] }
  0x6a   : > { %2219 = vmatpush3.bf16.msra.mxu1 %v2482_v28  ;;  %2156 = vmatprep.subr.bf16.mxu0 %v2483_v29  ;;  %v479_v27 = vld [vmem:[%s2803_s12 + $0x140] sm:$0xff]  ;;  %v2507_v29 = vld [vmem:[%s2796_s26 + $0x168] sm:$0xff]   ;;  %v2057_v60 = vcombine.low %v488_v45, %v492_v46 }
  0x6b   : > { %2220 = vmatprep.subr.bf16.mxu1 %v2484_v30  ;;  %v483_v28 = vld [vmem:[%s2803_s12 + $0x160] sm:$0xff]  ;;  %v480_v30 = vld [vmem:[%s2803_s12 + $0x148] sm:$0xff] }
  0x6c   : > { %v2048_v37 = vcombine.high %v479_v27, %v483_v28  ;;  %v2047_v48 = vcombine.low %v479_v27, %v483_v28  ;;  %v496_v57 = vld [vmem:[%s2803_s12 + $0x1c8] sm:$0xff]  ;;  %v2027_v27 = vcombine.low %v457_v15, %v461_v16 }
  0x6d   : > { %2157 = vmatpush3.bf16.msra.mxu0 %v2485_v31  ;;  %v484_v31 = vld [vmem:[%s2803_s12 + $0x168] sm:$0xff] }
  0x6e   : > { %2221 = vmatpush3.bf16.msra.mxu1 %v2486_v32  ;;  %2270 = vmatprep.subr.bf16.mxu0 %v2487_v41  ;;  %v2508_v32 = vld [vmem:[%s2796_s26 + $0x128] sm:$0xff]   ;;  %v2050_v38 = vcombine.high %v480_v30, %v484_v31  ;;  %v2513_v41 = vld [vmem:[%s2796_s26 + $0x1f0] sm:$0xff]  }
  0x6f   : > { %2334 = vmatprep.subr.bf16.mxu1 %v2489_v43  ;;  %v491_v43 = vld [vmem:[%s2803_s12 + $0x1a0] sm:$0xff]  ;;  %v500_v58 = vld [vmem:[%s2803_s12 + $0x1e8] sm:$0xff] }
  0x70   : > { %1368 = vmatmul.mubr.bf16.vlgmr.msra.gmra.mrb[0].mxu0 %v2007_v36  ;;  %v2041_v36 = vcombine.low %v472_v17, %v476_v18  ;;  %v2065_v4 = vcombine.low %v496_v57, %v500_v58  ;;  %v458_v17 = vld [vmem:[%s2803_s12 + $0x98] sm:$0xff] }
  0x71   : > { %1465 = vmatmul.mubr.bf16.vlgmr.msra.gmra.mrb[0].mxu1 %v2009_v39  ;;  %2271 = vmatpush3.bf16.msra.mxu0 %v2488_v42  ;;  %v2511_v39 = vld [vmem:[%s2796_s26 + $0x170] sm:$0xff]   ;;  %v487_v42 = vld [vmem:[%s2803_s12 + $0x180] sm:$0xff]  ;;  %v462_v18 = vld [vmem:[%s2803_s12 + $0xb8] sm:$0xff] }
  0x72   : > { %2335 = vmatpush3.bf16.msra.mxu1 %v2490_v44  ;;  %1375 = vmatprep.mubr.bf16.mxu0 %v2016_v47  ;;  %v2514_v44 = vld [vmem:[%s2796_s26 + $0x1b0] sm:$0xff]   ;;  %v2515_v47 = vld [vmem:[%s2796_s26 + $0x178] sm:$0xff]   ;;  %v2055_v59 = vcombine.low %v487_v42, %v491_v43  ;;  %v2029_v28 = vcombine.low %v458_v17, %v462_v18 }
  0x73   : > { %1472 = vmatprep.mubr.bf16.mxu1 %v2018_v50  ;;  %2272 = vmatprep.subr.bf16.mxu0 %v2491_v51  ;;  %v2049_v50 = vcombine.low %v480_v30, %v484_v31  ;;  %v2056_v51 = vcombine.high %v487_v42, %v491_v43  ;;  %v473_v31 = vld [vmem:[%s2803_s12 + $0x110] sm:$0xff]  ;;  %v486_v42 = vld [vmem:[%s2803_s12 + $0x178] sm:$0xff] }
  0x74   : > { %2336 = vmatprep.subr.bf16.mxu1 %v2493_v55  ;;  %v495_v55 = vld [vmem:[%s2803_s12 + $0x1c0] sm:$0xff] }
  0x75   : > { %2273 = vmatpush3.bf16.msra.mxu0 %v2492_v53  ;;  %v2058_v53 = vcombine.high %v488_v45, %v492_v46 }
  0x76   : > { %2337 = vmatpush3.bf16.msra.mxu1 %v2494_v56  ;;  %2274 = vmatprep.subr.bf16.mxu0 %v2495_v63  ;;  %v499_v56 = vld [vmem:[%s2803_s12 + $0x1e0] sm:$0xff]  ;;  %v441_v63 = vld [vmem:[%s2803_s12 + $0x10] sm:$0xff] }
  0x77   : > { %2338 = vmatprep.subr.bf16.mxu1 %v2497_v1  ;;  %v442_v1 = vld [vmem:[%s2803_s12 + $0x18] sm:$0xff] }
  0x78   : > { %1376 = vmatmul.mubr.bf16.gmra.mrb[4].mxu0 %v2015_v52  ;;  %v2517_v52 = vld [vmem:[%s2796_s26 + $0x1f8] sm:$0xff]  }
  0x79   : > { %1473 = vmatmul.mubr.bf16.gmra.mrb[4].mxu1 %v2017_v54  ;;  %1383 = vmatprep.mubr.bf16.mxu0 %v2024_v61  ;;  %v2518_v54 = vld [vmem:[%s2796_s26 + $0x1b8] sm:$0xff]   ;;  %v2064_v61 = vcombine.high %v495_v55, %v499_v56 }
  0x7a   : > { %1480 = vmatprep.mubr.bf16.mxu1 %v2026_v62  ;;  %2275 = vmatpush3.bf16.msra.mxu0 %v2496_v0  ;;  %v2066_v62 = vcombine.high %v496_v57, %v500_v58  ;;  %v445_v0 = vld [vmem:[%s2803_s12 + $0x30] sm:$0xff]  ;;  %v498_v57 = vld [vmem:[%s2803_s12 + $0x1d8] sm:$0xff] }
  0x7b   : > { %2339 = vmatpush3.bf16.msra.mxu1 %v2498_v2  ;;  %2276 = vmatprep.subr.bf16.mxu0 %v2499_v11  ;;  %v446_v2 = vld [vmem:[%s2803_s12 + $0x38] sm:$0xff]  ;;  %v2012_v5 = vcombine.high %v441_v63, %v445_v0  ;;  %v2011_v11 = vcombine.low %v441_v63, %v445_v0 }
  0x7c   : > { %2340 = vmatprep.subr.bf16.mxu1 %v2501_v13  ;;  %v2014_v6 = vcombine.high %v442_v1, %v446_v2  ;;  %v502_v58 = vld [vmem:[%s2803_s12 + $0x1f8] sm:$0xff] }
  0x7d   : > { %v2069_v0 = vcombine.low %v498_v57, %v502_v58 }
  0x7e   : > { %2277 = vmatpush3.bf16.msra.mxu0 %v2500_v12  ;;  %v2013_v12 = vcombine.low %v442_v1, %v446_v2 }
  0x7f   : > { %2341 = vmatpush3.bf16.msra.mxu1 %v2502_v14  ;;  %2278 = vmatprep.subr.bf16.mxu0 %v2503_v19 }
  0x80   : > { %1384 = vmatmul.mubr.bf16.gmra.mrb[8].mxu0 %v2023_v3  ;;  %2342 = vmatprep.subr.bf16.mxu1 %v2505_v24  ;;  %v2063_v3 = vcombine.low %v495_v55, %v499_v56  ;;  %v469_v24 = vld [vmem:[%s2803_s12 + $0xf0] sm:$0xff] }
  0x81   : > { %1481 = vmatmul.mubr.bf16.gmra.mrb[8].mxu1 %v2025_v7  ;;  %1391 = vmatprep.mubr.bf16.mxu0 %v2032_v8  ;;  %v449_v7 = vld [vmem:[%s2803_s12 + $0x50] sm:$0xff] }
  0x82   : > { %1488 = vmatprep.mubr.bf16.mxu1 %v2034_v10  ;;  %2279 = vmatpush3.bf16.msra.mxu0 %v2504_v21  ;;  %v453_v8 = vld [vmem:[%s2803_s12 + $0x70] sm:$0xff]  ;;  %v454_v10 = vld [vmem:[%s2803_s12 + $0x78] sm:$0xff]  ;;  %v2028_v21 = vcombine.high %v457_v15, %v461_v16 }
  0x83   : > { %2343 = vmatpush3.bf16.msra.mxu1 %v2506_v26  ;;  %2280 = vmatprep.subr.bf16.mxu0 %v2507_v29  ;;  %v2020_v13 = vcombine.high %v449_v7, %v453_v8  ;;  %v2022_v14 = vcombine.high %v450_v9, %v454_v10  ;;  %v2019_v19 = vcombine.low %v449_v7, %v453_v8  ;;  %v470_v26 = vld [vmem:[%s2803_s12 + $0xf8] sm:$0xff]  ;;  %v497_v55 = vld [vmem:[%s2803_s12 + $0x1d0] sm:$0xff] }
  0x84   : > { %2344 = vmatprep.subr.bf16.mxu1 %v2509_v33  ;;  %v474_v33 = vld [vmem:[%s2803_s12 + $0x118] sm:$0xff]  ;;  %v501_v56 = vld [vmem:[%s2803_s12 + $0x1f0] sm:$0xff] }
  0x85   : > { %v2067_v63 = vcombine.low %v497_v55, %v501_v56 }
  0x86   : > { %2281 = vmatpush3.bf16.msra.mxu0 %v2508_v32  ;;  %v477_v32 = vld [vmem:[%s2803_s12 + $0x130] sm:$0xff] }
  0x87   : > { %2345 = vmatpush3.bf16.msra.mxu1 %v2510_v34  ;;  %2282 = vmatprep.subr.bf16.mxu0 %v2511_v39  ;;  %v478_v34 = vld [vmem:[%s2803_s12 + $0x138] sm:$0xff]  ;;  %v481_v39 = vld [vmem:[%s2803_s12 + $0x150] sm:$0xff]  ;;  %v2043_v43 = vcombine.low %v473_v31, %v477_v32 }
  0x88   : > { %1392 = vmatmul.mubr.bf16.gmra.mrb[12].mxu0 %v2031_v20  ;;  %2346 = vmatprep.subr.bf16.mxu1 %v2513_v41  ;;  %v2021_v20 = vcombine.low %v450_v9, %v454_v10  ;;  %v482_v41 = vld [vmem:[%s2803_s12 + $0x158] sm:$0xff] }
  0x89   : > { %1489 = vmatmul.mubr.bf16.gmra.mrb[12].mxu1 %v2033_v22  ;;  %1399 = vmatprep.mubr.bf16.mxu0 %v2040_v23  ;;  %v2030_v22 = vcombine.high %v458_v17, %v462_v18  ;;  %v465_v23 = vld [vmem:[%s2803_s12 + $0xd0] sm:$0xff]  ;;  %v2054_v46 = vcombine.high %v482_v41, %v486_v42 }
  0x8a   : > { %1496 = vmatprep.mubr.bf16.mxu1 %v2042_v25  ;;  %2283 = vmatpush3.bf16.msra.mxu0 %v2512_v40  ;;  %v466_v25 = vld [vmem:[%s2803_s12 + $0xd8] sm:$0xff]  ;;  %v2036_v29 = vcombine.high %v465_v23, %v469_v24  ;;  %v485_v40 = vld [vmem:[%s2803_s12 + $0x170] sm:$0xff] }
  0x8b   : > { %2347 = vmatpush3.bf16.msra.mxu1 %v2514_v44  ;;  %2284 = vmatprep.subr.bf16.mxu0 %v2515_v47  ;;  %v2038_v30 = vcombine.high %v466_v25, %v470_v26  ;;  %v2045_v44 = vcombine.low %v474_v33, %v478_v34  ;;  %v2052_v45 = vcombine.high %v481_v39, %v485_v40  ;;  %v489_v47 = vld [vmem:[%s2803_s12 + $0x190] sm:$0xff] }
  0x8c   : > { %2348 = vmatprep.subr.bf16.mxu1 %v2517_v52  ;;  %v2053_v52 = vcombine.low %v482_v41, %v486_v42 }
  0x8e   : > { %2285 = vmatpush3.bf16.msra.mxu0 %v2516_v49  ;;  %v490_v49 = vld [vmem:[%s2803_s12 + $0x198] sm:$0xff] }
  0x8f   : > { %2349 = vmatpush3.bf16.msra.mxu1 %v2518_v54 }
  0x90   : > { %1400 = vmatmul.mubr.bf16.gmra.mrb[16].mxu0 %v2039_v35  ;;  %v2035_v35 = vcombine.low %v465_v23, %v469_v24 }
  0x91   : > { %1497 = vmatmul.mubr.bf16.gmra.mrb[16].mxu1 %v2041_v36  ;;  %1407 = vmatprep.mubr.bf16.mxu0 %v2048_v37  ;;  %v2037_v36 = vcombine.low %v466_v25, %v470_v26  ;;  %v2044_v37 = vcombine.high %v473_v31, %v477_v32 }
  0x92   : > { %1504 = vmatprep.mubr.bf16.mxu1 %v2050_v38  ;;  %v2046_v38 = vcombine.high %v474_v33, %v478_v34 }
  0x98   : > { %1408 = vmatmul.mubr.bf16.gmra.mrb[20].mxu0 %v2047_v48  ;;  %v493_v48 = vld [vmem:[%s2803_s12 + $0x1b0] sm:$0xff] }
  0x99   : > { %1505 = vmatmul.mubr.bf16.gmra.mrb[20].mxu1 %v2049_v50  ;;  %1415 = vmatprep.mubr.bf16.mxu0 %v2056_v51  ;;  %v494_v50 = vld [vmem:[%s2803_s12 + $0x1b8] sm:$0xff]  ;;  %v2051_v51 = vcombine.low %v481_v39, %v485_v40 }
  0x9a   : > { %1512 = vmatprep.mubr.bf16.mxu1 %v2058_v53  ;;  %v2060_v53 = vcombine.high %v489_v47, %v493_v48  ;;  %v2062_v54 = vcombine.high %v490_v49, %v494_v50 }
  0xa0   : > { %1416 = vmatmul.mubr.bf16.gmra.mrb[24].mxu0 %v2055_v59  ;;  %v2059_v59 = vcombine.low %v489_v47, %v493_v48 }
  0xa1   : > { %1513 = vmatmul.mubr.bf16.gmra.mrb[24].mxu1 %v2057_v60  ;;  %1423 = vmatprep.mubr.bf16.mxu0 %v2064_v61  ;;  %v2061_v60 = vcombine.low %v490_v49, %v494_v50  ;;  %v2068_v61 = vcombine.high %v497_v55, %v501_v56 }
  0xa2   : > { %1520 = vmatprep.mubr.bf16.mxu1 %v2066_v62  ;;  %v2070_v62 = vcombine.high %v498_v57, %v502_v58 }
  0xa8   : > { %1424 = vmatmul.mubr.bf16.gmra.mrb[28].mxu0 %v2063_v3 }
  0xa9   : > { %1521 = vmatmul.mubr.bf16.gmra.mrb[28].mxu1 %v2065_v4  ;;  %1561 = vmatprep.mubr.bf16.mxu0 %v2012_v5 }
  0xaa   : > { %1658 = vmatprep.mubr.bf16.mxu1 %v2014_v6 }
  0xb0   : > { %1562 = vmatmul.mubr.bf16.vlgmr.msra.gmra.mrb[32].mxu0 %v2011_v11 }
  0xb1   : > { %1659 = vmatmul.mubr.bf16.vlgmr.msra.gmra.mrb[32].mxu1 %v2013_v12  ;;  %1569 = vmatprep.mubr.bf16.mxu0 %v2020_v13 }
  0xb2   : > { %1666 = vmatprep.mubr.bf16.mxu1 %v2022_v14 }
  0xb8   : > { %1570 = vmatmul.mubr.bf16.gmra.mrb[36].mxu0 %v2019_v19 }
  0xb9   : > { %1667 = vmatmul.mubr.bf16.gmra.mrb[36].mxu1 %v2021_v20  ;;  %1577 = vmatprep.mubr.bf16.mxu0 %v2028_v21 }
  0xba   : > { %1674 = vmatprep.mubr.bf16.mxu1 %v2030_v22 }
  0xc0   : > { %1578 = vmatmul.mubr.bf16.gmra.mrb[40].mxu0 %v2027_v27 }
  0xc1   : > { %1675 = vmatmul.mubr.bf16.gmra.mrb[40].mxu1 %v2029_v28  ;;  %1585 = vmatprep.mubr.bf16.mxu0 %v2036_v29 }
  0xc2   : > { %1682 = vmatprep.mubr.bf16.mxu1 %v2038_v30 }
  0xc8   : > { %1586 = vmatmul.mubr.bf16.gmra.mrb[44].mxu0 %v2035_v35 }
  0xc9   : > { %1683 = vmatmul.mubr.bf16.gmra.mrb[44].mxu1 %v2037_v36  ;;  %1593 = vmatprep.mubr.bf16.mxu0 %v2044_v37 }
  0xca   : > { %1690 = vmatprep.mubr.bf16.mxu1 %v2046_v38 }
  0xd0   : > { %1594 = vmatmul.mubr.bf16.gmra.mrb[48].mxu0 %v2043_v43 }
  0xd1   : > { %1691 = vmatmul.mubr.bf16.gmra.mrb[48].mxu1 %v2045_v44  ;;  %1601 = vmatprep.mubr.bf16.mxu0 %v2052_v45 }
  0xd2   : > { %1698 = vmatprep.mubr.bf16.mxu1 %v2054_v46 }
  0xd8   : > { %1602 = vmatmul.mubr.bf16.gmra.mrb[52].mxu0 %v2051_v51 }
  0xd9   : > { %1699 = vmatmul.mubr.bf16.gmra.mrb[52].mxu1 %v2053_v52  ;;  %1609 = vmatprep.mubr.bf16.mxu0 %v2060_v53 }
  0xda   : > { %1706 = vmatprep.mubr.bf16.mxu1 %v2062_v54 }
  0xe0   : > { %1610 = vmatmul.mubr.bf16.gmra.mrb[56].mxu0 %v2059_v59 }
  0xe1   : > { %1707 = vmatmul.mubr.bf16.gmra.mrb[56].mxu1 %v2061_v60  ;;  %1617 = vmatprep.mubr.bf16.mxu0 %v2068_v61 }
  0xe2   : > { %1714 = vmatprep.mubr.bf16.mxu1 %v2070_v62 }
  0xe8   : > { %1618 = vmatmul.mubr.bf16.gmra.mrb[60].mxu0 %v2067_v63 }
  0xe9   : > { %1715 = vmatmul.mubr.bf16.gmra.mrb[60].mxu1 %v2069_v0 }
 0x143   : > { %v2158_v1 = vpop.f32.mrb[0].mxu0 }
 0x144   : > { %v2222_v2 = vpop.f32.mrb[0].mxu1  ;;  %v2159_v3 = vpop.f32.mrb[1].mxu0 }
 0x145   : > { %v2160_v4 = vadd.f32 %v2159_v3, %v2158_v1  ;;  %v2223_v5 = vpop.f32.mrb[1].mxu1  ;;  %v2161_v6 = vpop.f32.mrb[2].mxu0 }
 0x146   : > { %v2224_v7 = vadd.f32 %v2223_v5, %v2222_v2  ;;  %v2225_v8 = vpop.f32.mrb[2].mxu1  ;;  %v2162_v9 = vpop.f32.mrb[3].mxu0 }
 0x147   : > { %v2163_v10 = vadd.f32 %v2162_v9, %v2161_v6  ;;  %v2226_v11 = vpop.f32.mrb[3].mxu1 }
 0x148   : > { %v2934_v12 = vadd.f32 %v2224_v7, %v2160_v4  ;;  %v2227_v13 = vadd.f32 %v2226_v11, %v2225_v8 }
 0x14a   : > { %v2936_v14 = vadd.f32 %v2227_v13, %v2163_v10 }
 0x14b   : > { %v2164_v15 = vpop.f32.mrb[4].mxu0 }
 0x14c   : > { %v2228_v16 = vpop.f32.mrb[4].mxu1  ;;  %v2165_v17 = vpop.f32.mrb[5].mxu0 }
 0x14d   : > { %v2166_v18 = vadd.f32 %v2165_v17, %v2164_v15  ;;  %v2229_v19 = vpop.f32.mrb[5].mxu1  ;;  %v2167_v20 = vpop.f32.mrb[6].mxu0 }
 0x14e   : > { %v2230_v21 = vadd.f32 %v2229_v19, %v2228_v16  ;;  %v2231_v22 = vpop.f32.mrb[6].mxu1  ;;  %v2168_v23 = vpop.f32.mrb[7].mxu0 }
 0x14f   : > { %v2169_v24 = vadd.f32 %v2168_v23, %v2167_v20  ;;  %v2232_v25 = vpop.f32.mrb[7].mxu1 }
 0x150   : > { %v2938_v26 = vadd.f32 %v2230_v21, %v2166_v18  ;;  %v2233_v27 = vadd.f32 %v2232_v25, %v2231_v22 }
 0x152   : > { %v2940_v28 = vadd.f32 %v2233_v27, %v2169_v24 }
 0x153   : > { %v2170_v29 = vpop.f32.mrb[8].mxu0 }
 0x154   : > { %v2234_v30 = vpop.f32.mrb[8].mxu1  ;;  %v2171_v31 = vpop.f32.mrb[9].mxu0 }
 0x155   : > { %v2172_v32 = vadd.f32 %v2171_v31, %v2170_v29  ;;  %v2235_v33 = vpop.f32.mrb[9].mxu1  ;;  %v2173_v34 = vpop.f32.mrb[10].mxu0 }
 0x156   : > { %v2236_v35 = vadd.f32 %v2235_v33, %v2234_v30  ;;  %v2237_v36 = vpop.f32.mrb[10].mxu1  ;;  %v2174_v37 = vpop.f32.mrb[11].mxu0 }
 0x157   : > { %v2175_v38 = vadd.f32 %v2174_v37, %v2173_v34  ;;  %v2238_v39 = vpop.f32.mrb[11].mxu1 }
 0x158   : > { %v2942_v40 = vadd.f32 %v2236_v35, %v2172_v32  ;;  %v2239_v41 = vadd.f32 %v2238_v39, %v2237_v36 }
 0x15a   : > { %v2944_v42 = vadd.f32 %v2239_v41, %v2175_v38 }
 0x15b   : > { %v2176_v43 = vpop.f32.mrb[12].mxu0 }
 0x15c   : > { %v2240_v44 = vpop.f32.mrb[12].mxu1  ;;  %v2177_v45 = vpop.f32.mrb[13].mxu0 }
 0x15d   : > { %v2178_v46 = vadd.f32 %v2177_v45, %v2176_v43  ;;  %v2241_v47 = vpop.f32.mrb[13].mxu1  ;;  %v2179_v48 = vpop.f32.mrb[14].mxu0 }
 0x15e   : > { %v2242_v49 = vadd.f32 %v2241_v47, %v2240_v44  ;;  %v2243_v50 = vpop.f32.mrb[14].mxu1  ;;  %v2180_v51 = vpop.f32.mrb[15].mxu0 }
 0x15f   : > { %v2181_v52 = vadd.f32 %v2180_v51, %v2179_v48  ;;  %v2244_v53 = vpop.f32.mrb[15].mxu1 }
 0x160   : > { %v2946_v54 = vadd.f32 %v2242_v49, %v2178_v46  ;;  %v2245_v55 = vadd.f32 %v2244_v53, %v2243_v50 }
 0x162   : > { %v2948_v56 = vadd.f32 %v2245_v55, %v2181_v52 }
 0x163   : > { %v2182_v57 = vpop.f32.mrb[16].mxu0 }
 0x164   : > { %v2246_v58 = vpop.f32.mrb[16].mxu1  ;;  %v2183_v59 = vpop.f32.mrb[17].mxu0 }
 0x165   : > { %v2184_v60 = vadd.f32 %v2183_v59, %v2182_v57  ;;  %v2247_v61 = vpop.f32.mrb[17].mxu1  ;;  %v2185_v62 = vpop.f32.mrb[18].mxu0 }
 0x166   : > { %v2248_v63 = vadd.f32 %v2247_v61, %v2246_v58  ;;  %v2249_v0 = vpop.f32.mrb[18].mxu1  ;;  %v2186_v1 = vpop.f32.mrb[19].mxu0 }
 0x167   : > { %v2187_v2 = vadd.f32 %v2186_v1, %v2185_v62  ;;  %v2250_v3 = vpop.f32.mrb[19].mxu1 }
 0x168   : > { %v2950_v4 = vadd.f32 %v2248_v63, %v2184_v60  ;;  %v2251_v5 = vadd.f32 %v2250_v3, %v2249_v0 }
 0x16a   : > { %v2952_v6 = vadd.f32 %v2251_v5, %v2187_v2 }
 0x16b   : > { %v2188_v7 = vpop.f32.mrb[20].mxu0 }
 0x16c   : > { %v2252_v8 = vpop.f32.mrb[20].mxu1  ;;  %v2189_v9 = vpop.f32.mrb[21].mxu0 }
 0x16d   : > { %v2190_v10 = vadd.f32 %v2189_v9, %v2188_v7  ;;  %v2253_v11 = vpop.f32.mrb[21].mxu1  ;;  %v2191_v13 = vpop.f32.mrb[22].mxu0  ;;  %v423_v7 = vld [vmem:[#allocation2] sm:$0xff] }
 0x16e   : > { %v2254_v15 = vadd.f32 %v2253_v11, %v2252_v8  ;;  %v2255_v16 = vpop.f32.mrb[22].mxu1  ;;  %v2192_v17 = vpop.f32.mrb[23].mxu0  ;;  %v424_v11 = vld [vmem:[#allocation2 + $0x8] sm:$0xff] }
 0x16f   : > { %v2193_v18 = vadd.f32 %v2192_v17, %v2191_v13  ;;  %v2256_v19 = vpop.f32.mrb[23].mxu1 }
 0x170   : > { %v2954_v20 = vadd.f32 %v2254_v15, %v2190_v10  ;;  %v2257_v21 = vadd.f32 %v2256_v19, %v2255_v16 }
 0x172   : > { %v2956_v22 = vadd.f32 %v2257_v21, %v2193_v18 }
 0x173   : > { %v2194_v23 = vpop.f32.mrb[24].mxu0 }
 0x174   : > { %v2258_v24 = vpop.f32.mrb[24].mxu1  ;;  %v2195_v25 = vpop.f32.mrb[25].mxu0 }
 0x175   : > { %v2196_v27 = vadd.f32 %v2195_v25, %v2194_v23  ;;  %v2259_v29 = vpop.f32.mrb[25].mxu1  ;;  %v2197_v30 = vpop.f32.mrb[26].mxu0 }
 0x176   : > { %v2260_v31 = vadd.f32 %v2259_v29, %v2258_v24  ;;  %v2261_v32 = vpop.f32.mrb[26].mxu1  ;;  %v2198_v33 = vpop.f32.mrb[27].mxu0 }
 0x177   : > { %v2199_v34 = vadd.f32 %v2198_v33, %v2197_v30  ;;  %v2262_v35 = vpop.f32.mrb[27].mxu1 }
 0x178   : > { %v2958_v36 = vadd.f32 %v2260_v31, %v2196_v27  ;;  %v2263_v37 = vadd.f32 %v2262_v35, %v2261_v32  ;;  %v426_v35 = vld [vmem:[#allocation2 + $0x18] sm:$0xff] }
 0x17a   : > { %v2960_v38 = vadd.f32 %v2263_v37, %v2199_v34 }
 0x17b   : > { %v2200_v39 = vpop.f32.mrb[28].mxu0 }
 0x17c   : > { %v2264_v41 = vpop.f32.mrb[28].mxu1  ;;  %v2201_v43 = vpop.f32.mrb[29].mxu0 }
 0x17d   : > { %v2202_v44 = vadd.f32 %v2201_v43, %v2200_v39  ;;  %v2265_v45 = vpop.f32.mrb[29].mxu1  ;;  %v2203_v46 = vpop.f32.mrb[30].mxu0 }
 0x17e   : > { %v2266_v47 = vadd.f32 %v2265_v45, %v2264_v41  ;;  %v2267_v48 = vpop.f32.mrb[30].mxu1  ;;  %v2204_v49 = vpop.f32.mrb[31].mxu0 }
 0x17f   : > { %v2205_v50 = vadd.f32 %v2204_v49, %v2203_v46  ;;  %v2268_v51 = vpop.f32.mrb[31].mxu1 }
 0x180   : > { %v2962_v52 = vadd.f32 %v2266_v47, %v2202_v44  ;;  %v2269_v53 = vadd.f32 %v2268_v51, %v2267_v48 }
 0x182   : > { %v2964_v55 = vadd.f32 %v2269_v53, %v2205_v50 }
 0x183   : > { %v2286_v57 = vpop.f32.mrb[32].mxu0 }
 0x184   : > { %v2350_v58 = vpop.f32.mrb[32].mxu1  ;;  %v2287_v59 = vpop.f32.mrb[33].mxu0 }
 0x185   : > { %v2288_v60 = vadd.f32 %v2287_v59, %v2286_v57  ;;  %v2351_v61 = vpop.f32.mrb[33].mxu1  ;;  %v2289_v62 = vpop.f32.mrb[34].mxu0 }
 0x186   : > { %v2352_v63 = vadd.f32 %v2351_v61, %v2350_v58  ;;  %v2353_v0 = vpop.f32.mrb[34].mxu1  ;;  %v2290_v1 = vpop.f32.mrb[35].mxu0  ;;  %v428_v61 = vld [vmem:[#allocation2 + $0x28] sm:$0xff] }
 0x187   : > { %v1564_v2 = vadd.f32 %v2288_v60, %v2934_v12  ;;  %v2291_v3 = vadd.f32 %v2290_v1, %v2289_v62  ;;  %v2354_v5 = vpop.f32.mrb[35].mxu1 }
 0x188   : > { %v2355_v8 = vadd.f32 %v2354_v5, %v2353_v0 }
 0x189   : > { %v1661_v9 = vadd.f32 %v2352_v63, %v1564_v2  ;;  %v1567_v10 = vadd.f32 %v2291_v3, %v2936_v14  ;;  %v425_v14 = vld [vmem:[#allocation2 + $0x10] sm:$0xff] }
 0x18b   : > { %v1723_v13 = vadd.f32 %v1661_v9, %v423_v7  ;;  %v1664_v15 = vadd.f32 %v2355_v8, %v1567_v10  ;;  %v2292_v16 = vpop.f32.mrb[36].mxu0 }
 0x18c   : > { %v2356_v17 = vpop.f32.mrb[36].mxu1  ;;  %v2293_v18 = vpop.f32.mrb[37].mxu0 }
 0x18d   : > { %1739 = vst [vmem:[#allocation2] sm:$0xff] %v1723_v13  ;;  %v1724_v19 = vadd.f32 %v1664_v15, %v424_v11  ;;  %v2294_v21 = vadd.f32 %v2293_v18, %v2292_v16  ;;  %v2357_v23 = vpop.f32.mrb[37].mxu1  ;;  %v2295_v24 = vpop.f32.mrb[38].mxu0 }
 0x18e   : > { %v2358_v25 = vadd.f32 %v2357_v23, %v2356_v17  ;;  %v2359_v12 = vpop.f32.mrb[38].mxu1  ;;  %v2296_v27 = vpop.f32.mrb[39].mxu0 }
 0x18f   : > { %1740 = vst [vmem:[#allocation2 + $0x8] sm:$0xff] %v1724_v19  ;;  %v1572_v29 = vadd.f32 %v2294_v21, %v2938_v26  ;;  %v2297_v30 = vadd.f32 %v2296_v27, %v2295_v24  ;;  %v2360_v31 = vpop.f32.mrb[39].mxu1  ;;  %v430_v19 = vld [vmem:[#allocation2 + $0x38] sm:$0xff] }
 0x190   : > { %v2361_v32 = vadd.f32 %v2360_v31, %v2359_v12 }
 0x191   : > { %v1669_v33 = vadd.f32 %v2358_v25, %v1572_v29  ;;  %v1575_v34 = vadd.f32 %v2297_v30, %v2940_v28  ;;  %v427_v28 = vld [vmem:[#allocation2 + $0x20] sm:$0xff] }
 0x193   : > { %v1725_v37 = vadd.f32 %v1669_v33, %v425_v14  ;;  %v1672_v39 = vadd.f32 %v2361_v32, %v1575_v34  ;;  %v2298_v41 = vpop.f32.mrb[40].mxu0 }
 0x194   : > { %v2362_v43 = vpop.f32.mrb[40].mxu1  ;;  %v2299_v44 = vpop.f32.mrb[41].mxu0 }
 0x195   : > { %1741 = vst [vmem:[#allocation2 + $0x10] sm:$0xff] %v1725_v37  ;;  %v1726_v45 = vadd.f32 %v1672_v39, %v426_v35  ;;  %v2300_v46 = vadd.f32 %v2299_v44, %v2298_v41  ;;  %v2363_v47 = vpop.f32.mrb[41].mxu1  ;;  %v2301_v48 = vpop.f32.mrb[42].mxu0 }
 0x196   : > { %v2364_v49 = vadd.f32 %v2363_v47, %v2362_v43  ;;  %v2365_v26 = vpop.f32.mrb[42].mxu1  ;;  %v2302_v50 = vpop.f32.mrb[43].mxu0  ;;  %v432_v43 = vld [vmem:[#allocation2 + $0x48] sm:$0xff] }
 0x197   : > { %1742 = vst [vmem:[#allocation2 + $0x18] sm:$0xff] %v1726_v45  ;;  %v1580_v51 = vadd.f32 %v2300_v46, %v2942_v40  ;;  %v2303_v53 = vadd.f32 %v2302_v50, %v2301_v48  ;;  %v2366_v57 = vpop.f32.mrb[43].mxu1 }
 0x198   : > { %v2367_v58 = vadd.f32 %v2366_v57, %v2365_v26 }
 0x199   : > { %v1677_v59 = vadd.f32 %v2364_v49, %v1580_v51  ;;  %v1583_v60 = vadd.f32 %v2303_v53, %v2944_v42  ;;  %v429_v42 = vld [vmem:[#allocation2 + $0x30] sm:$0xff] }
 0x19b   : > { %v1727_v62 = vadd.f32 %v1677_v59, %v427_v28  ;;  %v1680_v63 = vadd.f32 %v2367_v58, %v1583_v60  ;;  %v2304_v0 = vpop.f32.mrb[44].mxu0 }
 0x19c   : > { %v2368_v1 = vpop.f32.mrb[44].mxu1  ;;  %v2305_v2 = vpop.f32.mrb[45].mxu0 }
 0x19d   : > { %1743 = vst [vmem:[#allocation2 + $0x20] sm:$0xff] %v1727_v62  ;;  %v1728_v3 = vadd.f32 %v1680_v63, %v428_v61  ;;  %v2306_v5 = vadd.f32 %v2305_v2, %v2304_v0  ;;  %v2369_v7 = vpop.f32.mrb[45].mxu1  ;;  %v2307_v8 = vpop.f32.mrb[46].mxu0  ;;  %v434_v63 = vld [vmem:[#allocation2 + $0x58] sm:$0xff] }
 0x19e   : > { %v2370_v9 = vadd.f32 %v2369_v7, %v2368_v1  ;;  %v2371_v40 = vpop.f32.mrb[46].mxu1  ;;  %v2308_v10 = vpop.f32.mrb[47].mxu0 }
 0x19f   : > { %1744 = vst [vmem:[#allocation2 + $0x28] sm:$0xff] %v1728_v3  ;;  %v1588_v11 = vadd.f32 %v2306_v5, %v2946_v54  ;;  %v2309_v13 = vadd.f32 %v2308_v10, %v2307_v8  ;;  %v2372_v15 = vpop.f32.mrb[47].mxu1 }
 0x1a0   : > { %v2373_v16 = vadd.f32 %v2372_v15, %v2371_v40 }
 0x1a1   : > { %v1685_v17 = vadd.f32 %v2370_v9, %v1588_v11  ;;  %v1591_v18 = vadd.f32 %v2309_v13, %v2948_v56  ;;  %v431_v56 = vld [vmem:[#allocation2 + $0x40] sm:$0xff] }
 0x1a3   : > { %v1729_v21 = vadd.f32 %v1685_v17, %v429_v42  ;;  %v1688_v23 = vadd.f32 %v2373_v16, %v1591_v18  ;;  %v2310_v24 = vpop.f32.mrb[48].mxu0 }
 0x1a4   : > { %v2374_v25 = vpop.f32.mrb[48].mxu1  ;;  %v2311_v12 = vpop.f32.mrb[49].mxu0 }
 0x1a5   : > { %1745 = vst [vmem:[#allocation2 + $0x30] sm:$0xff] %v1729_v21  ;;  %v1730_v27 = vadd.f32 %v1688_v23, %v430_v19  ;;  %v2312_v29 = vadd.f32 %v2311_v12, %v2310_v24  ;;  %v2375_v30 = vpop.f32.mrb[49].mxu1  ;;  %v2313_v31 = vpop.f32.mrb[50].mxu0  ;;  %v436_v19 = vld [vmem:[#allocation2 + $0x68] sm:$0xff] }
 0x1a6   : > { %v2376_v14 = vadd.f32 %v2375_v30, %v2374_v25  ;;  %v2377_v54 = vpop.f32.mrb[50].mxu1  ;;  %v2314_v32 = vpop.f32.mrb[51].mxu0 }
 0x1a7   : > { %1746 = vst [vmem:[#allocation2 + $0x38] sm:$0xff] %v1730_v27  ;;  %v1596_v33 = vadd.f32 %v2312_v29, %v2950_v4  ;;  %v2315_v34 = vadd.f32 %v2314_v32, %v2313_v31  ;;  %v2378_v35 = vpop.f32.mrb[51].mxu1 }
 0x1a8   : > { %v2379_v37 = vadd.f32 %v2378_v35, %v2377_v54 }
 0x1a9   : > { %v1693_v39 = vadd.f32 %v2376_v14, %v1596_v33  ;;  %v1599_v41 = vadd.f32 %v2315_v34, %v2952_v6  ;;  %v433_v6 = vld [vmem:[#allocation2 + $0x50] sm:$0xff] }
 0x1ab   : > { %v1731_v44 = vadd.f32 %v1693_v39, %v431_v56  ;;  %v1696_v45 = vadd.f32 %v2379_v37, %v1599_v41  ;;  %v2316_v46 = vpop.f32.mrb[52].mxu0  ;;  %v438_v39 = vld [vmem:[#allocation2 + $0x78] sm:$0xff] }
 0x1ac   : > { %v2380_v47 = vpop.f32.mrb[52].mxu1  ;;  %v2317_v48 = vpop.f32.mrb[53].mxu0 }
 0x1ad   : > { %1747 = vst [vmem:[#allocation2 + $0x40] sm:$0xff] %v1731_v44  ;;  %v1732_v49 = vadd.f32 %v1696_v45, %v432_v43  ;;  %v2318_v26 = vadd.f32 %v2317_v48, %v2316_v46  ;;  %v2381_v50 = vpop.f32.mrb[53].mxu1  ;;  %v2319_v51 = vpop.f32.mrb[54].mxu0  ;;  %v1759_v45 = vld [vmem:[#allocation2] sm:$0xff] (!%p2135_p13)  ;;  %v1761_v48 = vld [vmem:[#allocation2 + $0x10] sm:$0xff] (!%p2135_p13) }
 0x1ae   : > { %v2382_v53 = vadd.f32 %v2381_v50, %v2380_v47  ;;  %v2383_v4 = vpop.f32.mrb[54].mxu1  ;;  %v2320_v57 = vpop.f32.mrb[55].mxu0  ;;  %v1760_v47 = vld [vmem:[#allocation2 + $0x8] sm:$0xff] (!%p2135_p13)  ;;  %v1762_v50 = vld [vmem:[#allocation2 + $0x18] sm:$0xff] (!%p2135_p13) }
 0x1af   : > { %1748 = vst [vmem:[#allocation2 + $0x48] sm:$0xff] %v1732_v49  ;;  %v1604_v28 = vadd.f32 %v2318_v26, %v2954_v20  ;;  %v2321_v58 = vadd.f32 %v2320_v57, %v2319_v51  ;;  %v2384_v59 = vpop.f32.mrb[55].mxu1  ;;  %v1763_v51 = vld [vmem:[#allocation2 + $0x20] sm:$0xff] (!%p2135_p13) }
 0x1b0   : > { %v2385_v60 = vadd.f32 %v2384_v59, %v2383_v4  ;;  %v1765_v59 = vld [vmem:[#allocation2 + $0x30] sm:$0xff] (!%p2135_p13) }
 0x1b1   : > { %v1701_v61 = vadd.f32 %v2382_v53, %v1604_v28  ;;  %v1607_v62 = vadd.f32 %v2321_v58, %v2956_v22  ;;  %v435_v22 = vld [vmem:[#allocation2 + $0x60] sm:$0xff]  ;;  %v1764_v53 = vld [vmem:[#allocation2 + $0x28] sm:$0xff] (!%p2135_p13) }
 0x1b3   : > { %v1733_v0 = vadd.f32 %v1701_v61, %v433_v6  ;;  %v1704_v1 = vadd.f32 %v2385_v60, %v1607_v62  ;;  %v2322_v2 = vpop.f32.mrb[56].mxu0  ;;  %v1766_v6 = vld [vmem:[#allocation2 + $0x38] sm:$0xff] (!%p2135_p13)  ;;  %v3002_v60 = vld [vmem:[%s3085_s2 + $0x2] ss:$0 sm:$0xff] (!%p2135_p13) }
 0x1b4   : > { %v2386_v3 = vpop.f32.mrb[56].mxu1  ;;  %v2323_v5 = vpop.f32.mrb[57].mxu0 }
 0x1b5   : > { %1749 = vst [vmem:[#allocation2 + $0x50] sm:$0xff] %v1733_v0  ;;  %v1734_v7 = vadd.f32 %v1704_v1, %v434_v63  ;;  %v2324_v8 = vadd.f32 %v2323_v5, %v2322_v2  ;;  %v2387_v9 = vpop.f32.mrb[57].mxu1  ;;  %v2325_v40 = vpop.f32.mrb[58].mxu0 }
 0x1b6   : > { %v2388_v10 = vadd.f32 %v2387_v9, %v2386_v3  ;;  %v2389_v20 = vpop.f32.mrb[58].mxu1  ;;  %v2326_v11 = vpop.f32.mrb[59].mxu0 }
 0x1b7   : > { %1750 = vst [vmem:[#allocation2 + $0x58] sm:$0xff] %v1734_v7  ;;  %v1612_v13 = vadd.f32 %v2324_v8, %v2958_v36  ;;  %v2327_v15 = vadd.f32 %v2326_v11, %v2325_v40  ;;  %v2390_v42 = vpop.f32.mrb[59].mxu1 }
 0x1b8   : > { %v2391_v16 = vadd.f32 %v2390_v42, %v2389_v20  ;;  %v1768_v42 = vld [vmem:[#allocation2 + $0x48] sm:$0xff] (!%p2135_p13) }
 0x1b9   : > { %v1709_v17 = vadd.f32 %v2388_v10, %v1612_v13  ;;  %v1615_v18 = vadd.f32 %v2327_v15, %v2960_v38  ;;  %v437_v38 = vld [vmem:[#allocation2 + $0x70] sm:$0xff]  ;;  %v1767_v10 = vld [vmem:[#allocation2 + $0x40] sm:$0xff] (!%p2135_p13) }
 0x1bb   : > { %v1735_v21 = vadd.f32 %v1709_v17, %v435_v22  ;;  %v1712_v23 = vadd.f32 %v2391_v16, %v1615_v18  ;;  %v2328_v24 = vpop.f32.mrb[60].mxu0 }
 0x1bc   : > { %v2392_v25 = vpop.f32.mrb[60].mxu1  ;;  %v2329_v12 = vpop.f32.mrb[61].mxu0  ;;  %v1769_v22 = vld [vmem:[#allocation2 + $0x50] sm:$0xff] (!%p2135_p13) }
 0x1bd   : > { %1751 = vst [vmem:[#allocation2 + $0x60] sm:$0xff] %v1735_v21  ;;  %v1736_v27 = vadd.f32 %v1712_v23, %v436_v19  ;;  %v2330_v29 = vadd.f32 %v2329_v12, %v2328_v24  ;;  %v2393_v30 = vpop.f32.mrb[61].mxu1  ;;  %v2331_v31 = vpop.f32.mrb[62].mxu0 }
 0x1be   : > { %v2394_v14 = vadd.f32 %v2393_v30, %v2392_v25  ;;  %v2395_v36 = vpop.f32.mrb[62].mxu1  ;;  %v2332_v54 = vpop.f32.mrb[63].mxu0  ;;  %v1770_v21 = vld [vmem:[#allocation2 + $0x58] sm:$0xff] (!%p2135_p13) }
 0x1bf   : > { %1752 = vst [vmem:[#allocation2 + $0x68] sm:$0xff] %v1736_v27  ;;  %v1620_v32 = vadd.f32 %v2330_v29, %v2962_v52  ;;  %v2333_v33 = vadd.f32 %v2332_v54, %v2331_v31  ;;  %v2396_v34 = vpop.f32.mrb[63].mxu1  ;;  %v2986_v52 = vld [vmem:[%s3085_s2] ss:$0 sm:$0xff] (!%p2135_p13) }
 0x1c0   : > { %v2397_v35 = vadd.f32 %v2396_v34, %v2395_v36  ;;  %v1780_v46 = vadd.f32 (!%p2135_p13), %v2986_v52, %v1759_v45  ;;  %v1781_v49 = vadd.f32 (!%p2135_p13), %v2986_v52, %v1760_v47  ;;  %v1782_v26 = vadd.f32 (!%p2135_p13), %v2986_v52, %v1761_v48 }
 0x1c1   : > { %v1717_v56 = vadd.f32 %v2394_v14, %v1620_v32  ;;  %v1623_v37 = vadd.f32 %v2333_v33, %v2964_v55  ;;  %1758 = sbr.rel (%p2135_p13) target bundleno = 472 (0x1d8), region = 63  ;;  %v2992_v55 = vld [vmem:[%s3085_s2 + $0x1] ss:$0 sm:$0xff] (!%p2135_p13)  ;;  %v1783_v57 = vadd.f32 (!%p2135_p13), %v2986_v52, %v1762_v50  ;;  %v1784_v28 = vadd.f32 (!%p2135_p13), %v2986_v52, %v1763_v51 }
 0x1c2   : > { %v1796_v4 = vmax.f32 (!%p2135_p13), %v1780_v46, 0.0  ;;  %v1785_v58 = vadd.f32 (!%p2135_p13), %v2986_v52, %v1764_v53  ;;  %v1797_v61 = vmax.f32 (!%p2135_p13), %v1781_v49, 0.0  ;;  %v1798_v62 = vmax.f32 (!%p2135_p13), %v1782_v26, 0.0 }
 0x1c3   : > { %v1737_v41 = vadd.f32 %v1717_v56, %v437_v38  ;;  %v1720_v43 = vadd.f32 %v2397_v35, %v1623_v37  ;;  %v1786_v63 = vadd.f32 (!%p2135_p13), %v2986_v52, %v1765_v59  ;;  %v1787_v0 = vadd.f32 (!%p2135_p13), %v2986_v52, %v1766_v6 }
 0x1c4   : > { %v1817_v1 = vmul.f32 (!%p2135_p13), %v2992_v55, %v1796_v4  ;;  %v1799_v2 = vmax.f32 (!%p2135_p13), %v1783_v57, 0.0  ;;  %v1800_v3 = vmax.f32 (!%p2135_p13), %v1784_v28, 0.0  ;;  %v1801_v5 = vmax.f32 (!%p2135_p13), %v1785_v58, 0.0  ;;  %v1771_v23 = vld [vmem:[#allocation2 + $0x60] sm:$0xff] (!%p2135_p13) }
 0x1c5   : > { %1753 = vst [vmem:[#allocation2 + $0x70] sm:$0xff] %v1737_v41  ;;  %v1738_v44 = vadd.f32 %v1720_v43, %v438_v39  ;;  %v1818_v7 = vmul.f32 (!%p2135_p13), %v2992_v55, %v1797_v61  ;;  %v1819_v8 = vmul.f32 (!%p2135_p13), %v2992_v55, %v1798_v62  ;;  %v1802_v9 = vmax.f32 (!%p2135_p13), %v1786_v63, 0.0 }
 0x1c6   : > { %v1803_v40 = vmax.f32 (!%p2135_p13), %v1787_v0, 0.0  ;;  %v1838_v20 = vadd.f32 (!%p2135_p13), %v3002_v60, %v1817_v1  ;;  %v1820_v11 = vmul.f32 (!%p2135_p13), %v2992_v55, %v1799_v2  ;;  %v1821_v13 = vmul.f32 (!%p2135_p13), %v2992_v55, %v1800_v3  ;;  %v1772_v24 = vld [vmem:[#allocation2 + $0x68] sm:$0xff] (!%p2135_p13) }
 0x1c7   : > { %1754 = vst [vmem:[#allocation2 + $0x78] sm:$0xff] %v1738_v44  ;;  %v1822_v15 = vmul.f32 (!%p2135_p13), %v2992_v55, %v1801_v5  ;;  %v1839_v16 = vadd.f32 (!%p2135_p13), %v3002_v60, %v1818_v7  ;;  %v1840_v17 = vadd.f32 (!%p2135_p13), %v3002_v60, %v1819_v8  ;;  %v1823_v18 = vmul.f32 (!%p2135_p13), %v2992_v55, %v1802_v9 }
 0x1c8   : > { %v1824_v19 = vmul.f32 %v2992_v55, %v1803_v40  ;;  %1854 = vst [vmem:[%s2801_s30] sm:$0xff] %v1838_v20  ;;  %v1841_v25 = vadd.f32 %v3002_v60, %v1820_v11  ;;  %v1842_v12 = vadd.f32 %v3002_v60, %v1821_v13  ;;  %v1788_v29 = vadd.f32 %v2986_v52, %v1767_v10 }
 0x1c9   : > { %v1843_v27 = vadd.f32 %v3002_v60, %v1822_v15  ;;  %1855 = vst [vmem:[%s2801_s30 + $0x8] sm:$0xff] %v1839_v16  ;;  %1856 = vst [vmem:[%s2801_s30 + $0x10] sm:$0xff] %v1840_v17  ;;  %v1844_v14 = vadd.f32 %v3002_v60, %v1823_v18  ;;  %v1789_v54 = vadd.f32 %v2986_v52, %v1768_v42 }
 0x1ca   : > { %v1845_v36 = vadd.f32 %v3002_v60, %v1824_v19  ;;  %v1790_v32 = vadd.f32 %v2986_v52, %v1769_v22  ;;  %1857 = vst [vmem:[%s2801_s30 + $0x18] sm:$0xff] %v1841_v25  ;;  %1858 = vst [vmem:[%s2801_s30 + $0x20] sm:$0xff] %v1842_v12  ;;  %v1804_v33 = vmax.f32 %v1788_v29, 0.0  ;;  %v1791_v34 = vadd.f32 %v2986_v52, %v1770_v21 }
 0x1cb   : > { %1859 = vst [vmem:[%s2801_s30 + $0x28] sm:$0xff] %v1843_v27  ;;  %v1792_v38 = vadd.f32 %v2986_v52, %v1771_v23  ;;  %v1793_v35 = vadd.f32 %v2986_v52, %v1772_v24  ;;  %1860 = vst [vmem:[%s2801_s30 + $0x30] sm:$0xff] %v1844_v14  ;;  %v1805_v56 = vmax.f32 %v1789_v54, 0.0 }
 0x1cc   : > { %v1773_v30 = vld [vmem:[#allocation2 + $0x70] sm:$0xff]  ;;  %1861 = vst [vmem:[%s2801_s30 + $0x38] sm:$0xff] %v1845_v36  ;;  %v1806_v37 = vmax.f32 %v1790_v32, 0.0  ;;  %v1825_v43 = vmul.f32 %v2992_v55, %v1804_v33  ;;  %v1807_v44 = vmax.f32 %v1791_v34, 0.0 }
 0x1cd   : > { %v1794_v39 = vadd.f32 %v2986_v52, %v1773_v30  ;;  %v1808_v45 = vmax.f32 %v1792_v38, 0.0  ;;  %v1809_v46 = vmax.f32 %v1793_v35, 0.0  ;;  %v1826_v47 = vmul.f32 %v2992_v55, %v1805_v56 }
 0x1ce   : > { %v1774_v31 = vld [vmem:[#allocation2 + $0x78] sm:$0xff]  ;;  %v1827_v48 = vmul.f32 %v2992_v55, %v1806_v37  ;;  %v1846_v50 = vadd.f32 %v3002_v60, %v1825_v43  ;;  %v1828_v51 = vmul.f32 %v2992_v55, %v1807_v44 }
 0x1cf   : > { %v1795_v41 = vadd.f32 %v2986_v52, %v1774_v31  ;;  %v1810_v49 = vmax.f32 %v1794_v39, 0.0  ;;  %v1829_v52 = vmul.f32 %v2992_v55, %v1808_v45  ;;  %v1830_v53 = vmul.f32 %v2992_v55, %v1809_v46 }
 0x1d0   : > { %v1847_v4 = vadd.f32 %v3002_v60, %v1826_v47  ;;  %v1848_v57 = vadd.f32 %v3002_v60, %v1827_v48  ;;  %1862 = vst [vmem:[%s2801_s30 + $0x40] sm:$0xff] %v1846_v50  ;;  %v1849_v59 = vadd.f32 %v3002_v60, %v1828_v51 }
 0x1d1   : > { %v1811_v26 = vmax.f32 %v1795_v41, 0.0  ;;  %v1831_v28 = vmul.f32 %v2992_v55, %v1810_v49  ;;  %v1850_v6 = vadd.f32 %v3002_v60, %v1829_v52  ;;  %v1851_v61 = vadd.f32 %v3002_v60, %v1830_v53 }
 0x1d2   : > { %1863 = vst [vmem:[%s2801_s30 + $0x48] sm:$0xff] %v1847_v4  ;;  %1864 = vst [vmem:[%s2801_s30 + $0x50] sm:$0xff] %v1848_v57 }
 0x1d3   : > { %v1832_v58 = vmul.f32 %v2992_v55, %v1811_v26  ;;  %v1852_v62 = vadd.f32 %v3002_v60, %v1831_v28  ;;  %1865 = vst [vmem:[%s2801_s30 + $0x58] sm:$0xff] %v1849_v59  ;;  %1866 = vst [vmem:[%s2801_s30 + $0x60] sm:$0xff] %v1850_v6 }
 0x1d4   : > { %1867 = vst [vmem:[%s2801_s30 + $0x68] sm:$0xff] %v1851_v61 }
 0x1d5   : > { %v1853_v63 = vadd.f32 %v3002_v60, %v1832_v58  ;;  %1868 = vst [vmem:[%s2801_s30 + $0x70] sm:$0xff] %v1852_v62 }
 0x1d7   : > { %1869 = vst [vmem:[%s2801_s30 + $0x78] sm:$0xff] %v1853_v63 }
 0x1d8 PF: > { %s13_s18 = sadd.s32 1, %s2573_s18   ;;  %s3087_s12 = smov %s2553_s13 }
 0x1d9   : > { %p10_p0 = scmp.ge.s32.totalorder %s13_s18, 18   ;;  %s3088_s13 = smov %s2647_s25 }
 0x1da   : > { %s3089_s14 = smov %s2565_s16  ;;  %s3090_s15 = smov %s2569_s17 }
 0x1db   : > { %s3091_s16 = smov %s3094_s19  ;;  %s3092_s17 = smov %s3098_s20 }
 0x1dc   :  { %12 = sbr.rel (!%p10_p0) target bundleno = 4 (0x4), region = 104 }

// kernel: multitasking_forward.6
= control target key start
LH: loop header
LB: loop body
LE: loop exit
PB: predicated region body
PF: predicated region fallthrough
CT: control target
= control target key end

     0   :  { %s1529_s12 = smov 0   ;;  %s1531_s13 = smov 0   ;;  %s1864_s0 = inlined_call_operand.vmem [shape: bf16[768,1152], index: 0, kind: input, shape index: {}]   ;;  %s1865_s1 = inlined_call_operand.vmem [shape: bf16[1152,128], index: 1, kind: input, shape index: {}]   ;;  %s1866_s2 = inlined_call_operand.vmem [shape: f32[8,128], index: 2, kind: input, shape index: {}]   ;;  %s1867_s3 = inlined_call_operand.vmem [shape: f32[768,128], index: 3, kind: output, shape index: {}]  }
   0x1   :  { %s1533_s14 = smov 0   ;;  %s1535_s15 = smov 0  }
   0x2   :  { %s1537_s16 = smov 0   ;;  %s1539_s17 = smov 0  }
   0x3   :  { %s1541_s18 = smov 0  }
   0x4 LB: > { %s25_s19 = sadd.s32 1, %s1498_s16  ;;  %s32_s20 = sadd.s32 1, %s1502_s17  ;;  %s1506_s18 = sphi %s1541_s18, %s13_s18   ;;  %s1502_s17 = sphi %s1539_s17, %s1873_s17   ;;  %s1498_s16 = sphi %s1537_s16, %s1872_s16   ;;  %s1494_s15 = sphi %s1535_s15, %s1871_s15   ;;  %s1490_s14 = sphi %s1533_s14, %s1870_s14   ;;  %s1486_s13 = sphi %s1531_s13, %s1869_s13   ;;  %s1482_s12 = sphi %s1529_s12, %s1868_s12  }
   0x5   : > { %p26_p0 = scmp.ge.s32.totalorder %s25_s19, 9  ;;  %p48_p1 = scmp.ne.s32.totalorder %s1486_s13, %s1482_s12 }
   0x6   : > { %p49_p2 = scmp.eq.s32.totalorder %s1506_s18, 0  ;;  %s41_s24 = sadd.s32 1, %s1486_s13 }
   0x7   : > { %s1875_s19 = smov (%p26_p0, %s25_s19), 0  ;;  %s1877_s20 = smov (!%p26_p0, %s32_s20), %s1502_s17 }
   0x8   : > { %p50_p3 = por %p49_p2, %p48_p1  ;;  %p34_p4 = scmp.ge.s32.totalorder %s1877_s20, 3 }
   0x9   : > { %s37_s21 = ssub.s32 %s1498_s16, %s1875_s19  ;;  %p1240_p6 = scmp.ge.s32.totalorder %s1506_s18, 27 }
   0xa   : > { %s1879_s20 = smov (%p34_p4, %s1877_s20), 0 }
   0xb   : > { %s36_s22 = ssub.s32 %s1502_s17, %s1879_s20  ;;  %163 = sbr.rel (%p1240_p6) target bundleno = 46 (0x2e), region = 20 }
   0xc   : > { %s38_s23 = sor.u32 %s37_s21, %s36_s22 }
   0xd   : > { %p39_p5 = scmp.eq.s32.totalorder %s38_s23, 0 }
   0xf   : > { %s1580_s25 = scalar_select %p39_p5, %s1486_s13, %s41_s24  }
  0x12   : > { %166 = sbr.rel (!%p50_p3) target bundleno = 46 (0x2e), region = 24  ;;  %s168_s26 = sand.u32 (%p50_p3), 1, %s1486_s13  }
  0x13   : > { %s1370_s27 = smul.u32 (%p50_p3), 288, %s1502_s17  ;;  %s1241_s28 = sshll.u32 (%p50_p3), %s168_s26, 7 }
  0x14   : > { %s1594_s7 = scalar_lea.vmem (%p50_p3), [#allocation3], %s1241_s28 }
  0x15   : > { %s173_s29 = sadd.s32 (%p50_p3), %s1498_s16, %s1370_s27 }
  0x16   : > { %s1244_s30 = sshll.u32 (%p50_p3), %s173_s29, 2 }
  0x17   : > { %s1589_s6 = scalar_lea.vmem (%p50_p3), %s1864_s0, %s1244_s30 }
  0x18   : > { %v191_v0 = vld [vmem:[%s1589_s6] sm:$0xf] (%p50_p3)  ;;  %v193_v1 = vld [vmem:[%s1589_s6 + $0x24] sm:$0xf] (%p50_p3)  ;;  %v195_v2 = vld [vmem:[%s1589_s6 + $0x48] sm:$0xf] (%p50_p3) }
  0x19   : > { %192 = vst [vmem:[%s1594_s7] sm:$0xf] %v191_v0  ;;  %194 = vst [vmem:[%s1594_s7 + $0x4] sm:$0xf] %v193_v1  ;;  %v197_v3 = vld [vmem:[%s1589_s6 + $0x6c] sm:$0xf] }
  0x1a   : > { %196 = vst [vmem:[%s1594_s7 + $0x8] sm:$0xf] %v195_v2  ;;  %v199_v4 = vld [vmem:[%s1589_s6 + $0x90] sm:$0xf]  ;;  %v201_v5 = vld [vmem:[%s1589_s6 + $0xb4] sm:$0xf] }
  0x1b   : > { %198 = vst [vmem:[%s1594_s7 + $0xc] sm:$0xf] %v197_v3  ;;  %200 = vst [vmem:[%s1594_s7 + $0x10] sm:$0xf] %v199_v4  ;;  %v203_v6 = vld [vmem:[%s1589_s6 + $0xd8] sm:$0xf] }
  0x1c   : > { %202 = vst [vmem:[%s1594_s7 + $0x14] sm:$0xf] %v201_v5  ;;  %v205_v7 = vld [vmem:[%s1589_s6 + $0xfc] sm:$0xf]  ;;  %v207_v8 = vld [vmem:[%s1589_s6 + $0x120] sm:$0xf] }
  0x1d   : > { %204 = vst [vmem:[%s1594_s7 + $0x18] sm:$0xf] %v203_v6  ;;  %206 = vst [vmem:[%s1594_s7 + $0x1c] sm:$0xf] %v205_v7  ;;  %v209_v9 = vld [vmem:[%s1589_s6 + $0x144] sm:$0xf] }
  0x1e   : > { %208 = vst [vmem:[%s1594_s7 + $0x20] sm:$0xf] %v207_v8  ;;  %v211_v10 = vld [vmem:[%s1589_s6 + $0x168] sm:$0xf]  ;;  %v213_v11 = vld [vmem:[%s1589_s6 + $0x18c] sm:$0xf] }
  0x1f   : > { %210 = vst [vmem:[%s1594_s7 + $0x24] sm:$0xf] %v209_v9  ;;  %212 = vst [vmem:[%s1594_s7 + $0x28] sm:$0xf] %v211_v10  ;;  %v215_v12 = vld [vmem:[%s1589_s6 + $0x1b0] sm:$0xf] }
  0x20   : > { %214 = vst [vmem:[%s1594_s7 + $0x2c] sm:$0xf] %v213_v11  ;;  %v217_v13 = vld [vmem:[%s1589_s6 + $0x1d4] sm:$0xf]  ;;  %v219_v14 = vld [vmem:[%s1589_s6 + $0x1f8] sm:$0xf] }
  0x21   : > { %216 = vst [vmem:[%s1594_s7 + $0x30] sm:$0xf] %v215_v12  ;;  %218 = vst [vmem:[%s1594_s7 + $0x34] sm:$0xf] %v217_v13  ;;  %v221_v15 = vld [vmem:[%s1589_s6 + $0x21c] sm:$0xf] }
  0x22   : > { %220 = vst [vmem:[%s1594_s7 + $0x38] sm:$0xf] %v219_v14  ;;  %v223_v16 = vld [vmem:[%s1589_s6 + $0x240] sm:$0xf]  ;;  %v225_v17 = vld [vmem:[%s1589_s6 + $0x264] sm:$0xf] }
  0x23   : > { %222 = vst [vmem:[%s1594_s7 + $0x3c] sm:$0xf] %v221_v15  ;;  %224 = vst [vmem:[%s1594_s7 + $0x40] sm:$0xf] %v223_v16  ;;  %v227_v18 = vld [vmem:[%s1589_s6 + $0x288] sm:$0xf] }
  0x24   : > { %226 = vst [vmem:[%s1594_s7 + $0x44] sm:$0xf] %v225_v17  ;;  %v229_v19 = vld [vmem:[%s1589_s6 + $0x2ac] sm:$0xf]  ;;  %v231_v20 = vld [vmem:[%s1589_s6 + $0x2d0] sm:$0xf] }
  0x25   : > { %228 = vst [vmem:[%s1594_s7 + $0x48] sm:$0xf] %v227_v18  ;;  %230 = vst [vmem:[%s1594_s7 + $0x4c] sm:$0xf] %v229_v19  ;;  %v233_v21 = vld [vmem:[%s1589_s6 + $0x2f4] sm:$0xf] }
  0x26   : > { %232 = vst [vmem:[%s1594_s7 + $0x50] sm:$0xf] %v231_v20  ;;  %v235_v22 = vld [vmem:[%s1589_s6 + $0x318] sm:$0xf]  ;;  %v237_v23 = vld [vmem:[%s1589_s6 + $0x33c] sm:$0xf] }
  0x27   : > { %234 = vst [vmem:[%s1594_s7 + $0x54] sm:$0xf] %v233_v21  ;;  %236 = vst [vmem:[%s1594_s7 + $0x58] sm:$0xf] %v235_v22  ;;  %v239_v24 = vld [vmem:[%s1589_s6 + $0x360] sm:$0xf] }
  0x28   : > { %238 = vst [vmem:[%s1594_s7 + $0x5c] sm:$0xf] %v237_v23  ;;  %v241_v25 = vld [vmem:[%s1589_s6 + $0x384] sm:$0xf]  ;;  %v243_v26 = vld [vmem:[%s1589_s6 + $0x3a8] sm:$0xf] }
  0x29   : > { %240 = vst [vmem:[%s1594_s7 + $0x60] sm:$0xf] %v239_v24  ;;  %242 = vst [vmem:[%s1594_s7 + $0x64] sm:$0xf] %v241_v25  ;;  %v245_v27 = vld [vmem:[%s1589_s6 + $0x3cc] sm:$0xf] }
  0x2a   : > { %244 = vst [vmem:[%s1594_s7 + $0x68] sm:$0xf] %v243_v26  ;;  %v247_v28 = vld [vmem:[%s1589_s6 + $0x3f0] sm:$0xf]  ;;  %v249_v29 = vld [vmem:[%s1589_s6 + $0x414] sm:$0xf] }
  0x2b   : > { %246 = vst [vmem:[%s1594_s7 + $0x6c] sm:$0xf] %v245_v27  ;;  %248 = vst [vmem:[%s1594_s7 + $0x70] sm:$0xf] %v247_v28  ;;  %v251_v30 = vld [vmem:[%s1589_s6 + $0x438] sm:$0xf] }
  0x2c   : > { %250 = vst [vmem:[%s1594_s7 + $0x74] sm:$0xf] %v249_v29  ;;  %v253_v31 = vld [vmem:[%s1589_s6 + $0x45c] sm:$0xf]  ;;  %252 = vst [vmem:[%s1594_s7 + $0x78] sm:$0xf] %v251_v30 }
  0x2d   : > { %254 = vst [vmem:[%s1594_s7 + $0x7c] sm:$0xf] %v253_v31 }
  0x2e PF: > { %p1245_p7 = scmp.ge.s32.totalorder %s1506_s18, 1  ;;  %p352_p8 = scmp.lt.s32.totalorder %s1506_s18, 28 }
  0x30   : > { %p353_p9 = pnand %p1245_p7, %p352_p8 }
  0x31   : > { %s359_s8 = sand.u32 (!%p353_p9), 1, %s1482_s12   ;;  %s1247_s9 = sshll.u32 (!%p353_p9), %s1490_s14, 4 }
  0x32   : > { %356 = sbr.rel (%p353_p9) target bundleno = 376 (0x178), region = 69  ;;  %s1246_s10 = sshll.u32 (!%p353_p9), %s359_s8, 7 }
  0x33   : > { %p399_p10 = scmp.lt.s32.totalorder (!%p353_p9), %s1247_s9, 143  ;;  %s1249_s11 = sshll.u32 (!%p353_p9), %s1494_s15, 5 }
  0x34   : > { %p412_p11 = scmp.lt.s32.totalorder (!%p353_p9), %s1249_s11, 95  ;;  %s1672_s12 = scalar_lea.vmem (!%p353_p9), [#allocation3], %s1246_s10 }
  0x35   : > { %p1251_p12 = scmp.ne.s32.totalorder (!%p353_p9), %s1490_s14, 0 }
  0x39   : > { %s1881_s9 = smov (!%p399_p10, %s1247_s9), 143  ;;  %s1883_s11 = smov (!%p412_p11, %s1249_s11), 95 }
  0x3a   : > { %s1248_s21 = sshll.u32 %s1881_s9, 2  ;;  %s1250_s26 = sshll.u32 %s1883_s11, 3  ;;  %v1508_v32 = vmov (!%p1251_p12), 0.0  }
  0x3b   : > { %s1665_s24 = scalar_lea.vmem %s1865_s1, %s1248_s21  ;;  %s1670_s29 = scalar_lea.vmem %s1867_s3, %s1250_s26  ;;  %425 = vst [vmem:[#allocation2] sm:$0xff] (!%p1251_p12), %v1508_v32  ;;  %426 = vst [vmem:[#allocation2 + $0x8] sm:$0xff] (!%p1251_p12), %v1508_v32 }
  0x3c   : > { %424 = sbr.rel (%p1251_p12) target bundleno = 75 (0x4b), region = 77  ;;  %427 = vst [vmem:[#allocation2 + $0x10] sm:$0xff] (!%p1251_p12), %v1508_v32  ;;  %428 = vst [vmem:[#allocation2 + $0x18] sm:$0xff] (!%p1251_p12), %v1508_v32 }
  0x3d   : > { %429 = vst [vmem:[#allocation2 + $0x20] sm:$0xff] (!%p1251_p12), %v1508_v32  ;;  %430 = vst [vmem:[#allocation2 + $0x28] sm:$0xff] (!%p1251_p12), %v1508_v32 }
  0x3e   : > { %431 = vst [vmem:[#allocation2 + $0x30] sm:$0xff] (!%p1251_p12), %v1508_v32  ;;  %432 = vst [vmem:[#allocation2 + $0x38] sm:$0xff] (!%p1251_p12), %v1508_v32 }
  0x3f   : > { %433 = vst [vmem:[#allocation2 + $0x40] sm:$0xff] (!%p1251_p12), %v1508_v32  ;;  %434 = vst [vmem:[#allocation2 + $0x48] sm:$0xff] (!%p1251_p12), %v1508_v32 }
  0x40   : > { %435 = vst [vmem:[#allocation2 + $0x50] sm:$0xff] (!%p1251_p12), %v1508_v32  ;;  %436 = vst [vmem:[#allocation2 + $0x58] sm:$0xff] (!%p1251_p12), %v1508_v32 }
  0x41   : > { %437 = vst [vmem:[#allocation2 + $0x60] sm:$0xff] (!%p1251_p12), %v1508_v32  ;;  %438 = vst [vmem:[#allocation2 + $0x68] sm:$0xff] (!%p1251_p12), %v1508_v32 }
  0x42   : > { %439 = vst [vmem:[#allocation2 + $0x70] sm:$0xff] (!%p1251_p12), %v1508_v32  ;;  %440 = vst [vmem:[#allocation2 + $0x78] sm:$0xff] (!%p1251_p12), %v1508_v32 }
  0x43   : > { %441 = vst [vmem:[#allocation2 + $0x80] sm:$0xff] %v1508_v32  ;;  %442 = vst [vmem:[#allocation2 + $0x88] sm:$0xff] %v1508_v32 }
  0x44   : > { %443 = vst [vmem:[#allocation2 + $0x90] sm:$0xff] %v1508_v32  ;;  %444 = vst [vmem:[#allocation2 + $0x98] sm:$0xff] %v1508_v32 }
  0x45   : > { %445 = vst [vmem:[#allocation2 + $0xa0] sm:$0xff] %v1508_v32  ;;  %446 = vst [vmem:[#allocation2 + $0xa8] sm:$0xff] %v1508_v32 }
  0x46   : > { %447 = vst [vmem:[#allocation2 + $0xb0] sm:$0xff] %v1508_v32  ;;  %448 = vst [vmem:[#allocation2 + $0xb8] sm:$0xff] %v1508_v32 }
  0x47   : > { %449 = vst [vmem:[#allocation2 + $0xc0] sm:$0xff] %v1508_v32  ;;  %450 = vst [vmem:[#allocation2 + $0xc8] sm:$0xff] %v1508_v32 }
  0x48   : > { %451 = vst [vmem:[#allocation2 + $0xd0] sm:$0xff] %v1508_v32  ;;  %452 = vst [vmem:[#allocation2 + $0xd8] sm:$0xff] %v1508_v32 }
  0x49   : > { %453 = vst [vmem:[#allocation2 + $0xe0] sm:$0xff] %v1508_v32  ;;  %454 = vst [vmem:[#allocation2 + $0xe8] sm:$0xff] %v1508_v32 }
  0x4a   : > { %455 = vst [vmem:[#allocation2 + $0xf0] sm:$0xff] %v1508_v32  ;;  %456 = vst [vmem:[#allocation2 + $0xf8] sm:$0xff] %v1508_v32 }
  0x4b PF: > { %v1428_v33 = vld [vmem:[%s1665_s24] sm:$0xff]   ;;  %v1429_v34 = vld [vmem:[%s1665_s24 + $0x8] sm:$0xff]   ;;  %v1430_v35 = vld [vmem:[%s1665_s24 + $0x10] sm:$0xff]   ;;  %p1276_p13 = scmp.ne.s32.totalorder %s1490_s14, 8 }
  0x4c   : > { %1306 = vmatprep.subr.bf16.mxu0 %v1428_v33  ;;  %1354 = vmatprep.subr.bf16.mxu1 %v1428_v33  ;;  %v1431_v36 = vld [vmem:[%s1665_s24 + $0x18] sm:$0xff]   ;;  %v1436_v37 = vld [vmem:[%s1672_s12] sm:$0xff]   ;;  %v1433_v40 = vld [vmem:[%s1665_s24 + $0x28] sm:$0xff]  }
  0x4d   : > { %1307 = vmatpush3.bf16.msra.mxu0 %v1428_v33  ;;  %1362 = vmatpush3.bf16.msra.mxu1 %v1428_v33  ;;  %v1437_v38 = vld [vmem:[%s1672_s12 + $0x40] sm:$0xff]   ;;  %v1434_v41 = vld [vmem:[%s1665_s24 + $0x30] sm:$0xff]   ;;  %v1435_v42 = vld [vmem:[%s1665_s24 + $0x38] sm:$0xff]  }
  0x4e   : > { %1308 = vmatprep.subr.bf16.mxu0 %v1429_v34  ;;  %1355 = vmatprep.subr.bf16.mxu1 %v1429_v34  ;;  %v1432_v39 = vld [vmem:[%s1665_s24 + $0x20] sm:$0xff]   ;;  %v1438_v43 = vld [vmem:[%s1672_s12 + $0x8] sm:$0xff]   ;;  %v1440_v45 = vld [vmem:[%s1672_s12 + $0x10] sm:$0xff]  }
  0x4f   : > { %1322 = vmatprep.mubr.bf16.mxu0 %v1436_v37  ;;  %1338 = vmatprep.mubr.bf16.mxu1 %v1437_v38  ;;  %v1439_v44 = vld [vmem:[%s1672_s12 + $0x48] sm:$0xff]   ;;  %v1441_v46 = vld [vmem:[%s1672_s12 + $0x50] sm:$0xff]   ;;  %v1442_v47 = vld [vmem:[%s1672_s12 + $0x18] sm:$0xff]  }
  0x50   : > { %v1443_v48 = vld [vmem:[%s1672_s12 + $0x58] sm:$0xff]   ;;  %v1444_v49 = vld [vmem:[%s1672_s12 + $0x20] sm:$0xff]   ;;  %v1446_v51 = vld [vmem:[%s1672_s12 + $0x28] sm:$0xff]  }
  0x51   : > { %1309 = vmatpush3.bf16.msra.mxu0 %v1429_v34  ;;  %1363 = vmatpush3.bf16.msra.mxu1 %v1429_v34  ;;  %v1445_v50 = vld [vmem:[%s1672_s12 + $0x60] sm:$0xff]   ;;  %v1447_v52 = vld [vmem:[%s1672_s12 + $0x68] sm:$0xff]   ;;  %v1448_v53 = vld [vmem:[%s1672_s12 + $0x30] sm:$0xff]  }
  0x52   : > { %1310 = vmatprep.subr.bf16.mxu0 %v1430_v35  ;;  %1356 = vmatprep.subr.bf16.mxu1 %v1430_v35  ;;  %v1449_v54 = vld [vmem:[%s1672_s12 + $0x70] sm:$0xff]   ;;  %v1450_v55 = vld [vmem:[%s1672_s12 + $0x38] sm:$0xff]   ;;  %v457_v59 = vld [vmem:[#allocation2] sm:$0xff] }
  0x53   : > { %v1451_v56 = vld [vmem:[%s1672_s12 + $0x78] sm:$0xff]   ;;  %v459_v57 = vld [vmem:[#allocation2 + $0x10] sm:$0xff]  ;;  %v473_v60 = vld [vmem:[#allocation2 + $0x80] sm:$0xff] }
  0x54   : > { %v475_v58 = vld [vmem:[#allocation2 + $0x90] sm:$0xff]  ;;  %v460_v63 = vld [vmem:[#allocation2 + $0x18] sm:$0xff]  ;;  %v458_v5 = vld [vmem:[#allocation2 + $0x8] sm:$0xff] }
  0x55   : > { %1311 = vmatpush3.bf16.msra.mxu0 %v1430_v35  ;;  %1364 = vmatpush3.bf16.msra.mxu1 %v1430_v35  ;;  %v476_v0 = vld [vmem:[#allocation2 + $0x98] sm:$0xff]  ;;  %v474_v6 = vld [vmem:[#allocation2 + $0x88] sm:$0xff]  ;;  %v463_v17 = vld [vmem:[#allocation2 + $0x30] sm:$0xff] }
  0x56   : > { %1312 = vmatprep.subr.bf16.mxu0 %v1431_v36  ;;  %1357 = vmatprep.subr.bf16.mxu1 %v1431_v36  ;;  %v479_v18 = vld [vmem:[#allocation2 + $0xb0] sm:$0xff]  ;;  %v461_v19 = vld [vmem:[#allocation2 + $0x20] sm:$0xff]  ;;  %v464_v23 = vld [vmem:[#allocation2 + $0x38] sm:$0xff] }
  0x57   : > { %v477_v20 = vld [vmem:[#allocation2 + $0xa0] sm:$0xff]  ;;  %v480_v24 = vld [vmem:[#allocation2 + $0xb8] sm:$0xff]  ;;  %v462_v29 = vld [vmem:[#allocation2 + $0x28] sm:$0xff] }
  0x58   : > { %v478_v30 = vld [vmem:[#allocation2 + $0xa8] sm:$0xff] }
  0x59   : > { %1313 = vmatpush3.bf16.msra.mxu0 %v1431_v36  ;;  %1365 = vmatpush3.bf16.msra.mxu1 %v1431_v36 }
  0x5a   : > { %1314 = vmatprep.subr.bf16.mxu0 %v1432_v39  ;;  %1358 = vmatprep.subr.bf16.mxu1 %v1432_v39 }
  0x5d   : > { %1315 = vmatpush3.bf16.msra.mxu0 %v1432_v39  ;;  %1366 = vmatpush3.bf16.msra.mxu1 %v1432_v39 }
  0x5e   : > { %1316 = vmatprep.subr.bf16.mxu0 %v1433_v40  ;;  %1359 = vmatprep.subr.bf16.mxu1 %v1433_v40 }
  0x61   : > { %1317 = vmatpush3.bf16.msra.mxu0 %v1433_v40  ;;  %1367 = vmatpush3.bf16.msra.mxu1 %v1433_v40 }
  0x62   : > { %1318 = vmatprep.subr.bf16.mxu0 %v1434_v41  ;;  %1360 = vmatprep.subr.bf16.mxu1 %v1434_v41 }
  0x65   : > { %1319 = vmatpush3.bf16.msra.mxu0 %v1434_v41  ;;  %1368 = vmatpush3.bf16.msra.mxu1 %v1434_v41  ;;  %v467_v41 = vld [vmem:[#allocation2 + $0x50] sm:$0xff] }
  0x66   : > { %1320 = vmatprep.subr.bf16.mxu0 %v1435_v42  ;;  %1361 = vmatprep.subr.bf16.mxu1 %v1435_v42 }
  0x69   : > { %1321 = vmatpush3.bf16.msra.mxu0 %v1435_v42  ;;  %1369 = vmatpush3.bf16.msra.mxu1 %v1435_v42  ;;  %v483_v42 = vld [vmem:[#allocation2 + $0xd0] sm:$0xff] }
  0x6c   : > { %1323 = vmatmul.mubr.bf16.vlgmr.msra.gmra.mrb[0].mxu0 %v1438_v43  ;;  %1339 = vmatmul.mubr.bf16.vlgmr.msra.gmra.mrb[0].mxu1 %v1439_v44  ;;  %v465_v43 = vld [vmem:[#allocation2 + $0x40] sm:$0xff] }
  0x6d   : > { %1326 = vmatprep.mubr.bf16.mxu0 %v1440_v45  ;;  %1342 = vmatprep.mubr.bf16.mxu1 %v1441_v46  ;;  %v481_v44 = vld [vmem:[#allocation2 + $0xc0] sm:$0xff] }
  0x74   : > { %1327 = vmatmul.mubr.bf16.gmra.mrb[4].mxu0 %v1442_v47  ;;  %1343 = vmatmul.mubr.bf16.gmra.mrb[4].mxu1 %v1443_v48  ;;  %v468_v47 = vld [vmem:[#allocation2 + $0x58] sm:$0xff] }
  0x75   : > { %1330 = vmatprep.mubr.bf16.mxu0 %v1444_v49  ;;  %1346 = vmatprep.mubr.bf16.mxu1 %v1445_v50  ;;  %v484_v48 = vld [vmem:[#allocation2 + $0xd8] sm:$0xff] }
  0x7c   : > { %1331 = vmatmul.mubr.bf16.gmra.mrb[8].mxu0 %v1446_v51  ;;  %1347 = vmatmul.mubr.bf16.gmra.mrb[8].mxu1 %v1447_v52 }
  0x7d   : > { %1334 = vmatprep.mubr.bf16.mxu0 %v1448_v53  ;;  %1350 = vmatprep.mubr.bf16.mxu1 %v1449_v54  ;;  %v466_v53 = vld [vmem:[#allocation2 + $0x48] sm:$0xff] }
  0x7e   : > { %v482_v54 = vld [vmem:[#allocation2 + $0xc8] sm:$0xff] }
  0x84   : > { %1335 = vmatmul.mubr.bf16.gmra.mrb[12].mxu0 %v1450_v55  ;;  %1351 = vmatmul.mubr.bf16.gmra.mrb[12].mxu1 %v1451_v56 }
 0x13f   : > { %v1324_v61 = vpop.f32.mrb[0].mxu0  ;;  %v1340_v62 = vpop.f32.mrb[0].mxu1 }
 0x140   : > { %v844_v1 = vadd.f32 %v1324_v61, %v459_v57  ;;  %v860_v2 = vadd.f32 %v1340_v62, %v475_v58  ;;  %v715_v3 = vpop.f32.mrb[1].mxu0  ;;  %v779_v4 = vpop.f32.mrb[1].mxu1 }
 0x141   : > { %v842_v7 = vadd.f32 %v715_v3, %v457_v59  ;;  %v858_v8 = vadd.f32 %v779_v4, %v473_v60  ;;  %v1325_v9 = vpop.f32.mrb[2].mxu0  ;;  %v1341_v10 = vpop.f32.mrb[2].mxu1  ;;  %v469_v3 = vld [vmem:[#allocation2 + $0x60] sm:$0xff] }
 0x142   : > { %876 = vst [vmem:[#allocation2 + $0x10] sm:$0xff] %v844_v1  ;;  %892 = vst [vmem:[#allocation2 + $0x90] sm:$0xff] %v860_v2  ;;  %v845_v11 = vadd.f32 %v1325_v9, %v460_v63  ;;  %v861_v12 = vadd.f32 %v1341_v10, %v476_v0  ;;  %v718_v13 = vpop.f32.mrb[3].mxu0  ;;  %v782_v14 = vpop.f32.mrb[3].mxu1  ;;  %v471_v1 = vld [vmem:[#allocation2 + $0x70] sm:$0xff]  ;;  %v485_v4 = vld [vmem:[#allocation2 + $0xe0] sm:$0xff] }
 0x143   : > { %874 = vst [vmem:[#allocation2] sm:$0xff] %v842_v7  ;;  %890 = vst [vmem:[#allocation2 + $0x80] sm:$0xff] %v858_v8  ;;  %v843_v15 = vadd.f32 %v718_v13, %v458_v5  ;;  %v859_v16 = vadd.f32 %v782_v14, %v474_v6  ;;  %v487_v2 = vld [vmem:[#allocation2 + $0xf0] sm:$0xff]  ;;  %v472_v7 = vld [vmem:[#allocation2 + $0x78] sm:$0xff] }
 0x144   : > { %877 = vst [vmem:[#allocation2 + $0x18] sm:$0xff] %v845_v11  ;;  %893 = vst [vmem:[#allocation2 + $0x98] sm:$0xff] %v861_v12  ;;  %v488_v8 = vld [vmem:[#allocation2 + $0xf8] sm:$0xff]  ;;  %v470_v13 = vld [vmem:[#allocation2 + $0x68] sm:$0xff] }
 0x145   : > { %875 = vst [vmem:[#allocation2 + $0x8] sm:$0xff] %v843_v15  ;;  %891 = vst [vmem:[#allocation2 + $0x88] sm:$0xff] %v859_v16  ;;  %v486_v14 = vld [vmem:[#allocation2 + $0xe8] sm:$0xff] }
 0x147   : > { %v1328_v21 = vpop.f32.mrb[4].mxu0  ;;  %v1344_v22 = vpop.f32.mrb[4].mxu1 }
 0x148   : > { %v848_v25 = vadd.f32 %v1328_v21, %v463_v17  ;;  %v864_v26 = vadd.f32 %v1344_v22, %v479_v18  ;;  %v731_v27 = vpop.f32.mrb[5].mxu0  ;;  %v795_v28 = vpop.f32.mrb[5].mxu1 }
 0x149   : > { %v846_v31 = vadd.f32 %v731_v27, %v461_v19  ;;  %v862_v32 = vadd.f32 %v795_v28, %v477_v20  ;;  %v1329_v33 = vpop.f32.mrb[6].mxu0  ;;  %v1345_v34 = vpop.f32.mrb[6].mxu1  ;;  %v1709_v28 = vld [vmem:[%s1866_s2 + $0x1] ss:$0 sm:$0xff] (!%p1276_p13) }
 0x14a   : > { %880 = vst [vmem:[#allocation2 + $0x30] sm:$0xff] %v848_v25  ;;  %896 = vst [vmem:[#allocation2 + $0xb0] sm:$0xff] %v864_v26  ;;  %v849_v35 = vadd.f32 %v1329_v33, %v464_v23  ;;  %v865_v36 = vadd.f32 %v1345_v34, %v480_v24  ;;  %v734_v37 = vpop.f32.mrb[7].mxu0  ;;  %v798_v38 = vpop.f32.mrb[7].mxu1  ;;  %v910_v25 = vld [vmem:[#allocation2] sm:$0xff] (!%p1276_p13) }
 0x14b   : > { %878 = vst [vmem:[#allocation2 + $0x20] sm:$0xff] %v846_v31  ;;  %894 = vst [vmem:[#allocation2 + $0xa0] sm:$0xff] %v862_v32  ;;  %v847_v39 = vadd.f32 %v734_v37, %v462_v29  ;;  %v863_v40 = vadd.f32 %v798_v38, %v478_v30  ;;  %v1703_v26 = vld [vmem:[%s1866_s2] ss:$0 sm:$0xff] (!%p1276_p13)  ;;  %v912_v30 = vld [vmem:[#allocation2 + $0x10] sm:$0xff] (!%p1276_p13) }
 0x14c   : > { %881 = vst [vmem:[#allocation2 + $0x38] sm:$0xff] %v849_v35  ;;  %897 = vst [vmem:[#allocation2 + $0xb8] sm:$0xff] %v865_v36  ;;  %v947_v27 = vadd.f32 (!%p1276_p13), %v1703_v26, %v910_v25  ;;  %v911_v29 = vld [vmem:[#allocation2 + $0x8] sm:$0xff] (!%p1276_p13)  ;;  %v949_v32 = vadd.f32 (!%p1276_p13), %v1703_v26, %v912_v30  ;;  %v913_v33 = vld [vmem:[#allocation2 + $0x18] sm:$0xff] (!%p1276_p13) }
 0x14d   : > { %879 = vst [vmem:[#allocation2 + $0x28] sm:$0xff] %v847_v39  ;;  %895 = vst [vmem:[#allocation2 + $0xa8] sm:$0xff] %v863_v40  ;;  %v948_v31 = vadd.f32 (!%p1276_p13), %v1703_v26, %v911_v29  ;;  %v950_v37 = vadd.f32 (!%p1276_p13), %v1703_v26, %v913_v33  ;;  %v926_v33 = vld [vmem:[#allocation2 + $0x80] sm:$0xff] (!%p1276_p13) }
 0x14e   : > { %v979_v36 = vmax.f32 (!%p1276_p13), %v947_v27, 0.0 }
 0x14f   : > { %v1332_v45 = vpop.f32.mrb[8].mxu0  ;;  %v1348_v46 = vpop.f32.mrb[8].mxu1 }
 0x150   : > { %v852_v49 = vadd.f32 %v1332_v45, %v467_v41  ;;  %v868_v50 = vadd.f32 %v1348_v46, %v483_v42  ;;  %v747_v51 = vpop.f32.mrb[9].mxu0  ;;  %v811_v52 = vpop.f32.mrb[9].mxu1  ;;  %v1719_v42 = vld [vmem:[%s1866_s2 + $0x2] ss:$0 sm:$0xff] (!%p1276_p13) }
 0x151   : > { %v850_v55 = vadd.f32 %v747_v51, %v465_v43  ;;  %v866_v56 = vadd.f32 %v811_v52, %v481_v44  ;;  %v1333_v57 = vpop.f32.mrb[10].mxu0  ;;  %v1349_v58 = vpop.f32.mrb[10].mxu1  ;;  %v916_v40 = vld [vmem:[#allocation2 + $0x30] sm:$0xff] (!%p1276_p13)  ;;  %v980_v43 = vmax.f32 (!%p1276_p13), %v948_v31, 0.0  ;;  %v981_v44 = vmax.f32 (!%p1276_p13), %v949_v32, 0.0 }
 0x152   : > { %884 = vst [vmem:[#allocation2 + $0x50] sm:$0xff] %v852_v49  ;;  %900 = vst [vmem:[#allocation2 + $0xd0] sm:$0xff] %v868_v50  ;;  %v853_v59 = vadd.f32 %v1333_v57, %v468_v47  ;;  %v869_v60 = vadd.f32 %v1349_v58, %v484_v48  ;;  %v750_v61 = vpop.f32.mrb[11].mxu0  ;;  %v814_v62 = vpop.f32.mrb[11].mxu1  ;;  %v914_v34 = vld [vmem:[#allocation2 + $0x20] sm:$0xff] (!%p1276_p13)  ;;  %v953_v45 = vadd.f32 (!%p1276_p13), %v1703_v26, %v916_v40  ;;  %v982_v48 = vmax.f32 (!%p1276_p13), %v950_v37, 0.0 }
 0x153   : > { %882 = vst [vmem:[#allocation2 + $0x40] sm:$0xff] %v850_v55  ;;  %898 = vst [vmem:[#allocation2 + $0xc0] sm:$0xff] %v866_v56  ;;  %v851_v63 = vadd.f32 %v750_v61, %v466_v53  ;;  %v867_v0 = vadd.f32 %v814_v62, %v482_v54  ;;  %v951_v38 = vadd.f32 (!%p1276_p13), %v1703_v26, %v914_v34  ;;  %v917_v41 = vld [vmem:[#allocation2 + $0x38] sm:$0xff] (!%p1276_p13) }
 0x154   : > { %885 = vst [vmem:[#allocation2 + $0x58] sm:$0xff] %v853_v59  ;;  %901 = vst [vmem:[#allocation2 + $0xd8] sm:$0xff] %v869_v60  ;;  %v915_v35 = vld [vmem:[#allocation2 + $0x28] sm:$0xff] (!%p1276_p13)  ;;  %v954_v46 = vadd.f32 (!%p1276_p13), %v1703_v26, %v917_v41  ;;  %v1016_v47 = vmul.f32 (!%p1276_p13), %v1709_v28, %v979_v36  ;;  %v1017_v51 = vmul.f32 (!%p1276_p13), %v1709_v28, %v980_v43  ;;  %v985_v53 = vmax.f32 (!%p1276_p13), %v953_v45, 0.0  ;;  %v929_v45 = vld [vmem:[#allocation2 + $0x98] sm:$0xff] (!%p1276_p13) }
 0x155   : > { %883 = vst [vmem:[#allocation2 + $0x48] sm:$0xff] %v851_v63  ;;  %899 = vst [vmem:[#allocation2 + $0xc8] sm:$0xff] %v867_v0  ;;  %v952_v39 = vadd.f32 (!%p1276_p13), %v1703_v26, %v915_v35  ;;  %v983_v49 = vmax.f32 (!%p1276_p13), %v951_v38, 0.0  ;;  %v1018_v52 = vmul.f32 (!%p1276_p13), %v1709_v28, %v981_v44  ;;  %v1019_v57 = vmul.f32 (!%p1276_p13), %v1709_v28, %v982_v48  ;;  %v927_v38 = vld [vmem:[#allocation2 + $0x88] sm:$0xff] (!%p1276_p13) }
 0x156   : > { %v986_v54 = vmax.f32 (!%p1276_p13), %v954_v46, 0.0  ;;  %v1053_v56 = vadd.f32 (!%p1276_p13), %v1719_v42, %v1016_v47  ;;  %v1054_v62 = vadd.f32 (!%p1276_p13), %v1719_v42, %v1017_v51  ;;  %v1022_v0 = vmul.f32 (!%p1276_p13), %v1709_v28, %v985_v53  ;;  %v930_v46 = vld [vmem:[#allocation2 + $0xa0] sm:$0xff] (!%p1276_p13)  ;;  %v931_v47 = vld [vmem:[#allocation2 + $0xa8] sm:$0xff] (!%p1276_p13)  ;;  %v933_v53 = vld [vmem:[#allocation2 + $0xb8] sm:$0xff] (!%p1276_p13) }
 0x157   : > { %v1336_v5 = vpop.f32.mrb[12].mxu0  ;;  %v1352_v6 = vpop.f32.mrb[12].mxu1  ;;  %909 = sbr.rel (%p1276_p13) target bundleno = 376 (0x178), region = 81  ;;  %v984_v50 = vmax.f32 (!%p1276_p13), %v952_v39, 0.0  ;;  %v1020_v58 = vmul.f32 (!%p1276_p13), %v1709_v28, %v983_v49  ;;  %v1055_v63 = vadd.f32 (!%p1276_p13), %v1719_v42, %v1018_v52  ;;  %v928_v39 = vld [vmem:[#allocation2 + $0x90] sm:$0xff] (!%p1276_p13)  ;;  %v963_v51 = vadd.f32 (!%p1276_p13), %v1703_v26, %v926_v33 }
 0x158   : > { %v856_v9 = vadd.f32 %v1336_v5, %v471_v1  ;;  %v872_v10 = vadd.f32 %v1352_v6, %v487_v2  ;;  %v763_v11 = vpop.f32.mrb[13].mxu0  ;;  %v827_v12 = vpop.f32.mrb[13].mxu1  ;;  %v1023_v1 = vmul.f32 (!%p1276_p13), %v1709_v28, %v986_v54  ;;  %1085 = vst [vmem:[%s1670_s29] sm:$0xff] (!%p1276_p13), %v1053_v56  ;;  %v1056_v5 = vadd.f32 (!%p1276_p13), %v1719_v42, %v1019_v57  ;;  %v932_v52 = vld [vmem:[#allocation2 + $0xb0] sm:$0xff] (!%p1276_p13) }
 0x159   : > { %v854_v15 = vadd.f32 %v763_v11, %v469_v3  ;;  %v870_v16 = vadd.f32 %v827_v12, %v485_v4  ;;  %v1337_v17 = vpop.f32.mrb[14].mxu0  ;;  %v1353_v18 = vpop.f32.mrb[14].mxu1  ;;  %v1021_v59 = vmul.f32 (!%p1276_p13), %v1709_v28, %v984_v50  ;;  %v920_v61 = vld [vmem:[#allocation2 + $0x50] sm:$0xff] (!%p1276_p13)  ;;  %v1057_v6 = vadd.f32 (!%p1276_p13), %v1719_v42, %v1020_v58  ;;  %1086 = vst [vmem:[%s1670_s29 + $0x8] sm:$0xff] (!%p1276_p13), %v1054_v62 }
 0x15a   : > { %888 = vst [vmem:[#allocation2 + $0x70] sm:$0xff] %v856_v9  ;;  %904 = vst [vmem:[#allocation2 + $0xf0] sm:$0xff] %v872_v10  ;;  %v857_v19 = vadd.f32 %v1337_v17, %v472_v7  ;;  %v873_v20 = vadd.f32 %v1353_v18, %v488_v8  ;;  %v766_v21 = vpop.f32.mrb[15].mxu0  ;;  %v830_v22 = vpop.f32.mrb[15].mxu1  ;;  %v918_v55 = vld [vmem:[#allocation2 + $0x40] sm:$0xff] (!%p1276_p13)  ;;  %v1059_v11 = vadd.f32 (!%p1276_p13), %v1719_v42, %v1022_v0  ;;  %v995_v58 = vmax.f32 (!%p1276_p13), %v963_v51, 0.0 }
 0x15b   : > { %886 = vst [vmem:[#allocation2 + $0x60] sm:$0xff] %v854_v15  ;;  %902 = vst [vmem:[#allocation2 + $0xe0] sm:$0xff] %v870_v16  ;;  %v855_v23 = vadd.f32 %v766_v21, %v470_v13  ;;  %v871_v24 = vadd.f32 %v830_v22, %v486_v14  ;;  %v921_v2 = vld [vmem:[#allocation2 + $0x58] sm:$0xff] (!%p1276_p13)  ;;  %v1058_v7 = vadd.f32 (!%p1276_p13), %v1719_v42, %v1021_v59 }
 0x15c   : > { %889 = vst [vmem:[#allocation2 + $0x78] sm:$0xff] %v857_v19  ;;  %905 = vst [vmem:[#allocation2 + $0xf8] sm:$0xff] %v873_v20  ;;  %v919_v60 = vld [vmem:[#allocation2 + $0x48] sm:$0xff] (!%p1276_p13)  ;;  %v955_v8 = vadd.f32 (!%p1276_p13), %v1703_v26, %v918_v55  ;;  %v1060_v12 = vadd.f32 (!%p1276_p13), %v1719_v42, %v1023_v1  ;;  %v957_v14 = vadd.f32 (!%p1276_p13), %v1703_v26, %v920_v61 }
 0x15d   : > { %887 = vst [vmem:[#allocation2 + $0x68] sm:$0xff] %v855_v23  ;;  %903 = vst [vmem:[#allocation2 + $0xe8] sm:$0xff] %v871_v24  ;;  %v956_v13 = vadd.f32 (!%p1276_p13), %v1703_v26, %v919_v60  ;;  %v958_v16 = vadd.f32 (!%p1276_p13), %v1703_v26, %v921_v2  ;;  %v964_v56 = vadd.f32 (!%p1276_p13), %v1703_v26, %v927_v38 }
 0x15e   : > { %1087 = vst [vmem:[%s1670_s29 + $0x10] sm:$0xff] %v1055_v63  ;;  %1088 = vst [vmem:[%s1670_s29 + $0x18] sm:$0xff] %v1056_v5  ;;  %v987_v15 = vmax.f32 %v955_v8, 0.0  ;;  %v989_v20 = vmax.f32 %v957_v14, 0.0  ;;  %v965_v57 = vadd.f32 %v1703_v26, %v928_v39  ;;  %v966_v59 = vadd.f32 %v1703_v26, %v929_v45 }
 0x15f   : > { %1089 = vst [vmem:[%s1670_s29 + $0x20] sm:$0xff] %v1057_v6  ;;  %1090 = vst [vmem:[%s1670_s29 + $0x28] sm:$0xff] %v1058_v7  ;;  %v988_v19 = vmax.f32 %v956_v13, 0.0  ;;  %v990_v24 = vmax.f32 %v958_v16, 0.0  ;;  %v967_v60 = vadd.f32 %v1703_v26, %v930_v46  ;;  %v968_v61 = vadd.f32 %v1703_v26, %v931_v47  ;;  %v936_v16 = vld [vmem:[#allocation2 + $0xd0] sm:$0xff] }
 0x160   : > { %1091 = vst [vmem:[%s1670_s29 + $0x30] sm:$0xff] %v1059_v11  ;;  %1092 = vst [vmem:[%s1670_s29 + $0x38] sm:$0xff] %v1060_v12  ;;  %v1024_v23 = vmul.f32 %v1709_v28, %v987_v15  ;;  %v1026_v30 = vmul.f32 %v1709_v28, %v989_v20  ;;  %v996_v62 = vmax.f32 %v964_v56, 0.0  ;;  %v997_v63 = vmax.f32 %v965_v57, 0.0  ;;  %v935_v15 = vld [vmem:[#allocation2 + $0xc8] sm:$0xff] }
 0x161   : > { %v924_v9 = vld [vmem:[#allocation2 + $0x70] sm:$0xff]  ;;  %v1025_v29 = vmul.f32 %v1709_v28, %v988_v19  ;;  %v1027_v35 = vmul.f32 %v1709_v28, %v990_v24  ;;  %v969_v0 = vadd.f32 %v1703_v26, %v932_v52  ;;  %v970_v1 = vadd.f32 %v1703_v26, %v933_v53 }
 0x162   : > { %v922_v3 = vld [vmem:[#allocation2 + $0x60] sm:$0xff]  ;;  %v961_v21 = vadd.f32 %v1703_v26, %v924_v9  ;;  %v1061_v34 = vadd.f32 %v1719_v42, %v1024_v23  ;;  %v1063_v41 = vadd.f32 %v1719_v42, %v1026_v30  ;;  %v1032_v2 = vmul.f32 %v1709_v28, %v995_v58  ;;  %v940_v30 = vld [vmem:[#allocation2 + $0xf0] sm:$0xff] }
 0x163   : > { %v925_v10 = vld [vmem:[#allocation2 + $0x78] sm:$0xff]  ;;  %v959_v17 = vadd.f32 %v1703_v26, %v922_v3  ;;  %v1062_v40 = vadd.f32 %v1719_v42, %v1025_v29  ;;  %v1064_v48 = vadd.f32 %v1719_v42, %v1027_v35  ;;  %v998_v3 = vmax.f32 %v966_v59, 0.0 }
 0x164   : > { %v923_v4 = vld [vmem:[#allocation2 + $0x68] sm:$0xff]  ;;  %v962_v22 = vadd.f32 %v1703_v26, %v925_v10  ;;  %v993_v31 = vmax.f32 %v961_v21, 0.0  ;;  %1093 = vst [vmem:[%s1670_s29 + $0x40] sm:$0xff] %v1061_v34  ;;  %1095 = vst [vmem:[%s1670_s29 + $0x50] sm:$0xff] %v1063_v41  ;;  %v1000_v5 = vmax.f32 %v968_v61, 0.0  ;;  %v1033_v6 = vmul.f32 %v1709_v28, %v996_v62  ;;  %v934_v10 = vld [vmem:[#allocation2 + $0xc0] sm:$0xff] }
 0x165   : > { %v960_v18 = vadd.f32 %v1703_v26, %v923_v4  ;;  %v991_v25 = vmax.f32 %v959_v17, 0.0  ;;  %1094 = vst [vmem:[%s1670_s29 + $0x48] sm:$0xff] %v1062_v40  ;;  %1096 = vst [vmem:[%s1670_s29 + $0x58] sm:$0xff] %v1064_v48  ;;  %v999_v4 = vmax.f32 %v967_v60, 0.0  ;;  %v1034_v7 = vmul.f32 %v1709_v28, %v997_v63  ;;  %v937_v21 = vld [vmem:[#allocation2 + $0xd8] sm:$0xff]  ;;  %v939_v23 = vld [vmem:[#allocation2 + $0xe8] sm:$0xff] }
 0x166   : > { %v994_v32 = vmax.f32 %v962_v22, 0.0  ;;  %v1030_v43 = vmul.f32 %v1709_v28, %v993_v31  ;;  %v1001_v8 = vmax.f32 %v969_v0, 0.0  ;;  %v1002_v9 = vmax.f32 %v970_v1, 0.0  ;;  %v938_v22 = vld [vmem:[#allocation2 + $0xe0] sm:$0xff]  ;;  %v941_v31 = vld [vmem:[#allocation2 + $0xf8] sm:$0xff] }
 0x167   : > { %v992_v27 = vmax.f32 %v960_v18, 0.0  ;;  %v1028_v36 = vmul.f32 %v1709_v28, %v991_v25  ;;  %v1069_v11 = vadd.f32 %v1719_v42, %v1032_v2  ;;  %v1035_v12 = vmul.f32 %v1709_v28, %v998_v3 }
 0x168   : > { %v1031_v44 = vmul.f32 %v1709_v28, %v994_v32  ;;  %v1067_v54 = vadd.f32 %v1719_v42, %v1030_v43  ;;  %v1036_v13 = vmul.f32 %v1709_v28, %v999_v4  ;;  %v1037_v14 = vmul.f32 %v1709_v28, %v1000_v5 }
 0x169   : > { %v1029_v37 = vmul.f32 %v1709_v28, %v992_v27  ;;  %v1065_v49 = vadd.f32 %v1719_v42, %v1028_v36  ;;  %v1070_v17 = vadd.f32 %v1719_v42, %v1033_v6  ;;  %v1071_v18 = vadd.f32 %v1719_v42, %v1034_v7  ;;  %1101 = vst [vmem:[%s1670_s29 + $0x80] sm:$0xff] %v1069_v11 }
 0x16a   : > { %v1068_v55 = vadd.f32 %v1719_v42, %v1031_v44  ;;  %1099 = vst [vmem:[%s1670_s29 + $0x70] sm:$0xff] %v1067_v54  ;;  %v1038_v19 = vmul.f32 %v1709_v28, %v1001_v8  ;;  %v1039_v20 = vmul.f32 %v1709_v28, %v1002_v9  ;;  %v1072_v24 = vadd.f32 %v1719_v42, %v1035_v12 }
 0x16b   : > { %v1066_v50 = vadd.f32 %v1719_v42, %v1029_v37  ;;  %1097 = vst [vmem:[%s1670_s29 + $0x60] sm:$0xff] %v1065_v49  ;;  %v1073_v25 = vadd.f32 %v1719_v42, %v1036_v13  ;;  %v1074_v27 = vadd.f32 %v1719_v42, %v1037_v14  ;;  %v971_v29 = vadd.f32 %v1703_v26, %v934_v10 }
 0x16c   : > { %1100 = vst [vmem:[%s1670_s29 + $0x78] sm:$0xff] %v1068_v55  ;;  %1102 = vst [vmem:[%s1670_s29 + $0x88] sm:$0xff] %v1070_v17  ;;  %v1075_v32 = vadd.f32 %v1719_v42, %v1038_v19  ;;  %v1076_v33 = vadd.f32 %v1719_v42, %v1039_v20  ;;  %v972_v34 = vadd.f32 %v1703_v26, %v935_v15 }
 0x16d   : > { %1098 = vst [vmem:[%s1670_s29 + $0x68] sm:$0xff] %v1066_v50  ;;  %1103 = vst [vmem:[%s1670_s29 + $0x90] sm:$0xff] %v1071_v18  ;;  %v973_v35 = vadd.f32 %v1703_v26, %v936_v16  ;;  %v1003_v36 = vmax.f32 %v971_v29, 0.0  ;;  %v974_v37 = vadd.f32 %v1703_v26, %v937_v21  ;;  %v975_v38 = vadd.f32 %v1703_v26, %v938_v22 }
 0x16e   : > { %1104 = vst [vmem:[%s1670_s29 + $0x98] sm:$0xff] %v1072_v24  ;;  %1105 = vst [vmem:[%s1670_s29 + $0xa0] sm:$0xff] %v1073_v25  ;;  %v976_v39 = vadd.f32 %v1703_v26, %v939_v23  ;;  %v1004_v40 = vmax.f32 %v972_v34, 0.0  ;;  %v977_v43 = vadd.f32 %v1703_v26, %v940_v30  ;;  %v978_v44 = vadd.f32 %v1703_v26, %v941_v31 }
 0x16f   : > { %1106 = vst [vmem:[%s1670_s29 + $0xa8] sm:$0xff] %v1074_v27  ;;  %1107 = vst [vmem:[%s1670_s29 + $0xb0] sm:$0xff] %v1075_v32  ;;  %v1005_v41 = vmax.f32 %v973_v35, 0.0  ;;  %v1040_v45 = vmul.f32 %v1709_v28, %v1003_v36  ;;  %v1006_v46 = vmax.f32 %v974_v37, 0.0  ;;  %v1007_v47 = vmax.f32 %v975_v38, 0.0 }
 0x170   : > { %1108 = vst [vmem:[%s1670_s29 + $0xb8] sm:$0xff] %v1076_v33  ;;  %v1008_v48 = vmax.f32 %v976_v39, 0.0  ;;  %v1041_v49 = vmul.f32 %v1709_v28, %v1004_v40  ;;  %v1009_v51 = vmax.f32 %v977_v43, 0.0  ;;  %v1010_v52 = vmax.f32 %v978_v44, 0.0 }
 0x171   : > { %v1042_v50 = vmul.f32 %v1709_v28, %v1005_v41  ;;  %v1077_v53 = vadd.f32 %v1719_v42, %v1040_v45  ;;  %v1043_v54 = vmul.f32 %v1709_v28, %v1006_v46  ;;  %v1044_v26 = vmul.f32 %v1709_v28, %v1007_v47 }
 0x172   : > { %v1045_v55 = vmul.f32 %v1709_v28, %v1008_v48  ;;  %v1078_v56 = vadd.f32 %v1719_v42, %v1041_v49  ;;  %v1046_v58 = vmul.f32 %v1709_v28, %v1009_v51  ;;  %v1047_v59 = vmul.f32 %v1709_v28, %v1010_v52 }
 0x173   : > { %v1079_v57 = vadd.f32 %v1719_v42, %v1042_v50  ;;  %1109 = vst [vmem:[%s1670_s29 + $0xc0] sm:$0xff] %v1077_v53  ;;  %v1080_v60 = vadd.f32 %v1719_v42, %v1043_v54  ;;  %v1081_v61 = vadd.f32 %v1719_v42, %v1044_v26 }
 0x174   : > { %v1082_v62 = vadd.f32 %v1719_v42, %v1045_v55  ;;  %1110 = vst [vmem:[%s1670_s29 + $0xc8] sm:$0xff] %v1078_v56  ;;  %v1083_v63 = vadd.f32 %v1719_v42, %v1046_v58  ;;  %v1084_v0 = vadd.f32 %v1719_v42, %v1047_v59 }
 0x175   : > { %1111 = vst [vmem:[%s1670_s29 + $0xd0] sm:$0xff] %v1079_v57  ;;  %1112 = vst [vmem:[%s1670_s29 + $0xd8] sm:$0xff] %v1080_v60 }
 0x176   : > { %1113 = vst [vmem:[%s1670_s29 + $0xe0] sm:$0xff] %v1081_v61  ;;  %1114 = vst [vmem:[%s1670_s29 + $0xe8] sm:$0xff] %v1082_v62 }
 0x177   : > { %1115 = vst [vmem:[%s1670_s29 + $0xf0] sm:$0xff] %v1083_v63  ;;  %1116 = vst [vmem:[%s1670_s29 + $0xf8] sm:$0xff] %v1084_v0 }
 0x178 PF: > { %s13_s18 = sadd.s32 1, %s1506_s18   ;;  %s1868_s12 = smov %s1486_s13 }
 0x179   : > { %p10_p0 = scmp.ge.s32.totalorder %s13_s18, 29   ;;  %s1869_s13 = smov %s1580_s25 }
 0x17a   : > { %s1870_s14 = smov %s1498_s16  ;;  %s1871_s15 = smov %s1502_s17 }
 0x17b   : > { %s1872_s16 = smov %s1875_s19  ;;  %s1873_s17 = smov %s1879_s20 }
 0x17c   :  { %12 = sbr.rel (!%p10_p0) target bundleno = 4 (0x4), region = 122 }

</bundles_post_ra>
